<compile_context>
chip_gen: v7x
topology: tpu7x:2x2x1
jax: 0.10.0
libtpu: 0.0.40
codegen_flags: <defaults>
</compile_context>

<pallas_src>
import jax
import jax.numpy as jnp
from jax.experimental import pallas as pl
from jax.experimental.pallas import tpu as pltpu

IMAGE_SIZE = 784
NUM_CLASSES = 10
K1_PAD = 896  # 7 * 128, lane-aligned layer-1 contraction dim


def _round_up(n, m):
    return (n + m - 1) // m * m


def discriminator_kernel(x_ref, w1_ref, b1_ref, w2_ref, b2_ref,
                         w3_ref, b3_ref, w4_ref, b4_ref, o_ref):
    x = x_ref[...]                                             # (TB, 896) bf16

    def lrelu(h):                                              # LeakyReLU(0.2)
        return jnp.maximum(h, 0.2 * h)

    # Layer 1: Linear(794 -> 1024); embedding + concat pre-folded into W1.
    h = jnp.dot(x, w1_ref[...], preferred_element_type=jnp.float32) + b1_ref[...]
    h = lrelu(h).astype(jnp.bfloat16)
    # Dropout(0.3): identity in eval mode.

    # Layer 2: Linear(1024 -> 512)
    h = jnp.dot(h, w2_ref[...], preferred_element_type=jnp.float32) + b2_ref[...]
    h = lrelu(h).astype(jnp.bfloat16)

    # Layer 3: Linear(512 -> 256)
    h = jnp.dot(h, w3_ref[...], preferred_element_type=jnp.float32) + b3_ref[...]
    h = lrelu(h)                                               # keep f32

    # Layer 4: Linear(256 -> 1) as VPU mul + XLU lane reduction (avoid N=1 MXU).
    w4 = w4_ref[...].astype(jnp.float32)                       # (1, 256)
    logit = jnp.sum(h * w4, axis=-1, keepdims=True) + b4_ref[...]

    # Sigmoid via EUP exp + approximate reciprocal (EUP/recip slots are idle).
    o_ref[...] = pl.reciprocal(1.0 + jnp.exp(-logit), approx=True)


def init_params(key, class_label_size=NUM_CLASSES, image_size=IMAGE_SIZE):
    """PyTorch-default-style init, returned pre-packed for the kernel."""
    ks = jax.random.split(key, 9)

    def linear(kw, kb, fan_in, fan_out):
        bound = 1.0 / jnp.sqrt(fan_in)
        w = jax.random.uniform(kw, (fan_in, fan_out), jnp.float32, -bound, bound)
        b = jax.random.uniform(kb, (1, fan_out), jnp.float32, -bound, bound)
        return w, b

    emb = jax.random.normal(ks[0], (class_label_size, class_label_size), jnp.float32)
    w1, b1 = linear(ks[1], ks[2], image_size + class_label_size, 1024)
    w2, b2 = linear(ks[3], ks[4], 1024, 512)
    w3, b3 = linear(ks[5], ks[6], 512, 256)
    w4, b4 = linear(ks[7], ks[8], 256, 1)

    # Fold the embedding into the label rows of W1 and pad K from 794 to 896.
    w1_full = jnp.zeros((K1_PAD, 1024), jnp.float32)
    w1_full = w1_full.at[:image_size].set(w1[:image_size])
    w1_full = w1_full.at[image_size:image_size + class_label_size].set(
        emb @ w1[image_size:])

    return dict(
        w1=w1_full.astype(jnp.bfloat16), b1=b1,
        w2=w2.astype(jnp.bfloat16), b2=b2,
        w3=w3.astype(jnp.bfloat16), b3=b3,
        w4=w4.reshape(1, 256).astype(jnp.bfloat16),
        b4=b4.reshape(1, 1),
    )


def _make_input_slab(x, labels, dtype=jnp.bfloat16):
    B = x.shape[0]
    x2d = x.reshape(B, IMAGE_SIZE).astype(jnp.float32)
    onehot = jax.nn.one_hot(labels, NUM_CLASSES, dtype=jnp.float32)
    pad = jnp.zeros((B, K1_PAD - IMAGE_SIZE - NUM_CLASSES), jnp.float32)
    return jnp.concatenate([x2d, onehot, pad], axis=1).astype(dtype)


def discriminator_forward(x, labels, params, block_b=256):
    B = x.shape[0]
    slab = _make_input_slab(x, labels)                         # (B, 896) bf16

    tb = min(block_b, _round_up(B, 8))
    b_pad = _round_up(B, tb)
    if b_pad != B:
        slab = jnp.pad(slab, ((0, b_pad - B), (0, 0)))

    const = lambda i: (0, 0)                                   # resident params

    out = pl.pallas_call(
        discriminator_kernel,
        out_shape=jax.ShapeDtypeStruct((b_pad, 1), jnp.float32),
        grid=(b_pad // tb,),
        in_specs=[
            pl.BlockSpec((tb, K1_PAD), lambda i: (i, 0)),      # x slab, tiled
            pl.BlockSpec((K1_PAD, 1024), const),               # W1 (resident)
            pl.BlockSpec((1, 1024), const),                    # b1
            pl.BlockSpec((1024, 512), const),                  # W2
            pl.BlockSpec((1, 512), const),                     # b2
            pl.BlockSpec((512, 256), const),                   # W3
            pl.BlockSpec((1, 256), const),                     # b3
            pl.BlockSpec((1, 256), const),                     # W4 (row vector)
            pl.BlockSpec((1, 1), const),                       # b4
        ],
        out_specs=pl.BlockSpec((tb, 1), lambda i: (i, 0)),
        compiler_params=pltpu.CompilerParams(
            dimension_semantics=("parallel",),                 # megacore on v7x
            vmem_limit_bytes=24 << 20),
    )(slab, params["w1"], params["b1"], params["w2"], params["b2"],
      params["w3"], params["b3"], params["w4"], params["b4"])

    return jnp.squeeze(out[:B])                                # matches torch .squeeze()


def reference_forward(x, labels, params):
    """Pure-JAX reference with the same packed params (f32 math)."""
    slab = _make_input_slab(x, labels).astype(jnp.float32)

    def lrelu(h):
        return jnp.where(h >= 0, h, 0.2 * h)

    h = lrelu(slab @ params["w1"].astype(jnp.float32) + params["b1"])
    h = h.astype(jnp.bfloat16).astype(jnp.float32)
    h = lrelu(h @ params["w2"].astype(jnp.float32) + params["b2"])
    h = h.astype(jnp.bfloat16).astype(jnp.float32)
    h = lrelu(h @ params["w3"].astype(jnp.float32) + params["b3"])
    logit = jnp.sum(h * params["w4"].astype(jnp.float32), axis=-1,
                    keepdims=True) + params["b4"]
    return jnp.squeeze(jax.nn.sigmoid(logit))


if __name__ == "__main__":
    key = jax.random.PRNGKey(0)
    k_param, k_x, k_lab = jax.random.split(key, 3)

    params = init_params(k_param)

    B = 2
    x = jax.random.normal(k_x, (B, 1, 28, 28), jnp.float32)    # MNIST-like image
    labels = jax.random.randint(k_lab, (B,), 0, NUM_CLASSES, jnp.int32)

    out = jax.block_until_ready(discriminator_forward(x, labels, params))
    ref = jax.block_until_ready(reference_forward(x, labels, params))

    assert out.shape == (B,), f"unexpected output shape {out.shape}"
    assert bool(jnp.all((out >= -1e-3) & (out <= 1.0 + 1e-3))), "sigmoid out of range"
    err = float(jnp.max(jnp.abs(out - ref)))
    assert err < 2e-2, f"mismatch vs reference: {err}"
    print("KERNEL_OK")
</pallas_src>

<mosaic_0001>
module attributes {stable_mosaic.version = 11 : i64} {
  func.func @discriminator_kernel(%arg0: i32, %arg1: memref<8x896xbf16, #tpu.memory_space<vmem>>, %arg2: memref<896x1024xbf16, #tpu.memory_space<vmem>>, %arg3: memref<1x1024xf32, #tpu.memory_space<vmem>>, %arg4: memref<1024x512xbf16, #tpu.memory_space<vmem>>, %arg5: memref<1x512xf32, #tpu.memory_space<vmem>>, %arg6: memref<512x256xbf16, #tpu.memory_space<vmem>>, %arg7: memref<1x256xf32, #tpu.memory_space<vmem>>, %arg8: memref<1x256xbf16, #tpu.memory_space<vmem>>, %arg9: memref<1x1xf32, #tpu.memory_space<vmem>>, %arg10: memref<8x1xf32, #tpu.memory_space<vmem>>) attributes {dimension_semantics = [#tpu.dimension_semantics<parallel>], iteration_bounds = array<i64: 1>, scalar_prefetch = 0 : i64, scratch_operands = 0 : i64, tpu.core_type = #tpu.core_type<tc>, window_params = [{transform_indices = @transform_0, window_bounds = array<i64: 8, 896>}, {pipeline_mode = #tpu.pipeline_mode<synchronous>, transform_indices = @transform_1, window_bounds = array<i64: 896, 1024>}, {pipeline_mode = #tpu.pipeline_mode<synchronous>, transform_indices = @transform_2, window_bounds = array<i64: 1, 1024>}, {pipeline_mode = #tpu.pipeline_mode<synchronous>, transform_indices = @transform_3, window_bounds = array<i64: 1024, 512>}, {pipeline_mode = #tpu.pipeline_mode<synchronous>, transform_indices = @transform_4, window_bounds = array<i64: 1, 512>}, {pipeline_mode = #tpu.pipeline_mode<synchronous>, transform_indices = @transform_5, window_bounds = array<i64: 512, 256>}, {pipeline_mode = #tpu.pipeline_mode<synchronous>, transform_indices = @transform_6, window_bounds = array<i64: 1, 256>}, {pipeline_mode = #tpu.pipeline_mode<synchronous>, transform_indices = @transform_7, window_bounds = array<i64: 1, 256>}, {pipeline_mode = #tpu.pipeline_mode<synchronous>, transform_indices = @transform_8, window_bounds = array<i64: 1, 1>}, {transform_indices = @transform_9, window_bounds = array<i64: 8, 1>}]} {
    %c0 = arith.constant 0 : index
    %c0_0 = arith.constant 0 : index
    %0 = vector.load %arg1[%c0, %c0_0] : memref<8x896xbf16, #tpu.memory_space<vmem>>, vector<8x896xbf16>
    %c0_1 = arith.constant 0 : index
    %c0_2 = arith.constant 0 : index
    %1 = vector.load %arg2[%c0_1, %c0_2] : memref<896x1024xbf16, #tpu.memory_space<vmem>>, vector<896x1024xbf16>
    %cst = arith.constant dense<0.000000e+00> : vector<8x1024xf32>
    %2 = tpu.matmul %0, %1, %cst {dimension_numbers = #tpu.dot_dimension_numbers<[1], [0], [0], [1], [0, 0, 1, 1], [], []>} : vector<8x896xbf16>, vector<896x1024xbf16>, vector<8x1024xf32> -> vector<8x1024xf32>
    %c0_3 = arith.constant 0 : index
    %c0_4 = arith.constant 0 : index
    %3 = vector.load %arg3[%c0_3, %c0_4] : memref<1x1024xf32, #tpu.memory_space<vmem>>, vector<1x1024xf32>
    %4 = vector.broadcast %3 : vector<1x1024xf32> to vector<8x1024xf32>
    %5 = arith.addf %2, %4 : vector<8x1024xf32>
    %cst_5 = arith.constant 2.000000e-01 : f32
    %6 = vector.broadcast %cst_5 : f32 to vector<8x1024xf32>
    %7 = arith.mulf %6, %5 : vector<8x1024xf32>
    %8 = arith.maximumf %5, %7 : vector<8x1024xf32>
    %9 = arith.truncf %8 : vector<8x1024xf32> to vector<8x1024xbf16>
    %c0_6 = arith.constant 0 : index
    %c0_7 = arith.constant 0 : index
    %10 = vector.load %arg4[%c0_6, %c0_7] : memref<1024x512xbf16, #tpu.memory_space<vmem>>, vector<1024x512xbf16>
    %cst_8 = arith.constant dense<0.000000e+00> : vector<8x512xf32>
    %11 = tpu.matmul %9, %10, %cst_8 {dimension_numbers = #tpu.dot_dimension_numbers<[1], [0], [0], [1], [0, 0, 1, 1], [], []>} : vector<8x1024xbf16>, vector<1024x512xbf16>, vector<8x512xf32> -> vector<8x512xf32>
    %c0_9 = arith.constant 0 : index
    %c0_10 = arith.constant 0 : index
    %12 = vector.load %arg5[%c0_9, %c0_10] : memref<1x512xf32, #tpu.memory_space<vmem>>, vector<1x512xf32>
    %13 = vector.broadcast %12 : vector<1x512xf32> to vector<8x512xf32>
    %14 = arith.addf %11, %13 : vector<8x512xf32>
    %cst_11 = arith.constant 2.000000e-01 : f32
    %15 = vector.broadcast %cst_11 : f32 to vector<8x512xf32>
    %16 = arith.mulf %15, %14 : vector<8x512xf32>
    %17 = arith.maximumf %14, %16 : vector<8x512xf32>
    %18 = arith.truncf %17 : vector<8x512xf32> to vector<8x512xbf16>
    %c0_12 = arith.constant 0 : index
    %c0_13 = arith.constant 0 : index
    %19 = vector.load %arg6[%c0_12, %c0_13] : memref<512x256xbf16, #tpu.memory_space<vmem>>, vector<512x256xbf16>
    %cst_14 = arith.constant dense<0.000000e+00> : vector<8x256xf32>
    %20 = tpu.matmul %18, %19, %cst_14 {dimension_numbers = #tpu.dot_dimension_numbers<[1], [0], [0], [1], [0, 0, 1, 1], [], []>} : vector<8x512xbf16>, vector<512x256xbf16>, vector<8x256xf32> -> vector<8x256xf32>
    %c0_15 = arith.constant 0 : index
    %c0_16 = arith.constant 0 : index
    %21 = vector.load %arg7[%c0_15, %c0_16] : memref<1x256xf32, #tpu.memory_space<vmem>>, vector<1x256xf32>
    %22 = vector.broadcast %21 : vector<1x256xf32> to vector<8x256xf32>
    %23 = arith.addf %20, %22 : vector<8x256xf32>
    %cst_17 = arith.constant 2.000000e-01 : f32
    %24 = vector.broadcast %cst_17 : f32 to vector<8x256xf32>
    %25 = arith.mulf %24, %23 : vector<8x256xf32>
    %26 = arith.maximumf %23, %25 : vector<8x256xf32>
    %c0_18 = arith.constant 0 : index
    %c0_19 = arith.constant 0 : index
    %27 = vector.load %arg8[%c0_18, %c0_19] : memref<1x256xbf16, #tpu.memory_space<vmem>>, vector<1x256xbf16>
    %28 = arith.extf %27 : vector<1x256xbf16> to vector<1x256xf32>
    %29 = vector.broadcast %28 : vector<1x256xf32> to vector<8x256xf32>
    %30 = arith.mulf %26, %29 : vector<8x256xf32>
    %cst_20 = arith.constant dense<0.000000e+00> : vector<8xf32>
    %31 = vector.multi_reduction <add>, %30, %cst_20 [1] : vector<8x256xf32> to vector<8xf32>
    %32 = vector.shape_cast %31 : vector<8xf32> to vector<8x1xf32>
    %c0_21 = arith.constant 0 : index
    %c0_22 = arith.constant 0 : index
    %33 = vector.load %arg9[%c0_21, %c0_22] : memref<1x1xf32, #tpu.memory_space<vmem>>, vector<1x1xf32>
    %34 = vector.broadcast %33 : vector<1x1xf32> to vector<8x1xf32>
    %35 = arith.addf %32, %34 : vector<8x1xf32>
    %cst_23 = arith.constant 0.000000e+00 : f32
    %36 = vector.broadcast %cst_23 : f32 to vector<8x1xf32>
    %37 = arith.subf %36, %35 : vector<8x1xf32>
    %38 = math.exp %37 : vector<8x1xf32>
    %cst_24 = arith.constant 1.000000e+00 : f32
    %39 = vector.broadcast %cst_24 : f32 to vector<8x1xf32>
    %40 = arith.addf %39, %38 : vector<8x1xf32>
    %41 = tpu.reciprocal %40 {approx = true} : vector<8x1xf32> -> vector<8x1xf32>
    %c0_25 = arith.constant 0 : index
    %c0_26 = arith.constant 0 : index
    %42 = vector.load %arg10[%c0_25, %c0_26] : memref<8x1xf32, #tpu.memory_space<vmem>>, vector<8x1xf32>
    tpu.vector_store %arg10[%c0_25, %c0_26], %41 {strides = array<i32>} : memref<8x1xf32, #tpu.memory_space<vmem>>, vector<8x1xf32>,
    return
  }
  func.func @transform_0(%arg0: i32) -> (i32, i32) {
    %c0_i32 = arith.constant 0 : i32
    %c0_i32_0 = arith.constant 0 : i32
    return %arg0, %c0_i32 : i32, i32
  }
  func.func @transform_1(%arg0: i32) -> (i32, i32) {
    %c0_i32 = arith.constant 0 : i32
    %c0_i32_0 = arith.constant 0 : i32
    %c0_i32_1 = arith.constant 0 : i32
    return %c0_i32, %c0_i32_0 : i32, i32
  }
  func.func @transform_2(%arg0: i32) -> (i32, i32) {
    %c0_i32 = arith.constant 0 : i32
    %c0_i32_0 = arith.constant 0 : i32
    %c0_i32_1 = arith.constant 0 : i32
    return %c0_i32, %c0_i32_0 : i32, i32
  }
  func.func @transform_3(%arg0: i32) -> (i32, i32) {
    %c0_i32 = arith.constant 0 : i32
    %c0_i32_0 = arith.constant 0 : i32
    %c0_i32_1 = arith.constant 0 : i32
    return %c0_i32, %c0_i32_0 : i32, i32
  }
  func.func @transform_4(%arg0: i32) -> (i32, i32) {
    %c0_i32 = arith.constant 0 : i32
    %c0_i32_0 = arith.constant 0 : i32
    %c0_i32_1 = arith.constant 0 : i32
    return %c0_i32, %c0_i32_0 : i32, i32
  }
  func.func @transform_5(%arg0: i32) -> (i32, i32) {
    %c0_i32 = arith.constant 0 : i32
    %c0_i32_0 = arith.constant 0 : i32
    %c0_i32_1 = arith.constant 0 : i32
    return %c0_i32, %c0_i32_0 : i32, i32
  }
  func.func @transform_6(%arg0: i32) -> (i32, i32) {
    %c0_i32 = arith.constant 0 : i32
    %c0_i32_0 = arith.constant 0 : i32
    %c0_i32_1 = arith.constant 0 : i32
    return %c0_i32, %c0_i32_0 : i32, i32
  }
  func.func @transform_7(%arg0: i32) -> (i32, i32) {
    %c0_i32 = arith.constant 0 : i32
    %c0_i32_0 = arith.constant 0 : i32
    %c0_i32_1 = arith.constant 0 : i32
    return %c0_i32, %c0_i32_0 : i32, i32
  }
  func.func @transform_8(%arg0: i32) -> (i32, i32) {
    %c0_i32 = arith.constant 0 : i32
    %c0_i32_0 = arith.constant 0 : i32
    %c0_i32_1 = arith.constant 0 : i32
    return %c0_i32, %c0_i32_0 : i32, i32
  }
  func.func @transform_9(%arg0: i32) -> (i32, i32) {
    %c0_i32 = arith.constant 0 : i32
    %c0_i32_0 = arith.constant 0 : i32
    return %arg0, %c0_i32 : i32, i32
  }
}

</mosaic_0001>

<bundles_post_ra>
// kernel: tpu_custom_call.1
= control target key start
LH: loop header
LB: loop body
LE: loop exit
PB: predicated region body
PF: predicated region fallthrough
CT: control target
= control target key end

     0   :  { %s7879_s0 = inlined_call_operand.hbm [shape: bf16[8,896], index: 0, kind: input, shape index: {}]   ;;  %s7880_s1 = inlined_call_operand.hbm [shape: bf16[896,1024], index: 1, kind: input, shape index: {}]   ;;  %s7881_s2 = inlined_call_operand.hbm [shape: f32[1,1024], index: 2, kind: input, shape index: {}]   ;;  %s7882_s3 = inlined_call_operand.hbm [shape: bf16[1024,512], index: 3, kind: input, shape index: {}]   ;;  %s7883_s4 = inlined_call_operand.hbm [shape: f32[1,512], index: 4, kind: input, shape index: {}]   ;;  %s7884_s5 = inlined_call_operand.hbm [shape: bf16[512,256], index: 5, kind: input, shape index: {}]   ;;  %s7885_s6 = inlined_call_operand.hbm [shape: f32[1,256], index: 6, kind: input, shape index: {}]   ;;  %s7886_s7 = inlined_call_operand.hbm [shape: bf16[1,256], index: 7, kind: input, shape index: {}]   ;;  %s7887_s8 = inlined_call_operand.<no memory space> [shape: f32[1,1], index: 8, kind: input, shape index: {}]   ;;  %s7888_s9 = inlined_call_operand.vmem [shape: f32[8,1], index: 9, kind: output, shape index: {}]  }
   0x1   :  { %v14_v0 = vstv %s7887_s8 }
   0x2   :  { %15 = vst [vmem:[#allocation2] sm:$0x1] %v14_v0 }
   0x3   :  { %16 = vsyncpa [#allocation4], 0 }
   0x4   :  { %17 = vsyncpa [#allocation6], 0 }
   0x5   :  { %18 = vsyncpa [#allocation9], 0 }
   0x6   :  { %19 = vsyncpa [#allocation12], 0 }
   0x7   :  { %20 = vsyncpa [#allocation15], 0  ;;  %s7562_s11 = smov [#allocation5]   ;;  %s7376_s15 = scalar_lea.hbm %s7880_s1, 57344 }
   0x8   :  { %s36_s12 = sshll.u32 %s7562_s11, 4  ;;  %p7377_p0 = scmp.ne.s32.totalorder %s7880_s1, %s7376_s15  ;;  %s37_s12 = int_to_ptr.vmem [resolvable:$true] %s36_s12 }
   0x9   :  { %p7380_p1 = scmp.lt.u32.totalorder %s7376_s15, %s7880_s1 }
   0xb   :  { %p7382_p2 = pnand %p7380_p1, %p7377_p0 }
   0xd   :  { %7385 = shalt.err (!%p7382_p2)
}
   0xe   :  { %s7386_s8 = scalar_lea.vmem %s37_s12, 57344  ;;  %p7391_p4 = scmp.lt.s32.totalorder %s37_s12, %s37_s12 }
   0xf   :  { %p7387_p3 = scmp.ne.s32.totalorder %s37_s12, %s7386_s8  ;;  %p7392_p5 = scmp.lt.s32.totalorder %s7386_s8, %s7386_s8 }
  0x11   :  { %p7393_p6 = por %p7392_p5, %p7391_p4 }
  0x13   :  { %p7394_p7 = pnand %p7393_p6, %p7387_p3 }
  0x15   :  { %7397 = shalt.err (!%p7394_p7)
}
  0x16   :  { %s7563_s20 = smov 512   ;;  %s7564_s21 = smov 32  }
  0x17   :  { %42 = dma.hbm_to_vmem [thread:$0]  %s7880_s1, 57344, %s37_s12, [#allocation6], %s7563_s20, %s7563_s20, %s7564_s21  }
  0x18   :  { %s7565_s24 = smov [#allocation8]   ;;  %s7398_s28 = scalar_lea.hbm %s7882_s3, 32768 }
  0x19   :  { %s58_s25 = sshll.u32 %s7565_s24, 4  ;;  %p7399_p8 = scmp.ne.s32.totalorder %s7882_s3, %s7398_s28  ;;  %s59_s25 = int_to_ptr.vmem [resolvable:$true] %s58_s25 }
  0x1a   :  { %p7402_p9 = scmp.lt.u32.totalorder %s7398_s28, %s7882_s3 }
  0x1c   :  { %p7404_p10 = pnand %p7402_p9, %p7399_p8 }
  0x1e   :  { %7407 = shalt.err (!%p7404_p10)
}
  0x1f   :  { %s7408_s13 = scalar_lea.vmem %s59_s25, 32768  ;;  %p7413_p12 = scmp.lt.s32.totalorder %s59_s25, %s59_s25 }
  0x20   :  { %p7409_p11 = scmp.ne.s32.totalorder %s59_s25, %s7408_s13  ;;  %p7414_p13 = scmp.lt.s32.totalorder %s7408_s13, %s7408_s13 }
  0x22   :  { %p7415_p0 = por %p7414_p13, %p7413_p12 }
  0x24   :  { %p7416_p1 = pnand %p7415_p0, %p7409_p11 }
  0x26   :  { %7419 = shalt.err (!%p7416_p1)
}
  0x27   :  { %s7566_s1 = smov 256   ;;  %s7567_s12 = smov 16  }
  0x28   :  { %64 = dma.hbm_to_vmem [thread:$0]  %s7882_s3, 32768, %s59_s25, [#allocation9], %s7566_s1, %s7566_s1, %s7567_s12  }
  0x29   :  { %s7568_s16 = smov [#allocation11]   ;;  %s7420_s8 = scalar_lea.hbm %s7884_s5, 8192 }
  0x2a   :  { %s80_s17 = sshll.u32 %s7568_s16, 4  ;;  %p7421_p2 = scmp.ne.s32.totalorder %s7884_s5, %s7420_s8  ;;  %s81_s17 = int_to_ptr.vmem [resolvable:$true] %s80_s17 }
  0x2b   :  { %p7424_p3 = scmp.lt.u32.totalorder %s7420_s8, %s7884_s5 }
  0x2d   :  { %p7426_p4 = pnand %p7424_p3, %p7421_p2 }
  0x2f   :  { %7429 = shalt.err (!%p7426_p4)
}
  0x30   :  { %s7430_s24 = scalar_lea.vmem %s81_s17, 8192  ;;  %p7435_p6 = scmp.lt.s32.totalorder %s81_s17, %s81_s17 }
  0x31   :  { %p7431_p5 = scmp.ne.s32.totalorder %s81_s17, %s7430_s24  ;;  %p7436_p7 = scmp.lt.s32.totalorder %s7430_s24, %s7430_s24 }
  0x33   :  { %p7437_p8 = por %p7436_p7, %p7435_p6 }
  0x35   :  { %p7438_p9 = pnand %p7437_p8, %p7431_p5 }
  0x37   :  { %7441 = shalt.err (!%p7438_p9)
}
  0x38   :  { %s7569_s3 = smov 128   ;;  %s7570_s25 = smov 8  }
  0x39   :  { %86 = dma.hbm_to_vmem [thread:$0]  %s7884_s5, 8192, %s81_s17, [#allocation12], %s7569_s3, %s7569_s3, %s7570_s25  }
  0x3a   :  { %s7571_s28 = smov [#allocation3]   ;;  %s7572_s30 = smov [#allocation7]  }
  0x3b   :  { %s27_s29 = sshll.u32 %s7571_s28, 4  ;;  %s49_s10 = sshll.u32 %s7572_s30, 4  ;;  %s28_s29 = int_to_ptr.vmem [resolvable:$true] %s27_s29  ;;  %s50_s10 = int_to_ptr.vmem [resolvable:$true] %s49_s10 }
  0x3c   :  { %s7442_s1 = scalar_lea.hbm %s7879_s0, 448 }
  0x3d   :  { %p7443_p10 = scmp.ne.s32.totalorder %s7879_s0, %s7442_s1  ;;  %p7446_p11 = scmp.lt.u32.totalorder %s7442_s1, %s7879_s0 }
  0x3f   :  { %p7448_p12 = pnand %p7446_p11, %p7443_p10 }
  0x41   :  { %7451 = shalt.err (!%p7448_p12)
}
  0x42   :  { %s7452_s5 = scalar_lea.vmem %s28_s29, 448  ;;  %p7457_p0 = scmp.lt.s32.totalorder %s28_s29, %s28_s29 }
  0x43   :  { %p7453_p13 = scmp.ne.s32.totalorder %s28_s29, %s7452_s5  ;;  %p7458_p1 = scmp.lt.s32.totalorder %s7452_s5, %s7452_s5 }
  0x45   :  { %p7459_p2 = por %p7458_p1, %p7457_p0 }
  0x47   :  { %p7460_p3 = pnand %p7459_p2, %p7453_p13 }
  0x49   :  { %7463 = shalt.err (!%p7460_p3)
}
  0x4a   :  { %30 = dma.hbm_to_vmem [thread:$0]  %s7879_s0, 448, %s28_s29, [#allocation4]  }
  0x4b   :  { %s7464_s20 = scalar_lea.hbm %s7881_s2, 128 }
  0x4c   :  { %p7465_p4 = scmp.ne.s32.totalorder %s7881_s2, %s7464_s20  ;;  %p7468_p5 = scmp.lt.u32.totalorder %s7464_s20, %s7881_s2 }
  0x4e   :  { %p7470_p6 = pnand %p7468_p5, %p7465_p4 }
  0x50   :  { %7473 = shalt.err (!%p7470_p6)
}
  0x51   :  { %s7474_s3 = scalar_lea.vmem %s50_s10, 128  ;;  %p7479_p8 = scmp.lt.s32.totalorder %s50_s10, %s50_s10 }
  0x52   :  { %p7475_p7 = scmp.ne.s32.totalorder %s50_s10, %s7474_s3  ;;  %p7480_p9 = scmp.lt.s32.totalorder %s7474_s3, %s7474_s3 }
  0x54   :  { %p7481_p10 = por %p7480_p9, %p7479_p8 }
  0x56   :  { %p7482_p11 = pnand %p7481_p10, %p7475_p7 }
  0x58   :  { %7485 = shalt.err (!%p7482_p11)
}
  0x59   :  { %52 = dma.hbm_to_vmem [thread:$0]  %s7881_s2, 128, %s50_s10, [#allocation6]  }
  0x5a   :  { %s7573_s26 = smov [#allocation10]   ;;  %s7574_s28 = smov [#allocation13]  }
  0x5b   :  { %s71_s27 = sshll.u32 %s7573_s26, 4  ;;  %s93_s29 = sshll.u32 %s7574_s28, 4  ;;  %s72_s27 = int_to_ptr.vmem [resolvable:$true] %s71_s27  ;;  %s94_s29 = int_to_ptr.vmem [resolvable:$true] %s93_s29 }
  0x5c   :  { %s7486_s13 = scalar_lea.hbm %s7883_s4, 64 }
  0x5d   :  { %p7487_p12 = scmp.ne.s32.totalorder %s7883_s4, %s7486_s13  ;;  %p7490_p13 = scmp.lt.u32.totalorder %s7486_s13, %s7883_s4 }
  0x5f   :  { %p7492_p0 = pnand %p7490_p13, %p7487_p12 }
  0x61   :  { %7495 = shalt.err (!%p7492_p0)
}
  0x62   :  { %s7496_s2 = scalar_lea.vmem %s72_s27, 64  ;;  %p7501_p2 = scmp.lt.s32.totalorder %s72_s27, %s72_s27 }
  0x63   :  { %p7497_p1 = scmp.ne.s32.totalorder %s72_s27, %s7496_s2  ;;  %p7502_p3 = scmp.lt.s32.totalorder %s7496_s2, %s7496_s2 }
  0x65   :  { %p7503_p4 = por %p7502_p3, %p7501_p2 }
  0x67   :  { %p7504_p5 = pnand %p7503_p4, %p7497_p1 }
  0x69   :  { %7507 = shalt.err (!%p7504_p5)
}
  0x6a   :  { %74 = dma.hbm_to_vmem [thread:$0]  %s7883_s4, 64, %s72_s27, [#allocation9]  }
  0x6b   :  { %s7508_s18 = scalar_lea.hbm %s7885_s6, 32 }
  0x6c   :  { %p7509_p6 = scmp.ne.s32.totalorder %s7885_s6, %s7508_s18  ;;  %p7512_p7 = scmp.lt.u32.totalorder %s7508_s18, %s7885_s6 }
  0x6e   :  { %p7514_p8 = pnand %p7512_p7, %p7509_p6 }
  0x70   :  { %7517 = shalt.err (!%p7514_p8)
}
  0x71   :  { %s7518_s22 = scalar_lea.vmem %s94_s29, 32  ;;  %p7523_p10 = scmp.lt.s32.totalorder %s94_s29, %s94_s29 }
  0x72   :  { %p7519_p9 = scmp.ne.s32.totalorder %s94_s29, %s7518_s22  ;;  %p7524_p11 = scmp.lt.s32.totalorder %s7518_s22, %s7518_s22 }
  0x74   :  { %p7525_p12 = por %p7524_p11, %p7523_p10 }
  0x76   :  { %p7526_p13 = pnand %p7525_p12, %p7519_p9 }
  0x78   :  { %7529 = shalt.err (!%p7526_p13)
}
  0x79   :  { %96 = dma.hbm_to_vmem [thread:$0]  %s7885_s6, 32, %s94_s29, [#allocation12]  }
  0x7a   :  { %s7575_s24 = smov [#allocation14]   ;;  %s7530_s26 = scalar_lea.hbm %s7886_s7, 32 }
  0x7b   :  { %s103_s3 = sshll.u32 %s7575_s24, 4  ;;  %p7531_p0 = scmp.ne.s32.totalorder %s7886_s7, %s7530_s26  ;;  %s104_s3 = int_to_ptr.vmem [resolvable:$true] %s103_s3 }
  0x7c   :  { %p7534_p1 = scmp.lt.u32.totalorder %s7530_s26, %s7886_s7 }
  0x7e   :  { %p7536_p2 = pnand %p7534_p1, %p7531_p0 }
  0x80   :  { %7539 = shalt.err (!%p7536_p2)
}
  0x81   :  { %s7540_s13 = scalar_lea.vmem %s104_s3, 32  ;;  %p7545_p4 = scmp.lt.s32.totalorder %s104_s3, %s104_s3 }
  0x82   :  { %p7541_p3 = scmp.ne.s32.totalorder %s104_s3, %s7540_s13  ;;  %p7546_p5 = scmp.lt.s32.totalorder %s7540_s13, %s7540_s13 }
  0x84   :  { %p7547_p6 = por %p7546_p5, %p7545_p4 }
  0x86   :  { %p7548_p7 = pnand %p7547_p6, %p7541_p3 }
  0x88   :  { %7551 = shalt.err (!%p7548_p7)
}
  0x89   :  { %106 = dma.hbm_to_vmem [thread:$0]  %s7886_s7, 32, %s104_s3, [#allocation15]  }
  0x8a   :  { %7552 = dma.done.wait [#allocation4], 448  }
  0x8b   :  { %7553 = vsyncadd [#allocation4], 4294966848 }
  0x8c   :  { %7554 = dma.done.wait [#allocation6], 57472  }
  0x8d   :  { %7555 = vsyncadd [#allocation6], 4294909824 }
  0x8e   :  { %7556 = dma.done.wait [#allocation9], 32832  }
  0x8f   :  { %7557 = vsyncadd [#allocation9], 4294934464 }
  0x90   :  { %7558 = dma.done.wait [#allocation12], 8224  }
  0x91   :  { %7559 = vsyncadd [#allocation12], 4294959072 }
  0x92   :  { %7560 = dma.done.wait [#allocation15], 32  }
  0x93   :  { %7561 = vsyncadd [#allocation15], 4294967264  ;;  %v138_v1 = vld [vmem:[#allocation5] sm:$0xff]  ;;  %v7728_v55 = vld [vmem:[#allocation3 + $0x8] sm:$0xff]  ;;  %vm5992_vm0 = vcmask 7168  }
  0x94   :  { %v142_v2 = vld [vmem:[#allocation5 + $0x20] sm:$0xff]  ;;  %v7736_v62 = vcombine.high %v7728_v55, %v7728_v55 }
  0x95   :  { %v266_v3 = vld [vmem:[#allocation5 + $0x400] sm:$0xff]  ;;  %v6011_v4 = vcombine.high %v138_v1, %v142_v2  ;;  %v6010_v6 = vcombine.low %v138_v1, %v142_v2 }
  0x96   :  { %v270_v5 = vld [vmem:[#allocation5 + $0x420] sm:$0xff]  ;;  %2966 = vmatprep.mubr.bf16.mxu0 %v7736_v62 }
  0x97   :  { %v146_v7 = vld [vmem:[#allocation5 + $0x40] sm:$0xff]  ;;  %v6139_v9 = vcombine.high %v266_v3, %v270_v5  ;;  %v6138_v10 = vcombine.low %v266_v3, %v270_v5  ;;  %2893 = vmatprep.subr.bf16.mxu1 %v6011_v4 }
  0x98   :  { %v150_v8 = vld [vmem:[#allocation5 + $0x60] sm:$0xff]  ;;  %2894 = vmatpush1.bf16.msra.mxu1 %v6010_v6 }
  0x99   :  { %v6019_v11 = vcombine.high %v146_v7, %v150_v8  ;;  %v274_v12 = vld [vmem:[#allocation5 + $0x440] sm:$0xff]  ;;  %2934 = vmatprep.subr.bf16.mxu0 %v6139_v9  ;;  %v6018_v19 = vcombine.low %v146_v7, %v150_v8 }
  0x9a   :  { %v278_v13 = vld [vmem:[#allocation5 + $0x460] sm:$0xff]  ;;  %2935 = vmatpush1.bf16.msra.mxu0 %v6138_v10 }
  0x9b   :  { %v154_v14 = vld [vmem:[#allocation5 + $0x80] sm:$0xff]  ;;  %v6147_v15 = vcombine.high %v274_v12, %v278_v13  ;;  %2895 = vmatprep.subr.bf16.mxu1 %v6019_v11  ;;  %v6146_v20 = vcombine.low %v274_v12, %v278_v13 }
  0x9c   :  { %v158_v16 = vld [vmem:[#allocation5 + $0xa0] sm:$0xff]  ;;  %2896 = vmatpush1.bf16.msra.mxu1 %v6018_v19 }
  0x9d   :  { %v282_v17 = vld [vmem:[#allocation5 + $0x480] sm:$0xff]  ;;  %v6027_v21 = vcombine.high %v154_v14, %v158_v16  ;;  %2936 = vmatprep.subr.bf16.mxu0 %v6147_v15  ;;  %v6026_v27 = vcombine.low %v154_v14, %v158_v16 }
  0x9e   :  { %v286_v18 = vld [vmem:[#allocation5 + $0x4a0] sm:$0xff]  ;;  %2937 = vmatpush1.bf16.msra.mxu0 %v6146_v20 }
  0x9f   :  { %v6155_v22 = vcombine.high %v282_v17, %v286_v18  ;;  %v162_v23 = vld [vmem:[#allocation5 + $0xc0] sm:$0xff]  ;;  %2897 = vmatprep.subr.bf16.mxu1 %v6027_v21  ;;  %v6154_v28 = vcombine.low %v282_v17, %v286_v18 }
  0xa0   :  { %v166_v24 = vld [vmem:[#allocation5 + $0xe0] sm:$0xff]  ;;  %2898 = vmatpush1.bf16.msra.mxu1 %v6026_v27 }
  0xa1   :  { %v290_v25 = vld [vmem:[#allocation5 + $0x4c0] sm:$0xff]  ;;  %v6035_v29 = vcombine.high %v162_v23, %v166_v24  ;;  %2938 = vmatprep.subr.bf16.mxu0 %v6155_v22  ;;  %v6034_v35 = vcombine.low %v162_v23, %v166_v24 }
  0xa2   :  { %v294_v26 = vld [vmem:[#allocation5 + $0x4e0] sm:$0xff]  ;;  %2939 = vmatpush1.bf16.msra.mxu0 %v6154_v28 }
  0xa3   :  { %v6163_v30 = vcombine.high %v290_v25, %v294_v26  ;;  %v170_v31 = vld [vmem:[#allocation5 + $0x100] sm:$0xff]  ;;  %2899 = vmatprep.subr.bf16.mxu1 %v6035_v29  ;;  %v6162_v36 = vcombine.low %v290_v25, %v294_v26 }
  0xa4   :  { %v174_v32 = vld [vmem:[#allocation5 + $0x120] sm:$0xff]  ;;  %2900 = vmatpush1.bf16.msra.mxu1 %v6034_v35 }
  0xa5   :  { %v298_v33 = vld [vmem:[#allocation5 + $0x500] sm:$0xff]  ;;  %v6043_v37 = vcombine.high %v170_v31, %v174_v32  ;;  %2940 = vmatprep.subr.bf16.mxu0 %v6163_v30  ;;  %v6042_v43 = vcombine.low %v170_v31, %v174_v32 }
  0xa6   :  { %v302_v34 = vld [vmem:[#allocation5 + $0x520] sm:$0xff]  ;;  %2941 = vmatpush1.bf16.msra.mxu0 %v6162_v36 }
  0xa7   :  { %v6171_v38 = vcombine.high %v298_v33, %v302_v34  ;;  %v178_v39 = vld [vmem:[#allocation5 + $0x140] sm:$0xff]  ;;  %2901 = vmatprep.subr.bf16.mxu1 %v6043_v37  ;;  %v6170_v44 = vcombine.low %v298_v33, %v302_v34 }
  0xa8   :  { %v182_v40 = vld [vmem:[#allocation5 + $0x160] sm:$0xff]  ;;  %2902 = vmatpush1.bf16.msra.mxu1 %v6042_v43 }
  0xa9   :  { %v306_v41 = vld [vmem:[#allocation5 + $0x540] sm:$0xff]  ;;  %v6051_v45 = vcombine.high %v178_v39, %v182_v40  ;;  %2942 = vmatprep.subr.bf16.mxu0 %v6171_v38  ;;  %v6050_v51 = vcombine.low %v178_v39, %v182_v40 }
  0xaa   :  { %v310_v42 = vld [vmem:[#allocation5 + $0x560] sm:$0xff]  ;;  %2943 = vmatpush1.bf16.msra.mxu0 %v6170_v44 }
  0xab   :  { %v6179_v46 = vcombine.high %v306_v41, %v310_v42  ;;  %v186_v47 = vld [vmem:[#allocation5 + $0x180] sm:$0xff]  ;;  %2903 = vmatprep.subr.bf16.mxu1 %v6051_v45  ;;  %v6178_v52 = vcombine.low %v306_v41, %v310_v42 }
  0xac   :  { %v190_v48 = vld [vmem:[#allocation5 + $0x1a0] sm:$0xff]  ;;  %2904 = vmatpush1.bf16.msra.mxu1 %v6050_v51 }
  0xad   :  { %v314_v49 = vld [vmem:[#allocation5 + $0x580] sm:$0xff]  ;;  %v6059_v53 = vcombine.high %v186_v47, %v190_v48  ;;  %2944 = vmatprep.subr.bf16.mxu0 %v6179_v46  ;;  %v6058_v63 = vcombine.low %v186_v47, %v190_v48 }
  0xae   :  { %v318_v50 = vld [vmem:[#allocation5 + $0x5a0] sm:$0xff]  ;;  %2945 = vmatpush1.bf16.msra.mxu0 %v6178_v52 }
  0xaf   :  { %v7726_v54 = vld [vmem:[#allocation3] sm:$0xff]  ;;  %v6187_v56 = vcombine.high %v314_v49, %v318_v50  ;;  %2905 = vmatprep.subr.bf16.mxu1 %v6059_v53  ;;  %v6186_v0 = vcombine.low %v314_v49, %v318_v50 }
  0xb0   :  { %v194_v57 = vld [vmem:[#allocation5 + $0x1c0] sm:$0xff]  ;;  %v7732_v59 = vcombine.high %v7726_v54, %v7726_v54  ;;  %2906 = vmatpush1.bf16.msra.mxu1 %v6058_v63 }
  0xb1   :  { %v198_v58 = vld [vmem:[#allocation5 + $0x1e0] sm:$0xff]  ;;  %2946 = vmatprep.subr.bf16.mxu0 %v6187_v56 }
  0xb2   :  { %v322_v60 = vld [vmem:[#allocation5 + $0x5c0] sm:$0xff]  ;;  %2925 = vmatprep.mubr.bf16.mxu1 %v7732_v59  ;;  %v6067_v1 = vcombine.high %v194_v57, %v198_v58  ;;  %v6066_v7 = vcombine.low %v194_v57, %v198_v58  ;;  %2947 = vmatpush1.bf16.msra.mxu0 %v6186_v0 }
  0xb3   :  { %v326_v61 = vld [vmem:[#allocation5 + $0x5e0] sm:$0xff] }
  0xb4   :  { %v6195_v2 = vcombine.high %v322_v60, %v326_v61  ;;  %v202_v3 = vld [vmem:[#allocation5 + $0x200] sm:$0xff]  ;;  %2907 = vmatprep.subr.bf16.mxu1 %v6067_v1  ;;  %v6194_v8 = vcombine.low %v322_v60, %v326_v61 }
  0xb5   :  { %v206_v4 = vld [vmem:[#allocation5 + $0x220] sm:$0xff]  ;;  %2908 = vmatpush1.bf16.msra.mxu1 %v6066_v7  ;;  %v139_v7 = vld [vmem:[#allocation5 + $0x8] sm:$0xff] }
  0xb6   :  { %v330_v5 = vld [vmem:[#allocation5 + $0x600] sm:$0xff]  ;;  %v6075_v9 = vcombine.high %v202_v3, %v206_v4  ;;  %2948 = vmatprep.subr.bf16.mxu0 %v6195_v2  ;;  %v6074_v15 = vcombine.low %v202_v3, %v206_v4 }
  0xb7   :  { %v334_v6 = vld [vmem:[#allocation5 + $0x620] sm:$0xff]  ;;  %2949 = vmatpush1.bf16.msra.mxu0 %v6194_v8  ;;  %v143_v8 = vld [vmem:[#allocation5 + $0x28] sm:$0xff] }
  0xb8   :  { %v6203_v10 = vcombine.high %v330_v5, %v334_v6  ;;  %v210_v11 = vld [vmem:[#allocation5 + $0x240] sm:$0xff]  ;;  %2909 = vmatprep.subr.bf16.mxu1 %v6075_v9  ;;  %v6202_v16 = vcombine.low %v330_v5, %v334_v6 }
  0xb9   :  { %v214_v12 = vld [vmem:[#allocation5 + $0x260] sm:$0xff]  ;;  %2910 = vmatpush1.bf16.msra.mxu1 %v6074_v15  ;;  %v147_v15 = vld [vmem:[#allocation5 + $0x48] sm:$0xff] }
  0xba   :  { %v338_v13 = vld [vmem:[#allocation5 + $0x640] sm:$0xff]  ;;  %v6083_v17 = vcombine.high %v210_v11, %v214_v12  ;;  %2950 = vmatprep.subr.bf16.mxu0 %v6203_v10  ;;  %v6082_v23 = vcombine.low %v210_v11, %v214_v12 }
  0xbb   :  { %v342_v14 = vld [vmem:[#allocation5 + $0x660] sm:$0xff]  ;;  %2951 = vmatpush1.bf16.msra.mxu0 %v6202_v16  ;;  %v151_v16 = vld [vmem:[#allocation5 + $0x68] sm:$0xff] }
  0xbc   :  { %v6211_v18 = vcombine.high %v338_v13, %v342_v14  ;;  %v218_v19 = vld [vmem:[#allocation5 + $0x280] sm:$0xff]  ;;  %2911 = vmatprep.subr.bf16.mxu1 %v6083_v17  ;;  %v6210_v24 = vcombine.low %v338_v13, %v342_v14  ;;  %v6013_v13 = vcombine.high %v139_v7, %v143_v8  ;;  %v7742_v17 = vcombine.low %v7726_v54, %v7726_v54  ;;  %v155_v54 = vld [vmem:[#allocation5 + $0x88] sm:$0xff] }
  0xbd   :  { %v222_v20 = vld [vmem:[#allocation5 + $0x2a0] sm:$0xff]  ;;  %2912 = vmatpush1.bf16.msra.mxu1 %v6082_v23 }
  0xbe   :  { %v346_v21 = vld [vmem:[#allocation5 + $0x680] sm:$0xff]  ;;  %v6091_v25 = vcombine.high %v218_v19, %v222_v20  ;;  %2952 = vmatprep.subr.bf16.mxu0 %v6211_v18  ;;  %v6090_v31 = vcombine.low %v218_v19, %v222_v20  ;;  %v7744_v20 = vld [vmem:[#allocation3 + $0x10] sm:$0xff] }
  0xbf   :  { %v350_v22 = vld [vmem:[#allocation5 + $0x6a0] sm:$0xff]  ;;  %2953 = vmatpush1.bf16.msra.mxu0 %v6210_v24  ;;  %v6021_v24 = vcombine.high %v147_v15, %v151_v16 }
  0xc0   :  { %v6219_v26 = vcombine.high %v346_v21, %v350_v22  ;;  %v226_v27 = vld [vmem:[#allocation5 + $0x2c0] sm:$0xff]  ;;  %2913 = vmatprep.subr.bf16.mxu1 %v6091_v25  ;;  %v6218_v32 = vcombine.low %v346_v21, %v350_v22  ;;  %v6012_v21 = vcombine.low %v139_v7, %v143_v8  ;;  %v7748_v22 = vcombine.low %v7728_v55, %v7728_v55  ;;  %v199_v8 = vld [vmem:[#allocation5 + $0x1e8] sm:$0xff] }
  0xc1   :  { %v230_v28 = vld [vmem:[#allocation5 + $0x2e0] sm:$0xff]  ;;  %2914 = vmatpush1.bf16.msra.mxu1 %v6090_v31  ;;  %v6020_v55 = vcombine.low %v147_v15, %v151_v16  ;;  %v207_v16 = vld [vmem:[#allocation5 + $0x228] sm:$0xff] }
  0xc2   :  { %v354_v29 = vld [vmem:[#allocation5 + $0x6c0] sm:$0xff]  ;;  %v6099_v33 = vcombine.high %v226_v27, %v230_v28  ;;  %2954 = vmatprep.subr.bf16.mxu0 %v6219_v26  ;;  %v6098_v39 = vcombine.low %v226_v27, %v230_v28  ;;  %v159_v28 = vld [vmem:[#allocation5 + $0xa8] sm:$0xff] }
  0xc3   :  { %v358_v30 = vld [vmem:[#allocation5 + $0x6e0] sm:$0xff]  ;;  %2955 = vmatpush1.bf16.msra.mxu0 %v6218_v32  ;;  %v6029_v31 = vcombine.high %v155_v54, %v159_v28 }
  0xc4   :  { %v6227_v34 = vcombine.high %v354_v29, %v358_v30  ;;  %v234_v35 = vld [vmem:[#allocation5 + $0x300] sm:$0xff]  ;;  %2915 = vmatprep.subr.bf16.mxu1 %v6099_v33  ;;  %v6226_v40 = vcombine.low %v354_v29, %v358_v30  ;;  %v7752_v29 = vcombine.high %v7744_v20, %v7744_v20 }
  0xc5   :  { %v238_v36 = vld [vmem:[#allocation5 + $0x320] sm:$0xff]  ;;  %2916 = vmatpush1.bf16.msra.mxu1 %v6098_v39 }
  0xc6   :  { %v362_v37 = vld [vmem:[#allocation5 + $0x700] sm:$0xff]  ;;  %v6107_v41 = vcombine.high %v234_v35, %v238_v36  ;;  %2956 = vmatprep.subr.bf16.mxu0 %v6227_v34  ;;  %v6106_v47 = vcombine.low %v234_v35, %v238_v36  ;;  %v163_v34 = vld [vmem:[#allocation5 + $0xc8] sm:$0xff] }
  0xc7   :  { %v366_v38 = vld [vmem:[#allocation5 + $0x720] sm:$0xff]  ;;  %2957 = vmatpush1.bf16.msra.mxu0 %v6226_v40  ;;  %v167_v36 = vld [vmem:[#allocation5 + $0xe8] sm:$0xff] }
  0xc8   :  { %v6235_v42 = vcombine.high %v362_v37, %v366_v38  ;;  %v242_v43 = vld [vmem:[#allocation5 + $0x340] sm:$0xff]  ;;  %2917 = vmatprep.subr.bf16.mxu1 %v6107_v41  ;;  %v6234_v48 = vcombine.low %v362_v37, %v366_v38  ;;  %v6028_v37 = vcombine.low %v155_v54, %v159_v28  ;;  %v6037_v39 = vcombine.high %v163_v34, %v167_v36 }
  0xc9   :  { %v246_v44 = vld [vmem:[#allocation5 + $0x360] sm:$0xff]  ;;  %2918 = vmatpush1.bf16.msra.mxu1 %v6106_v47 }
  0xca   :  { %v370_v45 = vld [vmem:[#allocation5 + $0x740] sm:$0xff]  ;;  %v6115_v49 = vcombine.high %v242_v43, %v246_v44  ;;  %2958 = vmatprep.subr.bf16.mxu0 %v6235_v42  ;;  %v6114_v57 = vcombine.low %v242_v43, %v246_v44  ;;  %v171_v42 = vld [vmem:[#allocation5 + $0x108] sm:$0xff] }
  0xcb   :  { %v374_v46 = vld [vmem:[#allocation5 + $0x760] sm:$0xff]  ;;  %2959 = vmatpush1.bf16.msra.mxu0 %v6234_v48  ;;  %v175_v44 = vld [vmem:[#allocation5 + $0x128] sm:$0xff] }
  0xcc   :  { %v6243_v50 = vcombine.high %v370_v45, %v374_v46  ;;  %v250_v51 = vld [vmem:[#allocation5 + $0x380] sm:$0xff]  ;;  %2919 = vmatprep.subr.bf16.mxu1 %v6115_v49  ;;  %v6242_v58 = vcombine.low %v370_v45, %v374_v46  ;;  %v6036_v45 = vcombine.low %v163_v34, %v167_v36  ;;  %v6045_v47 = vcombine.high %v171_v42, %v175_v44  ;;  %v223_v34 = vld [vmem:[#allocation5 + $0x2a8] sm:$0xff] }
  0xcd   :  { %v254_v52 = vld [vmem:[#allocation5 + $0x3a0] sm:$0xff]  ;;  %2920 = vmatpush1.bf16.msra.mxu1 %v6114_v57 }
  0xce   :  { %v378_v53 = vld [vmem:[#allocation5 + $0x780] sm:$0xff]  ;;  %v6123_v60 = vcombine.high %v250_v51, %v254_v52  ;;  %2960 = vmatprep.subr.bf16.mxu0 %v6243_v50  ;;  %v6122_v3 = vcombine.low %v250_v51, %v254_v52  ;;  %v179_v50 = vld [vmem:[#allocation5 + $0x148] sm:$0xff] }
  0xcf   :  { %v382_v56 = vld [vmem:[#allocation5 + $0x7a0] sm:$0xff]  ;;  %2961 = vmatpush1.bf16.msra.mxu0 %v6242_v58  ;;  %v183_v52 = vld [vmem:[#allocation5 + $0x168] sm:$0xff] }
  0xd0   :  { %v6251_v61 = vcombine.high %v378_v53, %v382_v56  ;;  %v258_v63 = vld [vmem:[#allocation5 + $0x3c0] sm:$0xff]  ;;  %2921 = vmatprep.subr.bf16.mxu1 %v6123_v60  ;;  %v6250_v4 = vcombine.low %v378_v53, %v382_v56  ;;  %v6044_v53 = vcombine.low %v171_v42, %v175_v44  ;;  %v6053_v57 = vcombine.high %v179_v50, %v183_v52  ;;  %v231_v42 = vld [vmem:[#allocation5 + $0x2e8] sm:$0xff] }
  0xd1   :  { %v262_v0 = vld [vmem:[#allocation5 + $0x3e0] sm:$0xff]  ;;  %2922 = vmatpush1.bf16.msra.mxu1 %v6122_v3 }
  0xd2   :  { %v386_v1 = vld [vmem:[#allocation5 + $0x7c0] sm:$0xff]  ;;  %v6131_v5 = vcombine.high %v258_v63, %v262_v0  ;;  %2962 = vmatprep.subr.bf16.mxu0 %v6251_v61  ;;  %v6130_v11 = vcombine.low %v258_v63, %v262_v0  ;;  %v187_v61 = vld [vmem:[#allocation5 + $0x188] sm:$0xff] }
  0xd3   :  { %v390_v2 = vld [vmem:[#allocation5 + $0x7e0] sm:$0xff]  ;;  %2963 = vmatpush1.bf16.msra.mxu0 %v6250_v4  ;;  %v191_v0 = vld [vmem:[#allocation5 + $0x1a8] sm:$0xff] }
  0xd4   :  { %v6259_v6 = vcombine.high %v386_v1, %v390_v2  ;;  %v394_v9 = vld [vmem:[#allocation5 + $0x800] sm:$0xff]  ;;  %2923 = vmatprep.subr.bf16.mxu1 %v6131_v5  ;;  %v6258_v12 = vcombine.low %v386_v1, %v390_v2  ;;  %v6052_v1 = vcombine.low %v179_v50, %v183_v52  ;;  %v6061_v3 = vcombine.high %v187_v61, %v191_v0  ;;  %v239_v50 = vld [vmem:[#allocation5 + $0x328] sm:$0xff] }
  0xd5   :  { %v398_v10 = vld [vmem:[#allocation5 + $0x820] sm:$0xff]  ;;  %2924 = vmatpush1.bf16.msra.mxu1 %v6130_v11 }
  0xd6   :  { %2964 = vmatprep.subr.bf16.mxu0 %v6259_v6  ;;  %v6267_v14 = vcombine.high %v394_v9, %v398_v10  ;;  %v402_v18 = vld [vmem:[#allocation5 + $0x840] sm:$0xff]  ;;  %v6266_v23 = vcombine.low %v394_v9, %v398_v10  ;;  %3057 = vmatprep.subr.bf16.mxu1 %v6013_v13  ;;  %v195_v6 = vld [vmem:[#allocation5 + $0x1c8] sm:$0xff]  ;;  %v6060_v9 = vcombine.low %v187_v61, %v191_v0 }
  0xd7   :  { %v406_v19 = vld [vmem:[#allocation5 + $0x860] sm:$0xff]  ;;  %2965 = vmatpush1.bf16.msra.mxu0 %v6258_v12  ;;  %v6069_v11 = vcombine.high %v195_v6, %v199_v8  ;;  %v247_v61 = vld [vmem:[#allocation5 + $0x368] sm:$0xff] }
  0xd8   :  { %v410_v25 = vld [vmem:[#allocation5 + $0x880] sm:$0xff]  ;;  %2975 = vmatprep.subr.bf16.mxu0 %v6267_v14  ;;  %v6275_v26 = vcombine.high %v402_v18, %v406_v19  ;;  %2926 = vmatmul.mubr.bf16.vlgmr.msra.gmra.mrb[0].mxu1 %v7742_v17  ;;  %v6274_v30 = vcombine.low %v402_v18, %v406_v19  ;;  %v203_v14 = vld [vmem:[#allocation5 + $0x208] sm:$0xff]  ;;  %v6068_v18 = vcombine.low %v195_v6, %v199_v8 }
  0xd9   :  { %v414_v27 = vld [vmem:[#allocation5 + $0x8a0] sm:$0xff]  ;;  %3058 = vmatpush1.bf16.msra.mxu1 %v6012_v21  ;;  %3089 = vmatprep.mubr.bf16.mxu1 %v7732_v59  ;;  %v6077_v21 = vcombine.high %v203_v14, %v207_v16  ;;  %v6076_v54 = vcombine.low %v203_v14, %v207_v16  ;;  %v255_v6 = vld [vmem:[#allocation5 + $0x3a8] sm:$0xff] }
  0xda   :  { %2967 = vmatmul.mubr.bf16.vlgmr.msra.gmra.mrb[0].mxu0 %v7748_v22  ;;  %3059 = vmatprep.subr.bf16.mxu1 %v6021_v24  ;;  %v418_v32 = vld [vmem:[#allocation5 + $0x8c0] sm:$0xff]  ;;  %v6283_v35 = vcombine.high %v410_v25, %v414_v27  ;;  %v6282_v38 = vcombine.low %v410_v25, %v414_v27  ;;  %v211_v25 = vld [vmem:[#allocation5 + $0x248] sm:$0xff] }
  0xdb   :  { %2976 = vmatpush1.bf16.msra.mxu0 %v6266_v23  ;;  %v422_v33 = vld [vmem:[#allocation5 + $0x8e0] sm:$0xff]  ;;  %3007 = vmatprep.mubr.bf16.mxu0 %v7752_v29  ;;  %v215_v27 = vld [vmem:[#allocation5 + $0x268] sm:$0xff] }
  0xdc   :  { %2977 = vmatprep.subr.bf16.mxu0 %v6275_v26  ;;  %v426_v40 = vld [vmem:[#allocation5 + $0x900] sm:$0xff]  ;;  %v6291_v43 = vcombine.high %v418_v32, %v422_v33  ;;  %v6290_v46 = vcombine.low %v418_v32, %v422_v33  ;;  %v219_v32 = vld [vmem:[#allocation5 + $0x288] sm:$0xff] }
  0xdd   :  { %3060 = vmatpush1.bf16.msra.mxu1 %v6020_v55  ;;  %v430_v41 = vld [vmem:[#allocation5 + $0x920] sm:$0xff]  ;;  %v6085_v55 = vcombine.high %v211_v25, %v215_v27  ;;  %v263_v14 = vld [vmem:[#allocation5 + $0x3e8] sm:$0xff] }
  0xde   :  { %3061 = vmatprep.subr.bf16.mxu1 %v6029_v31  ;;  %v434_v48 = vld [vmem:[#allocation5 + $0x940] sm:$0xff]  ;;  %v6299_v51 = vcombine.high %v426_v40, %v430_v41  ;;  %v6298_v56 = vcombine.low %v426_v40, %v430_v41  ;;  %v227_v40 = vld [vmem:[#allocation5 + $0x2c8] sm:$0xff] }
  0xdf   :  { %2978 = vmatpush1.bf16.msra.mxu0 %v6274_v30  ;;  %v438_v49 = vld [vmem:[#allocation5 + $0x960] sm:$0xff] }
  0xe0   :  { %2979 = vmatprep.subr.bf16.mxu0 %v6283_v35  ;;  %v442_v58 = vld [vmem:[#allocation5 + $0x980] sm:$0xff]  ;;  %v6307_v63 = vcombine.high %v434_v48, %v438_v49  ;;  %v6306_v2 = vcombine.low %v434_v48, %v438_v49  ;;  %v6084_v35 = vcombine.low %v211_v25, %v215_v27  ;;  %v235_v48 = vld [vmem:[#allocation5 + $0x308] sm:$0xff] }
  0xe1   :  { %3062 = vmatpush1.bf16.msra.mxu1 %v6028_v37  ;;  %v446_v60 = vld [vmem:[#allocation5 + $0x9a0] sm:$0xff]  ;;  %v6093_v37 = vcombine.high %v219_v32, %v223_v34  ;;  %v271_v25 = vld [vmem:[#allocation5 + $0x428] sm:$0xff] }
  0xe2   :  { %3063 = vmatprep.subr.bf16.mxu1 %v6037_v39  ;;  %v450_v4 = vld [vmem:[#allocation5 + $0x9c0] sm:$0xff]  ;;  %v6315_v7 = vcombine.high %v442_v58, %v446_v60  ;;  %v6314_v10 = vcombine.low %v442_v58, %v446_v60  ;;  %v243_v58 = vld [vmem:[#allocation5 + $0x348] sm:$0xff] }
  0xe3   :  { %2980 = vmatpush1.bf16.msra.mxu0 %v6282_v38  ;;  %v454_v5 = vld [vmem:[#allocation5 + $0x9e0] sm:$0xff] }
  0xe4   :  { %2981 = vmatprep.subr.bf16.mxu0 %v6291_v43  ;;  %v458_v12 = vld [vmem:[#allocation5 + $0xa00] sm:$0xff]  ;;  %v6323_v15 = vcombine.high %v450_v4, %v454_v5  ;;  %v6322_v19 = vcombine.low %v450_v4, %v454_v5  ;;  %v6092_v43 = vcombine.low %v219_v32, %v223_v34  ;;  %v251_v4 = vld [vmem:[#allocation5 + $0x388] sm:$0xff]  ;;  %v7760_v34 = vcombine.low %v7744_v20, %v7744_v20 }
  0xe5   :  { %3064 = vmatpush1.bf16.msra.mxu1 %v6036_v45  ;;  %v462_v13 = vld [vmem:[#allocation5 + $0xa20] sm:$0xff]  ;;  %v6101_v45 = vcombine.high %v227_v40, %v231_v42  ;;  %v279_v32 = vld [vmem:[#allocation5 + $0x468] sm:$0xff] }
  0xe6   :  { %3065 = vmatprep.subr.bf16.mxu1 %v6045_v47  ;;  %v466_v23 = vld [vmem:[#allocation5 + $0xa40] sm:$0xff]  ;;  %v6331_v26 = vcombine.high %v458_v12, %v462_v13  ;;  %v6330_v28 = vcombine.low %v458_v12, %v462_v13  ;;  %v259_v12 = vld [vmem:[#allocation5 + $0x3c8] sm:$0xff] }
  0xe7   :  { %2982 = vmatpush1.bf16.msra.mxu0 %v6290_v46  ;;  %v470_v24 = vld [vmem:[#allocation5 + $0xa60] sm:$0xff] }
  0xe8   :  { %2983 = vmatprep.subr.bf16.mxu0 %v6299_v51  ;;  %v474_v30 = vld [vmem:[#allocation5 + $0xa80] sm:$0xff]  ;;  %v6339_v33 = vcombine.high %v466_v23, %v470_v24  ;;  %v6338_v36 = vcombine.low %v466_v23, %v470_v24  ;;  %v6100_v51 = vcombine.low %v227_v40, %v231_v42  ;;  %v267_v23 = vld [vmem:[#allocation5 + $0x408] sm:$0xff] }
  0xe9   :  { %3066 = vmatpush1.bf16.msra.mxu1 %v6044_v53  ;;  %v478_v31 = vld [vmem:[#allocation5 + $0xaa0] sm:$0xff]  ;;  %v6109_v53 = vcombine.high %v235_v48, %v239_v50 }
  0xea   :  { %3067 = vmatprep.subr.bf16.mxu1 %v6053_v57  ;;  %v482_v38 = vld [vmem:[#allocation5 + $0xac0] sm:$0xff]  ;;  %v6347_v41 = vcombine.high %v474_v30, %v478_v31  ;;  %v6346_v44 = vcombine.low %v474_v30, %v478_v31  ;;  %v275_v30 = vld [vmem:[#allocation5 + $0x448] sm:$0xff] }
  0xeb   :  { %2984 = vmatpush1.bf16.msra.mxu0 %v6298_v56  ;;  %v486_v39 = vld [vmem:[#allocation5 + $0xae0] sm:$0xff]  ;;  %v6148_v42 = vcombine.low %v275_v30, %v279_v32 }
  0xec   :  { %2985 = vmatprep.subr.bf16.mxu0 %v6307_v63  ;;  %v490_v46 = vld [vmem:[#allocation5 + $0xb00] sm:$0xff]  ;;  %v6355_v49 = vcombine.high %v482_v38, %v486_v39  ;;  %v6354_v52 = vcombine.low %v482_v38, %v486_v39  ;;  %v6108_v63 = vcombine.low %v235_v48, %v239_v50  ;;  %v283_v39 = vld [vmem:[#allocation5 + $0x488] sm:$0xff] }
  0xed   :  { %3068 = vmatpush1.bf16.msra.mxu1 %v6052_v1  ;;  %v494_v47 = vld [vmem:[#allocation5 + $0xb20] sm:$0xff]  ;;  %v6117_v1 = vcombine.high %v243_v58, %v247_v61  ;;  %v295_v48 = vld [vmem:[#allocation5 + $0x4e8] sm:$0xff] }
  0xee   :  { %3069 = vmatprep.subr.bf16.mxu1 %v6061_v3  ;;  %v498_v56 = vld [vmem:[#allocation5 + $0xb40] sm:$0xff]  ;;  %v6363_v60 = vcombine.high %v490_v46, %v494_v47  ;;  %v6362_v0 = vcombine.low %v490_v46, %v494_v47  ;;  %v291_v46 = vld [vmem:[#allocation5 + $0x4c8] sm:$0xff] }
  0xef   :  { %2986 = vmatpush1.bf16.msra.mxu0 %v6306_v2  ;;  %v502_v57 = vld [vmem:[#allocation5 + $0xb60] sm:$0xff] }
  0xf0   :  { %2987 = vmatprep.subr.bf16.mxu0 %v6315_v7  ;;  %v506_v2 = vld [vmem:[#allocation5 + $0xb80] sm:$0xff]  ;;  %v6371_v5 = vcombine.high %v498_v56, %v502_v57  ;;  %v6116_v7 = vcombine.low %v243_v58, %v247_v61  ;;  %v6370_v8 = vcombine.low %v498_v56, %v502_v57  ;;  %v299_v57 = vld [vmem:[#allocation5 + $0x508] sm:$0xff]  ;;  %v6164_v61 = vcombine.low %v291_v46, %v295_v48 }
  0xf1   :  { %3070 = vmatpush1.bf16.msra.mxu1 %v6060_v9  ;;  %v510_v3 = vld [vmem:[#allocation5 + $0xba0] sm:$0xff]  ;;  %v6125_v9 = vcombine.high %v251_v4, %v255_v6 }
  0xf2   :  { %3071 = vmatprep.subr.bf16.mxu1 %v6069_v11  ;;  %v518_v11 = vld [vmem:[#allocation5 + $0xbe0] sm:$0xff]  ;;  %v6379_v13 = vcombine.high %v506_v2, %v510_v3  ;;  %v6378_v16 = vcombine.low %v506_v2, %v510_v3  ;;  %v307_v3 = vld [vmem:[#allocation5 + $0x548] sm:$0xff] }
  0xf3   :  { %2988 = vmatpush1.bf16.msra.mxu0 %v6314_v10  ;;  %v514_v10 = vld [vmem:[#allocation5 + $0xbc0] sm:$0xff] }
  0xf4   :  { %2989 = vmatprep.subr.bf16.mxu0 %v6323_v15  ;;  %v6124_v15 = vcombine.low %v251_v4, %v255_v6  ;;  %v6387_v24 = vcombine.high %v514_v10, %v518_v11  ;;  %v6386_v27 = vcombine.low %v514_v10, %v518_v11  ;;  %v542_v38 = vld [vmem:[#allocation5 + $0xca0] sm:$0xff]  ;;  %v315_v11 = vld [vmem:[#allocation5 + $0x588] sm:$0xff] }
  0xf5   :  { %3072 = vmatpush1.bf16.msra.mxu1 %v6068_v18  ;;  %v6133_v18 = vcombine.high %v259_v12, %v263_v14  ;;  %v558_v56 = vld [vmem:[#allocation5 + $0xd20] sm:$0xff] }
  0xf6   :  { %3073 = vmatprep.subr.bf16.mxu1 %v6077_v21  ;;  %v526_v21 = vld [vmem:[#allocation5 + $0xc20] sm:$0xff] }
  0xf7   :  { %2990 = vmatpush1.bf16.msra.mxu0 %v6322_v19  ;;  %v522_v19 = vld [vmem:[#allocation5 + $0xc00] sm:$0xff] }
  0xf8   :  { %2991 = vmatprep.subr.bf16.mxu0 %v6331_v26  ;;  %v6132_v26 = vcombine.low %v259_v12, %v263_v14  ;;  %v6395_v31 = vcombine.high %v522_v19, %v526_v21  ;;  %v566_v2 = vld [vmem:[#allocation5 + $0xd60] sm:$0xff] }
  0xf9   :  { %3074 = vmatpush1.bf16.msra.mxu1 %v6076_v54  ;;  %v6141_v54 = vcombine.high %v267_v23, %v271_v25  ;;  %v574_v10 = vld [vmem:[#allocation5 + $0xda0] sm:$0xff] }
  0xfa   :  { %3075 = vmatprep.subr.bf16.mxu1 %v6085_v55  ;;  %v534_v55 = vld [vmem:[#allocation5 + $0xc60] sm:$0xff] }
  0xfb   :  { %2992 = vmatpush1.bf16.msra.mxu0 %v6330_v28  ;;  %v530_v28 = vld [vmem:[#allocation5 + $0xc40] sm:$0xff] }
  0xfc   :  { %2993 = vmatprep.subr.bf16.mxu0 %v6339_v33  ;;  %v6140_v33 = vcombine.low %v267_v23, %v271_v25  ;;  %v6403_v40 = vcombine.high %v530_v28, %v534_v55  ;;  %v323_v23 = vld [vmem:[#allocation5 + $0x5c8] sm:$0xff] }
  0xfd   :  { %3076 = vmatpush1.bf16.msra.mxu1 %v6084_v35  ;;  %v6394_v35 = vcombine.low %v522_v19, %v526_v21  ;;  %v582_v19 = vld [vmem:[#allocation5 + $0xde0] sm:$0xff] }
  0xfe   :  { %3077 = vmatprep.subr.bf16.mxu1 %v6093_v37  ;;  %v538_v37 = vld [vmem:[#allocation5 + $0xc80] sm:$0xff] }
  0xff   :  { %2994 = vmatpush1.bf16.msra.mxu0 %v6338_v36  ;;  %v6149_v36 = vcombine.high %v275_v30, %v279_v32  ;;  %v6411_v47 = vcombine.high %v538_v37, %v542_v38 }
 0x100   :  { %2995 = vmatprep.subr.bf16.mxu0 %v6347_v41  ;;  %v287_v41 = vld [vmem:[#allocation5 + $0x4a8] sm:$0xff] }
 0x101   :  { %3078 = vmatpush1.bf16.msra.mxu1 %v6092_v43  ;;  %v6402_v43 = vcombine.low %v530_v28, %v534_v55  ;;  %v6157_v20 = vcombine.high %v283_v39, %v287_v41  ;;  %v6156_v50 = vcombine.low %v283_v39, %v287_v41  ;;  %v335_v28 = vld [vmem:[#allocation5 + $0x628] sm:$0xff]  ;;  %v140_v55 = vld [vmem:[#allocation5 + $0x10] sm:$0xff]  ;;  %v6888_v39 = vld [vmem:[#allocation3 + $0x18] ss:$0 sps:$4 sm:$0xff]  }
 0x102   :  { %3079 = vmatprep.subr.bf16.mxu1 %v6101_v45  ;;  %v550_v45 = vld [vmem:[#allocation5 + $0xce0] sm:$0xff]  ;;  %v152_v41 = vld [vmem:[#allocation5 + $0x70] sm:$0xff] }
 0x103   :  { %2996 = vmatpush1.bf16.msra.mxu0 %v6346_v44  ;;  %v546_v44 = vld [vmem:[#allocation5 + $0xcc0] sm:$0xff] }
 0x104   :  { %2997 = vmatprep.subr.bf16.mxu0 %v6355_v49  ;;  %v7576_v49 = vmov 0   ;;  %v6419_v58 = vcombine.high %v546_v44, %v550_v45 }
 0x105   :  { %3080 = vmatpush1.bf16.msra.mxu1 %v6100_v51  ;;  %v6410_v51 = vcombine.low %v538_v37, %v542_v38  ;;  %v343_v37 = vld [vmem:[#allocation5 + $0x668] sm:$0xff]  ;;  %v148_v38 = vld [vmem:[#allocation5 + $0x50] sm:$0xff] }
 0x106   :  { %3081 = vmatprep.subr.bf16.mxu1 %v6109_v53  ;;  %v554_v53 = vld [vmem:[#allocation5 + $0xd00] sm:$0xff] }
 0x107   :  { %2998 = vmatpush1.bf16.msra.mxu0 %v6354_v52  ;;  %v6165_v52 = vcombine.high %v291_v46, %v295_v48  ;;  %v6427_v4 = vcombine.high %v554_v53, %v558_v56  ;;  %v156_v46 = vld [vmem:[#allocation5 + $0x90] sm:$0xff] }
 0x108   :  { %2999 = vmatprep.subr.bf16.mxu0 %v6363_v60  ;;  %v303_v60 = vld [vmem:[#allocation5 + $0x528] sm:$0xff]  ;;  %v160_v48 = vld [vmem:[#allocation5 + $0xb0] sm:$0xff] }
 0x109   :  { %3082 = vmatpush1.bf16.msra.mxu1 %v6108_v63  ;;  %v6418_v63 = vcombine.low %v546_v44, %v550_v45  ;;  %v6172_v6 = vcombine.low %v299_v57, %v303_v60  ;;  %v347_v44 = vld [vmem:[#allocation5 + $0x688] sm:$0xff] }
 0x10a   :  { %3083 = vmatprep.subr.bf16.mxu1 %v6117_v1  ;;  %v562_v1 = vld [vmem:[#allocation5 + $0xd40] sm:$0xff]  ;;  %v351_v45 = vld [vmem:[#allocation5 + $0x6a8] sm:$0xff] }
 0x10b   :  { %3000 = vmatpush1.bf16.msra.mxu0 %v6362_v0  ;;  %v6173_v0 = vcombine.high %v299_v57, %v303_v60  ;;  %v6435_v12 = vcombine.high %v562_v1, %v566_v2  ;;  %v164_v57 = vld [vmem:[#allocation5 + $0xd0] sm:$0xff] }
 0x10c   :  { %3001 = vmatprep.subr.bf16.mxu0 %v6371_v5  ;;  %v311_v5 = vld [vmem:[#allocation5 + $0x568] sm:$0xff]  ;;  %v168_v60 = vld [vmem:[#allocation5 + $0xf0] sm:$0xff] }
 0x10d   :  { %3084 = vmatpush1.bf16.msra.mxu1 %v6116_v7  ;;  %v6426_v7 = vcombine.low %v554_v53, %v558_v56  ;;  %v6180_v14 = vcombine.low %v307_v3, %v311_v5  ;;  %v355_v53 = vld [vmem:[#allocation5 + $0x6c8] sm:$0xff] }
 0x10e   :  { %3085 = vmatprep.subr.bf16.mxu1 %v6125_v9  ;;  %v570_v9 = vld [vmem:[#allocation5 + $0xd80] sm:$0xff]  ;;  %v359_v56 = vld [vmem:[#allocation5 + $0x6e8] sm:$0xff] }
 0x10f   :  { %3002 = vmatpush1.bf16.msra.mxu0 %v6370_v8  ;;  %v6181_v8 = vcombine.high %v307_v3, %v311_v5  ;;  %v6443_v21 = vcombine.high %v570_v9, %v574_v10  ;;  %v172_v3 = vld [vmem:[#allocation5 + $0x110] sm:$0xff] }
 0x110   :  { %3003 = vmatprep.subr.bf16.mxu0 %v6379_v13  ;;  %v319_v13 = vld [vmem:[#allocation5 + $0x5a8] sm:$0xff]  ;;  %v176_v5 = vld [vmem:[#allocation5 + $0x130] sm:$0xff] }
 0x111   :  { %3086 = vmatpush1.bf16.msra.mxu1 %v6124_v15  ;;  %v6434_v15 = vcombine.low %v562_v1, %v566_v2  ;;  %v6188_v25 = vcombine.low %v315_v11, %v319_v13  ;;  %v363_v1 = vld [vmem:[#allocation5 + $0x708] sm:$0xff] }
 0x112   :  { %3087 = vmatprep.subr.bf16.mxu1 %v6133_v18  ;;  %v578_v18 = vld [vmem:[#allocation5 + $0xdc0] sm:$0xff]  ;;  %v367_v2 = vld [vmem:[#allocation5 + $0x728] sm:$0xff] }
 0x113   :  { %3004 = vmatpush1.bf16.msra.mxu0 %v6378_v16  ;;  %v6189_v16 = vcombine.high %v315_v11, %v319_v13  ;;  %v6451_v30 = vcombine.high %v578_v18, %v582_v19  ;;  %v180_v11 = vld [vmem:[#allocation5 + $0x150] sm:$0xff] }
 0x114   :  { %3005 = vmatprep.subr.bf16.mxu0 %v6387_v24  ;;  %v327_v24 = vld [vmem:[#allocation5 + $0x5e8] sm:$0xff]  ;;  %v184_v13 = vld [vmem:[#allocation5 + $0x170] sm:$0xff] }
 0x115   :  { %3088 = vmatpush1.bf16.msra.mxu1 %v6132_v26  ;;  %v6442_v26 = vcombine.low %v570_v9, %v574_v10  ;;  %v6196_v32 = vcombine.low %v323_v23, %v327_v24  ;;  %v371_v9 = vld [vmem:[#allocation5 + $0x748] sm:$0xff] }
 0x116   :  { %3098 = vmatprep.subr.bf16.mxu1 %v6141_v54  ;;  %v331_v54 = vld [vmem:[#allocation5 + $0x608] sm:$0xff] }
 0x117   :  { %3006 = vmatpush1.bf16.msra.mxu0 %v6386_v27  ;;  %v6197_v27 = vcombine.high %v323_v23, %v327_v24  ;;  %v375_v10 = vld [vmem:[#allocation5 + $0x768] sm:$0xff]  ;;  %v6055_v23 = vcombine.high %v180_v11, %v184_v13  ;;  %v192_v24 = vld [vmem:[#allocation5 + $0x1b0] sm:$0xff] }
 0x118   :  { %3016 = vmatprep.subr.bf16.mxu0 %v6395_v31  ;;  %3090 = vmatmul.mubr.bf16.vlgmr.msra.gmra.mrb[4].mxu1 %v7742_v17  ;;  %v144_v31 = vld [vmem:[#allocation5 + $0x30] sm:$0xff] }
 0x119   :  { %3099 = vmatpush1.bf16.msra.mxu1 %v6140_v33  ;;  %3130 = vmatprep.mubr.bf16.mxu1 %v7736_v62  ;;  %v6450_v33 = vcombine.low %v578_v18, %v582_v19  ;;  %v379_v18 = vld [vmem:[#allocation5 + $0x788] sm:$0xff] }
 0x11a   :  { %3008 = vmatmul.mubr.bf16.vlgmr.msra.gmra.mrb[0].mxu0 %v7760_v34  ;;  %3100 = vmatprep.subr.bf16.mxu1 %v6149_v36  ;;  %v339_v36 = vld [vmem:[#allocation5 + $0x648] sm:$0xff] }
 0x11b   :  { %3017 = vmatpush1.bf16.msra.mxu0 %v6394_v35  ;;  %3048 = vmatprep.mubr.bf16.mxu0 %v7576_v49  ;;  %v6205_v35 = vcombine.high %v331_v54, %v335_v28  ;;  %v383_v19 = vld [vmem:[#allocation5 + $0x7a8] sm:$0xff] }
 0x11c   :  { %3018 = vmatprep.subr.bf16.mxu0 %v6403_v40  ;;  %v6015_v40 = vcombine.high %v140_v55, %v144_v31 }
 0x11d   :  { %3101 = vmatpush1.bf16.msra.mxu1 %v6148_v42  ;;  %v6204_v42 = vcombine.low %v331_v54, %v335_v28  ;;  %v387_v54 = vld [vmem:[#allocation5 + $0x7c8] sm:$0xff] }
 0x11e   :  { %3102 = vmatprep.subr.bf16.mxu1 %v6157_v20  ;;  %v6213_v20 = vcombine.high %v339_v36, %v343_v37  ;;  %v391_v28 = vld [vmem:[#allocation5 + $0x7e8] sm:$0xff] }
 0x11f   :  { %3019 = vmatpush1.bf16.msra.mxu0 %v6402_v43  ;;  %v6014_v43 = vcombine.low %v140_v55, %v144_v31  ;;  %v196_v55 = vld [vmem:[#allocation5 + $0x1d0] sm:$0xff] }
 0x120   :  { %3020 = vmatprep.subr.bf16.mxu0 %v6411_v47  ;;  %v6023_v47 = vcombine.high %v148_v38, %v152_v41  ;;  %v200_v31 = vld [vmem:[#allocation5 + $0x1f0] sm:$0xff] }
 0x121   :  { %3103 = vmatpush1.bf16.msra.mxu1 %v6156_v50  ;;  %v6212_v50 = vcombine.low %v339_v36, %v343_v37  ;;  %v395_v36 = vld [vmem:[#allocation5 + $0x808] sm:$0xff] }
 0x122   :  { %3104 = vmatprep.subr.bf16.mxu1 %v6165_v52  ;;  %v6221_v52 = vcombine.high %v347_v44, %v351_v45  ;;  %v399_v37 = vld [vmem:[#allocation5 + $0x828] sm:$0xff] }
 0x123   :  { %3021 = vmatpush1.bf16.msra.mxu0 %v6410_v51  ;;  %v6022_v51 = vcombine.low %v148_v38, %v152_v41  ;;  %v204_v38 = vld [vmem:[#allocation5 + $0x210] sm:$0xff]  ;;  %v6260_v41 = vcombine.low %v387_v54, %v391_v28 }
 0x124   :  { %3022 = vmatprep.subr.bf16.mxu0 %v6419_v58  ;;  %v6031_v58 = vcombine.high %v156_v46, %v160_v48 }
 0x125   :  { %3105 = vmatpush1.bf16.msra.mxu1 %v6164_v61  ;;  %v6220_v61 = vcombine.low %v347_v44, %v351_v45  ;;  %v407_v44 = vld [vmem:[#allocation5 + $0x868] sm:$0xff]  ;;  %v212_v45 = vld [vmem:[#allocation5 + $0x250] sm:$0xff] }
 0x126   :  { %3106 = vmatprep.subr.bf16.mxu1 %v6173_v0  ;;  %v6229_v0 = vcombine.high %v355_v53, %v359_v56 }
 0x127   :  { %3023 = vmatpush1.bf16.msra.mxu0 %v6418_v63  ;;  %v6030_v63 = vcombine.low %v156_v46, %v160_v48  ;;  %v6268_v48 = vcombine.low %v395_v36, %v399_v37 }
 0x128   :  { %3024 = vmatprep.subr.bf16.mxu0 %v6427_v4  ;;  %v6039_v4 = vcombine.high %v164_v57, %v168_v60 }
 0x129   :  { %3107 = vmatpush1.bf16.msra.mxu1 %v6172_v6  ;;  %v6228_v6 = vcombine.low %v355_v53, %v359_v56  ;;  %v415_v53 = vld [vmem:[#allocation5 + $0x8a8] sm:$0xff]  ;;  %v220_v56 = vld [vmem:[#allocation5 + $0x290] sm:$0xff] }
 0x12a   :  { %3108 = vmatprep.subr.bf16.mxu1 %v6181_v8  ;;  %v6237_v8 = vcombine.high %v363_v1, %v367_v2 }
 0x12b   :  { %3025 = vmatpush1.bf16.msra.mxu0 %v6426_v7  ;;  %v6038_v7 = vcombine.low %v164_v57, %v168_v60 }
 0x12c   :  { %3026 = vmatprep.subr.bf16.mxu0 %v6435_v12  ;;  %v6047_v12 = vcombine.high %v172_v3, %v176_v5 }
 0x12d   :  { %3109 = vmatpush1.bf16.msra.mxu1 %v6180_v14  ;;  %v6236_v14 = vcombine.low %v363_v1, %v367_v2  ;;  %v423_v1 = vld [vmem:[#allocation5 + $0x8e8] sm:$0xff]  ;;  %v228_v2 = vld [vmem:[#allocation5 + $0x2d0] sm:$0xff] }
 0x12e   :  { %3110 = vmatprep.subr.bf16.mxu1 %v6189_v16  ;;  %v6245_v16 = vcombine.high %v371_v9, %v375_v10 }
 0x12f   :  { %3027 = vmatpush1.bf16.msra.mxu0 %v6434_v15  ;;  %v6046_v15 = vcombine.low %v172_v3, %v176_v5 }
 0x130   :  { %3028 = vmatprep.subr.bf16.mxu0 %v6443_v21  ;;  %v188_v21 = vld [vmem:[#allocation5 + $0x190] sm:$0xff] }
 0x131   :  { %3111 = vmatpush1.bf16.msra.mxu1 %v6188_v25  ;;  %v6244_v25 = vcombine.low %v371_v9, %v375_v10  ;;  %v431_v9 = vld [vmem:[#allocation5 + $0x928] sm:$0xff]  ;;  %v236_v10 = vld [vmem:[#allocation5 + $0x310] sm:$0xff] }
 0x132   :  { %3112 = vmatprep.subr.bf16.mxu1 %v6197_v27  ;;  %v6253_v27 = vcombine.high %v379_v18, %v383_v19 }
 0x133   :  { %3029 = vmatpush1.bf16.msra.mxu0 %v6442_v26  ;;  %v6054_v26 = vcombine.low %v180_v11, %v184_v13 }
 0x134   :  { %3030 = vmatprep.subr.bf16.mxu0 %v6451_v30  ;;  %v6063_v30 = vcombine.high %v188_v21, %v192_v24 }
 0x135   :  { %3113 = vmatpush1.bf16.msra.mxu1 %v6196_v32  ;;  %v6252_v32 = vcombine.low %v379_v18, %v383_v19  ;;  %v439_v18 = vld [vmem:[#allocation5 + $0x968] sm:$0xff]  ;;  %v244_v19 = vld [vmem:[#allocation5 + $0x350] sm:$0xff] }
 0x136   :  { %3114 = vmatprep.subr.bf16.mxu1 %v6205_v35  ;;  %v6261_v35 = vcombine.high %v387_v54, %v391_v28  ;;  %v447_v54 = vld [vmem:[#allocation5 + $0x9a8] sm:$0xff]  ;;  %v252_v28 = vld [vmem:[#allocation5 + $0x390] sm:$0xff] }
 0x137   :  { %3031 = vmatpush1.bf16.msra.mxu0 %v6450_v33  ;;  %v6062_v33 = vcombine.low %v188_v21, %v192_v24 }
 0x138   :  { %3221 = vmatprep.subr.bf16.mxu0 %v6015_v40  ;;  %v208_v40 = vld [vmem:[#allocation5 + $0x230] sm:$0xff] }
 0x139   :  { %3115 = vmatpush1.bf16.msra.mxu1 %v6204_v42  ;;  %v6070_v42 = vcombine.low %v196_v55, %v200_v31  ;;  %v6079_v46 = vcombine.high %v204_v38, %v208_v40 }
 0x13a   :  { %3049 = vmatmul.mubr.bf16.vlgmr.msra.gmra.mrb[0].mxu0 %v6888_v39  ;;  %3116 = vmatprep.subr.bf16.mxu1 %v6213_v20  ;;  %v6071_v39 = vcombine.high %v196_v55, %v200_v31  ;;  %v403_v20 = vld [vmem:[#allocation5 + $0x848] sm:$0xff] }
 0x13b   :  { %3222 = vmatpush1.bf16.msra.mxu0 %v6014_v43  ;;  %3253 = vmatprep.mubr.bf16.mxu0 %v7732_v59  ;;  %v6269_v43 = vcombine.high %v395_v36, %v399_v37  ;;  %v6276_v60 = vcombine.low %v403_v20, %v407_v44  ;;  %v455_v36 = vld [vmem:[#allocation5 + $0x9e8] sm:$0xff]  ;;  %v260_v37 = vld [vmem:[#allocation5 + $0x3d0] sm:$0xff] }
 0x13c   :  { %3223 = vmatprep.subr.bf16.mxu0 %v6023_v47  ;;  %v216_v47 = vld [vmem:[#allocation5 + $0x270] sm:$0xff] }
 0x13d   :  { %3117 = vmatpush1.bf16.msra.mxu1 %v6212_v50  ;;  %v6078_v50 = vcombine.low %v204_v38, %v208_v40  ;;  %v6087_v57 = vcombine.high %v212_v45, %v216_v47 }
 0x13e   :  { %3118 = vmatprep.subr.bf16.mxu1 %v6221_v52  ;;  %v411_v52 = vld [vmem:[#allocation5 + $0x888] sm:$0xff] }
 0x13f   :  { %3224 = vmatpush1.bf16.msra.mxu0 %v6022_v51  ;;  %v6277_v51 = vcombine.high %v403_v20, %v407_v44  ;;  %v6284_v5 = vcombine.low %v411_v52, %v415_v53  ;;  %v463_v20 = vld [vmem:[#allocation5 + $0xa28] sm:$0xff]  ;;  %v268_v44 = vld [vmem:[#allocation5 + $0x410] sm:$0xff] }
 0x140   :  { %3225 = vmatprep.subr.bf16.mxu0 %v6031_v58  ;;  %v224_v58 = vld [vmem:[#allocation5 + $0x2b0] sm:$0xff] }
 0x141   :  { %3119 = vmatpush1.bf16.msra.mxu1 %v6220_v61  ;;  %v6086_v61 = vcombine.low %v212_v45, %v216_v47  ;;  %v6095_v3 = vcombine.high %v220_v56, %v224_v58 }
 0x142   :  { %3120 = vmatprep.subr.bf16.mxu1 %v6229_v0  ;;  %v419_v0 = vld [vmem:[#allocation5 + $0x8c8] sm:$0xff] }
 0x143   :  { %3226 = vmatpush1.bf16.msra.mxu0 %v6030_v63  ;;  %v6285_v63 = vcombine.high %v411_v52, %v415_v53  ;;  %v6292_v13 = vcombine.low %v419_v0, %v423_v1  ;;  %v471_v52 = vld [vmem:[#allocation5 + $0xa68] sm:$0xff]  ;;  %v276_v53 = vld [vmem:[#allocation5 + $0x450] sm:$0xff] }
 0x144   :  { %3227 = vmatprep.subr.bf16.mxu0 %v6039_v4  ;;  %v232_v4 = vld [vmem:[#allocation5 + $0x2f0] sm:$0xff] }
 0x145   :  { %3121 = vmatpush1.bf16.msra.mxu1 %v6228_v6  ;;  %v6094_v6 = vcombine.low %v220_v56, %v224_v58  ;;  %v6103_v11 = vcombine.high %v228_v2, %v232_v4 }
 0x146   :  { %3122 = vmatprep.subr.bf16.mxu1 %v6237_v8  ;;  %v427_v8 = vld [vmem:[#allocation5 + $0x908] sm:$0xff] }
 0x147   :  { %3228 = vmatpush1.bf16.msra.mxu0 %v6038_v7  ;;  %v6293_v7 = vcombine.high %v419_v0, %v423_v1  ;;  %v6300_v24 = vcombine.low %v427_v8, %v431_v9  ;;  %v479_v1 = vld [vmem:[#allocation5 + $0xaa8] sm:$0xff] }
 0x148   :  { %3229 = vmatprep.subr.bf16.mxu0 %v6047_v12  ;;  %v240_v12 = vld [vmem:[#allocation5 + $0x330] sm:$0xff] }
 0x149   :  { %3123 = vmatpush1.bf16.msra.mxu1 %v6236_v14  ;;  %v6102_v14 = vcombine.low %v228_v2, %v232_v4  ;;  %v6111_v21 = vcombine.high %v236_v10, %v240_v12  ;;  %v284_v2 = vld [vmem:[#allocation5 + $0x490] sm:$0xff] }
 0x14a   :  { %3124 = vmatprep.subr.bf16.mxu1 %v6245_v16  ;;  %v435_v16 = vld [vmem:[#allocation5 + $0x948] sm:$0xff] }
 0x14b   :  { %3230 = vmatpush1.bf16.msra.mxu0 %v6046_v15  ;;  %v6301_v15 = vcombine.high %v427_v8, %v431_v9  ;;  %v6308_v31 = vcombine.low %v435_v16, %v439_v18  ;;  %v483_v8 = vld [vmem:[#allocation5 + $0xac8] sm:$0xff] }
 0x14c   :  { %3231 = vmatprep.subr.bf16.mxu0 %v6055_v23  ;;  %v248_v23 = vld [vmem:[#allocation5 + $0x370] sm:$0xff]  ;;  %v487_v9 = vld [vmem:[#allocation5 + $0xae8] sm:$0xff] }
 0x14d   :  { %3125 = vmatpush1.bf16.msra.mxu1 %v6244_v25  ;;  %v6110_v25 = vcombine.low %v236_v10, %v240_v12  ;;  %v6119_v55 = vcombine.high %v244_v19, %v248_v23  ;;  %v292_v10 = vld [vmem:[#allocation5 + $0x4d0] sm:$0xff] }
 0x14e   :  { %3126 = vmatprep.subr.bf16.mxu1 %v6253_v27  ;;  %v443_v27 = vld [vmem:[#allocation5 + $0x988] sm:$0xff] }
 0x14f   :  { %3232 = vmatpush1.bf16.msra.mxu0 %v6054_v26  ;;  %v6309_v26 = vcombine.high %v435_v16, %v439_v18  ;;  %v6316_v40 = vcombine.low %v443_v27, %v447_v54  ;;  %v491_v16 = vld [vmem:[#allocation5 + $0xb08] sm:$0xff] }
 0x150   :  { %3233 = vmatprep.subr.bf16.mxu0 %v6063_v30  ;;  %v256_v30 = vld [vmem:[#allocation5 + $0x3b0] sm:$0xff]  ;;  %v495_v18 = vld [vmem:[#allocation5 + $0xb28] sm:$0xff] }
 0x151   :  { %3127 = vmatpush1.bf16.msra.mxu1 %v6252_v32  ;;  %v6118_v32 = vcombine.low %v244_v19, %v248_v23  ;;  %v6127_v38 = vcombine.high %v252_v28, %v256_v30  ;;  %v300_v19 = vld [vmem:[#allocation5 + $0x510] sm:$0xff]  ;;  %v6356_v23 = vcombine.low %v483_v8, %v487_v9 }
 0x152   :  { %3128 = vmatprep.subr.bf16.mxu1 %v6261_v35  ;;  %v451_v35 = vld [vmem:[#allocation5 + $0x9c8] sm:$0xff] }
 0x153   :  { %3234 = vmatpush1.bf16.msra.mxu0 %v6062_v33  ;;  %v6317_v33 = vcombine.high %v443_v27, %v447_v54  ;;  %v6324_v47 = vcombine.low %v451_v35, %v455_v36  ;;  %v499_v27 = vld [vmem:[#allocation5 + $0xb48] sm:$0xff] }
 0x154   :  { %3235 = vmatprep.subr.bf16.mxu0 %v6071_v39  ;;  %v264_v39 = vld [vmem:[#allocation5 + $0x3f0] sm:$0xff]  ;;  %v503_v54 = vld [vmem:[#allocation5 + $0xb68] sm:$0xff] }
 0x155   :  { %3129 = vmatpush1.bf16.msra.mxu1 %v6260_v41  ;;  %v6126_v41 = vcombine.low %v252_v28, %v256_v30  ;;  %v6135_v45 = vcombine.high %v260_v37, %v264_v39  ;;  %v308_v28 = vld [vmem:[#allocation5 + $0x550] sm:$0xff]  ;;  %v6364_v30 = vcombine.low %v491_v16, %v495_v18 }
 0x156   :  { %3139 = vmatprep.subr.bf16.mxu1 %v6269_v43  ;;  %v459_v43 = vld [vmem:[#allocation5 + $0xa08] sm:$0xff] }
 0x157   :  { %3236 = vmatpush1.bf16.msra.mxu0 %v6070_v42  ;;  %v6325_v42 = vcombine.high %v451_v35, %v455_v36  ;;  %v6332_v58 = vcombine.low %v459_v43, %v463_v20  ;;  %v507_v35 = vld [vmem:[#allocation5 + $0xb88] sm:$0xff] }
 0x158   :  { %3237 = vmatprep.subr.bf16.mxu0 %v6079_v46  ;;  %3131 = vmatmul.mubr.bf16.vlgmr.msra.gmra.mrb[4].mxu1 %v7748_v22  ;;  %v272_v46 = vld [vmem:[#allocation5 + $0x430] sm:$0xff]  ;;  %v511_v36 = vld [vmem:[#allocation5 + $0xba8] sm:$0xff] }
 0x159   :  { %3140 = vmatpush1.bf16.msra.mxu1 %v6268_v48  ;;  %3171 = vmatprep.mubr.bf16.mxu1 %v7752_v29  ;;  %v6134_v48 = vcombine.low %v260_v37, %v264_v39  ;;  %v6143_v56 = vcombine.high %v268_v44, %v272_v46  ;;  %v316_v37 = vld [vmem:[#allocation5 + $0x590] sm:$0xff]  ;;  %v6372_v39 = vcombine.low %v499_v27, %v503_v54 }
 0x15a   :  { %3141 = vmatprep.subr.bf16.mxu1 %v6277_v51  ;;  %v467_v51 = vld [vmem:[#allocation5 + $0xa48] sm:$0xff] }
 0x15b   :  { %3238 = vmatpush1.bf16.msra.mxu0 %v6078_v50  ;;  %v6333_v50 = vcombine.high %v459_v43, %v463_v20  ;;  %v6340_v4 = vcombine.low %v467_v51, %v471_v52  ;;  %v515_v43 = vld [vmem:[#allocation5 + $0xbc8] sm:$0xff] }
 0x15c   :  { %3239 = vmatprep.subr.bf16.mxu0 %v6087_v57  ;;  %v280_v57 = vld [vmem:[#allocation5 + $0x470] sm:$0xff]  ;;  %v519_v20 = vld [vmem:[#allocation5 + $0xbe8] sm:$0xff] }
 0x15d   :  { %3142 = vmatpush1.bf16.msra.mxu1 %v6276_v60  ;;  %v6142_v60 = vcombine.low %v268_v44, %v272_v46  ;;  %v6151_v0 = vcombine.high %v276_v53, %v280_v57  ;;  %v324_v44 = vld [vmem:[#allocation5 + $0x5d0] sm:$0xff]  ;;  %v6380_v46 = vcombine.low %v507_v35, %v511_v36 }
 0x15e   :  { %3143 = vmatprep.subr.bf16.mxu1 %v6285_v63  ;;  %v475_v63 = vld [vmem:[#allocation5 + $0xa88] sm:$0xff] }
 0x15f   :  { %3240 = vmatpush1.bf16.msra.mxu0 %v6086_v61  ;;  %v6341_v61 = vcombine.high %v467_v51, %v471_v52  ;;  %v6348_v12 = vcombine.low %v475_v63, %v479_v1  ;;  %v523_v51 = vld [vmem:[#allocation5 + $0xc08] sm:$0xff] }
 0x160   :  { %3241 = vmatprep.subr.bf16.mxu0 %v6095_v3  ;;  %v288_v3 = vld [vmem:[#allocation5 + $0x4b0] sm:$0xff]  ;;  %v527_v52 = vld [vmem:[#allocation5 + $0xc28] sm:$0xff] }
 0x161   :  { %3144 = vmatpush1.bf16.msra.mxu1 %v6284_v5  ;;  %v6150_v5 = vcombine.low %v276_v53, %v280_v57  ;;  %v332_v53 = vld [vmem:[#allocation5 + $0x610] sm:$0xff]  ;;  %v6388_v57 = vcombine.low %v515_v43, %v519_v20 }
 0x162   :  { %3145 = vmatprep.subr.bf16.mxu1 %v6293_v7  ;;  %v6159_v7 = vcombine.high %v284_v2, %v288_v3 }
 0x163   :  { %3242 = vmatpush1.bf16.msra.mxu0 %v6094_v6  ;;  %v6349_v6 = vcombine.high %v475_v63, %v479_v1  ;;  %v531_v63 = vld [vmem:[#allocation5 + $0xc48] sm:$0xff]  ;;  %v340_v1 = vld [vmem:[#allocation5 + $0x650] sm:$0xff] }
 0x164   :  { %3243 = vmatprep.subr.bf16.mxu0 %v6103_v11  ;;  %v296_v11 = vld [vmem:[#allocation5 + $0x4f0] sm:$0xff] }
 0x165   :  { %3146 = vmatpush1.bf16.msra.mxu1 %v6292_v13  ;;  %v6158_v13 = vcombine.low %v284_v2, %v288_v3  ;;  %v344_v2 = vld [vmem:[#allocation5 + $0x670] sm:$0xff]  ;;  %v6396_v3 = vcombine.low %v523_v51, %v527_v52 }
 0x166   :  { %3147 = vmatprep.subr.bf16.mxu1 %v6301_v15  ;;  %v6167_v15 = vcombine.high %v292_v10, %v296_v11 }
 0x167   :  { %3244 = vmatpush1.bf16.msra.mxu0 %v6102_v14  ;;  %v6357_v14 = vcombine.high %v483_v8, %v487_v9  ;;  %v543_v8 = vld [vmem:[#allocation5 + $0xca8] sm:$0xff]  ;;  %v348_v9 = vld [vmem:[#allocation5 + $0x690] sm:$0xff] }
 0x168   :  { %3245 = vmatprep.subr.bf16.mxu0 %v6111_v21  ;;  %v304_v21 = vld [vmem:[#allocation5 + $0x530] sm:$0xff] }
 0x169   :  { %3148 = vmatpush1.bf16.msra.mxu1 %v6300_v24  ;;  %v6166_v24 = vcombine.low %v292_v10, %v296_v11  ;;  %v352_v10 = vld [vmem:[#allocation5 + $0x6b0] sm:$0xff] }
 0x16a   :  { %3149 = vmatprep.subr.bf16.mxu1 %v6309_v26  ;;  %v6175_v26 = vcombine.high %v300_v19, %v304_v21 }
 0x16b   :  { %3246 = vmatpush1.bf16.msra.mxu0 %v6110_v25  ;;  %v6365_v25 = vcombine.high %v491_v16, %v495_v18  ;;  %v551_v16 = vld [vmem:[#allocation5 + $0xce8] sm:$0xff]  ;;  %v356_v18 = vld [vmem:[#allocation5 + $0x6d0] sm:$0xff] }
 0x16c   :  { %3247 = vmatprep.subr.bf16.mxu0 %v6119_v55  ;;  %v312_v55 = vld [vmem:[#allocation5 + $0x570] sm:$0xff] }
 0x16d   :  { %3150 = vmatpush1.bf16.msra.mxu1 %v6308_v31  ;;  %v6174_v31 = vcombine.low %v300_v19, %v304_v21  ;;  %v360_v19 = vld [vmem:[#allocation5 + $0x6f0] sm:$0xff] }
 0x16e   :  { %3151 = vmatprep.subr.bf16.mxu1 %v6317_v33  ;;  %v6183_v33 = vcombine.high %v308_v28, %v312_v55 }
 0x16f   :  { %3248 = vmatpush1.bf16.msra.mxu0 %v6118_v32  ;;  %v6373_v32 = vcombine.high %v499_v27, %v503_v54  ;;  %v559_v27 = vld [vmem:[#allocation5 + $0xd28] sm:$0xff]  ;;  %v364_v54 = vld [vmem:[#allocation5 + $0x710] sm:$0xff] }
 0x170   :  { %3249 = vmatprep.subr.bf16.mxu0 %v6127_v38  ;;  %v320_v38 = vld [vmem:[#allocation5 + $0x5b0] sm:$0xff] }
 0x171   :  { %3152 = vmatpush1.bf16.msra.mxu1 %v6316_v40  ;;  %v6182_v40 = vcombine.low %v308_v28, %v312_v55  ;;  %v368_v28 = vld [vmem:[#allocation5 + $0x730] sm:$0xff] }
 0x172   :  { %3153 = vmatprep.subr.bf16.mxu1 %v6325_v42  ;;  %v6191_v42 = vcombine.high %v316_v37, %v320_v38 }
 0x173   :  { %3250 = vmatpush1.bf16.msra.mxu0 %v6126_v41  ;;  %v6381_v41 = vcombine.high %v507_v35, %v511_v36  ;;  %v567_v35 = vld [vmem:[#allocation5 + $0xd68] sm:$0xff]  ;;  %v372_v36 = vld [vmem:[#allocation5 + $0x750] sm:$0xff] }
 0x174   :  { %3251 = vmatprep.subr.bf16.mxu0 %v6135_v45  ;;  %v328_v45 = vld [vmem:[#allocation5 + $0x5f0] sm:$0xff] }
 0x175   :  { %3154 = vmatpush1.bf16.msra.mxu1 %v6324_v47  ;;  %v6190_v47 = vcombine.low %v316_v37, %v320_v38  ;;  %v376_v37 = vld [vmem:[#allocation5 + $0x770] sm:$0xff] }
 0x176   :  { %3155 = vmatprep.subr.bf16.mxu1 %v6333_v50  ;;  %v6199_v50 = vcombine.high %v324_v44, %v328_v45 }
 0x177   :  { %3252 = vmatpush1.bf16.msra.mxu0 %v6134_v48  ;;  %v6389_v48 = vcombine.high %v515_v43, %v519_v20  ;;  %v575_v43 = vld [vmem:[#allocation5 + $0xda8] sm:$0xff]  ;;  %v380_v20 = vld [vmem:[#allocation5 + $0x790] sm:$0xff] }
 0x178   :  { %3262 = vmatprep.subr.bf16.mxu0 %v6143_v56  ;;  %v336_v56 = vld [vmem:[#allocation5 + $0x630] sm:$0xff] }
 0x179   :  { %3156 = vmatpush1.bf16.msra.mxu1 %v6332_v58  ;;  %v6198_v58 = vcombine.low %v324_v44, %v328_v45  ;;  %v384_v44 = vld [vmem:[#allocation5 + $0x7b0] sm:$0xff] }
 0x17a   :  { %3254 = vmatmul.mubr.bf16.vlgmr.msra.gmra.mrb[4].mxu0 %v7742_v17  ;;  %3157 = vmatprep.subr.bf16.mxu1 %v6341_v61  ;;  %v6207_v61 = vcombine.high %v332_v53, %v336_v56 }
 0x17b   :  { %3263 = vmatpush1.bf16.msra.mxu0 %v6142_v60  ;;  %3294 = vmatprep.mubr.bf16.mxu0 %v7736_v62  ;;  %v6397_v60 = vcombine.high %v523_v51, %v527_v52  ;;  %v579_v51 = vld [vmem:[#allocation5 + $0xdc8] sm:$0xff] }
 0x17c   :  { %3264 = vmatprep.subr.bf16.mxu0 %v6151_v0  ;;  %v535_v0 = vld [vmem:[#allocation5 + $0xc68] sm:$0xff] }
 0x17d   :  { %3158 = vmatpush1.bf16.msra.mxu1 %v6340_v4  ;;  %v6206_v4 = vcombine.low %v332_v53, %v336_v56  ;;  %v6404_v11 = vcombine.low %v531_v63, %v535_v0  ;;  %v583_v52 = vld [vmem:[#allocation5 + $0xde8] sm:$0xff]  ;;  %v388_v56 = vld [vmem:[#allocation5 + $0x7d0] sm:$0xff] }
 0x17e   :  { %3159 = vmatprep.subr.bf16.mxu1 %v6349_v6  ;;  %v6215_v6 = vcombine.high %v340_v1, %v344_v2 }
 0x17f   :  { %3265 = vmatpush1.bf16.msra.mxu0 %v6150_v5  ;;  %v6405_v5 = vcombine.high %v531_v63, %v535_v0  ;;  %v6254_v63 = vcombine.low %v380_v20, %v384_v44  ;;  %v6453_v0 = vcombine.high %v579_v51, %v583_v52 }
 0x180   :  { %3266 = vmatprep.subr.bf16.mxu0 %v6159_v7  ;;  %v539_v7 = vld [vmem:[#allocation5 + $0xc88] sm:$0xff] }
 0x181   :  { %3160 = vmatpush1.bf16.msra.mxu1 %v6348_v12  ;;  %v6214_v12 = vcombine.low %v340_v1, %v344_v2  ;;  %v6412_v21 = vcombine.low %v539_v7, %v543_v8  ;;  %v141_v2 = vld [vmem:[#allocation5 + $0x18] sm:$0xff] }
 0x182   :  { %3161 = vmatprep.subr.bf16.mxu1 %v6357_v14  ;;  %v6223_v14 = vcombine.high %v348_v9, %v352_v10 }
 0x183   :  { %3267 = vmatpush1.bf16.msra.mxu0 %v6158_v13  ;;  %v6413_v13 = vcombine.high %v539_v7, %v543_v8 }
 0x184   :  { %3268 = vmatprep.subr.bf16.mxu0 %v6167_v15  ;;  %v547_v15 = vld [vmem:[#allocation5 + $0xcc8] sm:$0xff] }
 0x185   :  { %3162 = vmatpush1.bf16.msra.mxu1 %v6356_v23  ;;  %v6222_v23 = vcombine.low %v348_v9, %v352_v10  ;;  %v6420_v55 = vcombine.low %v547_v15, %v551_v16  ;;  %v149_v10 = vld [vmem:[#allocation5 + $0x58] sm:$0xff] }
 0x186   :  { %3163 = vmatprep.subr.bf16.mxu1 %v6365_v25  ;;  %v6231_v25 = vcombine.high %v356_v18, %v360_v19 }
 0x187   :  { %3269 = vmatpush1.bf16.msra.mxu0 %v6166_v24  ;;  %v6421_v24 = vcombine.high %v547_v15, %v551_v16 }
 0x188   :  { %3270 = vmatprep.subr.bf16.mxu0 %v6175_v26  ;;  %v555_v26 = vld [vmem:[#allocation5 + $0xd08] sm:$0xff] }
 0x189   :  { %3164 = vmatpush1.bf16.msra.mxu1 %v6364_v30  ;;  %v6230_v30 = vcombine.low %v356_v18, %v360_v19  ;;  %v6428_v38 = vcombine.low %v555_v26, %v559_v27  ;;  %v157_v19 = vld [vmem:[#allocation5 + $0x98] sm:$0xff] }
 0x18a   :  { %3165 = vmatprep.subr.bf16.mxu1 %v6373_v32  ;;  %v6239_v32 = vcombine.high %v364_v54, %v368_v28 }
 0x18b   :  { %3271 = vmatpush1.bf16.msra.mxu0 %v6174_v31  ;;  %v6429_v31 = vcombine.high %v555_v26, %v559_v27 }
 0x18c   :  { %3272 = vmatprep.subr.bf16.mxu0 %v6183_v33  ;;  %v563_v33 = vld [vmem:[#allocation5 + $0xd48] sm:$0xff] }
 0x18d   :  { %3166 = vmatpush1.bf16.msra.mxu1 %v6372_v39  ;;  %v6238_v39 = vcombine.low %v364_v54, %v368_v28  ;;  %v6436_v45 = vcombine.low %v563_v33, %v567_v35 }
 0x18e   :  { %3167 = vmatprep.subr.bf16.mxu1 %v6381_v41  ;;  %v6247_v41 = vcombine.high %v372_v36, %v376_v37 }
 0x18f   :  { %3273 = vmatpush1.bf16.msra.mxu0 %v6182_v40  ;;  %v6437_v40 = vcombine.high %v563_v33, %v567_v35 }
 0x190   :  { %3274 = vmatprep.subr.bf16.mxu0 %v6191_v42  ;;  %v571_v42 = vld [vmem:[#allocation5 + $0xd88] sm:$0xff] }
 0x191   :  { %3168 = vmatpush1.bf16.msra.mxu1 %v6380_v46  ;;  %v6246_v46 = vcombine.low %v372_v36, %v376_v37 }
 0x192   :  { %3169 = vmatprep.subr.bf16.mxu1 %v6389_v48 }
 0x193   :  { %3275 = vmatpush1.bf16.msra.mxu0 %v6190_v47  ;;  %v6445_v47 = vcombine.high %v571_v42, %v575_v43 }
 0x194   :  { %3276 = vmatprep.subr.bf16.mxu0 %v6199_v50  ;;  %v6255_v50 = vcombine.high %v380_v20, %v384_v44  ;;  %v181_v44 = vld [vmem:[#allocation5 + $0x158] sm:$0xff] }
 0x195   :  { %3170 = vmatpush1.bf16.msra.mxu1 %v6388_v57  ;;  %v392_v57 = vld [vmem:[#allocation5 + $0x7f0] sm:$0xff] }
 0x196   :  { %3180 = vmatprep.subr.bf16.mxu1 %v6397_v60  ;;  %v6444_v60 = vcombine.low %v571_v42, %v575_v43  ;;  %v6263_v1 = vcombine.high %v388_v56, %v392_v57  ;;  %v6262_v7 = vcombine.low %v388_v56, %v392_v57  ;;  %v189_v57 = vld [vmem:[#allocation5 + $0x198] sm:$0xff] }
 0x197   :  { %3277 = vmatpush1.bf16.msra.mxu0 %v6198_v58 }
 0x198   :  { %3278 = vmatprep.subr.bf16.mxu0 %v6207_v61  ;;  %3172 = vmatmul.mubr.bf16.vlgmr.msra.gmra.mrb[4].mxu1 %v7760_v34 }
 0x199   :  { %3181 = vmatpush1.bf16.msra.mxu1 %v6396_v3  ;;  %3212 = vmatprep.mubr.bf16.mxu1 %v7576_v49  ;;  %v145_v3 = vld [vmem:[#allocation5 + $0x38] sm:$0xff] }
 0x19a   :  { %3182 = vmatprep.subr.bf16.mxu1 %v6405_v5  ;;  %v400_v5 = vld [vmem:[#allocation5 + $0x830] sm:$0xff]  ;;  %v6017_v8 = vcombine.high %v141_v2, %v145_v3 }
 0x19b   :  { %3279 = vmatpush1.bf16.msra.mxu0 %v6206_v4  ;;  %v396_v4 = vld [vmem:[#allocation5 + $0x810] sm:$0xff] }
 0x19c   :  { %3280 = vmatprep.subr.bf16.mxu0 %v6215_v6  ;;  %v6452_v6 = vcombine.low %v579_v51, %v583_v52  ;;  %v6271_v9 = vcombine.high %v396_v4, %v400_v5  ;;  %v6270_v15 = vcombine.low %v396_v4, %v400_v5  ;;  %v201_v4 = vld [vmem:[#allocation5 + $0x1f8] sm:$0xff]  ;;  %v452_v5 = vld [vmem:[#allocation5 + $0x9d0] sm:$0xff] }
 0x19d   :  { %3183 = vmatpush1.bf16.msra.mxu1 %v6404_v11  ;;  %v153_v11 = vld [vmem:[#allocation5 + $0x78] sm:$0xff] }
 0x19e   :  { %3184 = vmatprep.subr.bf16.mxu1 %v6413_v13  ;;  %v408_v13 = vld [vmem:[#allocation5 + $0x870] sm:$0xff]  ;;  %v6025_v16 = vcombine.high %v149_v10, %v153_v11  ;;  %v6024_v26 = vcombine.low %v149_v10, %v153_v11  ;;  %v205_v11 = vld [vmem:[#allocation5 + $0x218] sm:$0xff] }
 0x19f   :  { %3281 = vmatpush1.bf16.msra.mxu0 %v6214_v12  ;;  %v404_v12 = vld [vmem:[#allocation5 + $0x850] sm:$0xff] }
 0x1a0   :  { %3282 = vmatprep.subr.bf16.mxu0 %v6223_v14  ;;  %v6016_v14 = vcombine.low %v141_v2, %v145_v3  ;;  %v6279_v18 = vcombine.high %v404_v12, %v408_v13  ;;  %v6278_v27 = vcombine.low %v404_v12, %v408_v13  ;;  %v197_v3 = vld [vmem:[#allocation5 + $0x1d8] sm:$0xff]  ;;  %v460_v13 = vld [vmem:[#allocation5 + $0xa10] sm:$0xff] }
 0x1a1   :  { %3185 = vmatpush1.bf16.msra.mxu1 %v6412_v21  ;;  %v161_v21 = vld [vmem:[#allocation5 + $0xb8] sm:$0xff] }
 0x1a2   :  { %3186 = vmatprep.subr.bf16.mxu1 %v6421_v24  ;;  %v412_v24 = vld [vmem:[#allocation5 + $0x890] sm:$0xff]  ;;  %v6033_v54 = vcombine.high %v157_v19, %v161_v21  ;;  %v6032_v33 = vcombine.low %v157_v19, %v161_v21  ;;  %v209_v12 = vld [vmem:[#allocation5 + $0x238] sm:$0xff] }
 0x1a3   :  { %3283 = vmatpush1.bf16.msra.mxu0 %v6222_v23  ;;  %v7777_v23 = vld [vmem:[#allocation3 + $0x18] ss:$0 sps:$4 sm:$0xff]  }
 0x1a4   :  { %3284 = vmatprep.subr.bf16.mxu0 %v6231_v25  ;;  %v416_v25 = vld [vmem:[#allocation5 + $0x8b0] sm:$0xff]  ;;  %v213_v21 = vld [vmem:[#allocation5 + $0x258] sm:$0xff] }
 0x1a5   :  { %3187 = vmatpush1.bf16.msra.mxu1 %v6420_v55  ;;  %v6287_v28 = vcombine.high %v412_v24, %v416_v25  ;;  %v165_v55 = vld [vmem:[#allocation5 + $0xd8] sm:$0xff]  ;;  %v6286_v35 = vcombine.low %v412_v24, %v416_v25  ;;  %v468_v25 = vld [vmem:[#allocation5 + $0xa50] sm:$0xff] }
 0x1a6   :  { %3188 = vmatprep.subr.bf16.mxu1 %v6429_v31  ;;  %v420_v31 = vld [vmem:[#allocation5 + $0x8d0] sm:$0xff]  ;;  %v217_v24 = vld [vmem:[#allocation5 + $0x278] sm:$0xff] }
 0x1a7   :  { %3285 = vmatpush1.bf16.msra.mxu0 %v6230_v30  ;;  %v169_v30 = vld [vmem:[#allocation5 + $0xf8] sm:$0xff] }
 0x1a8   :  { %3286 = vmatprep.subr.bf16.mxu0 %v6239_v32  ;;  %v424_v32 = vld [vmem:[#allocation5 + $0x8f0] sm:$0xff]  ;;  %v6041_v36 = vcombine.high %v165_v55, %v169_v30  ;;  %v6040_v42 = vcombine.low %v165_v55, %v169_v30  ;;  %v221_v30 = vld [vmem:[#allocation5 + $0x298] sm:$0xff] }
 0x1a9   :  { %3189 = vmatpush1.bf16.msra.mxu1 %v6428_v38  ;;  %v6295_v37 = vcombine.high %v420_v31, %v424_v32  ;;  %v173_v38 = vld [vmem:[#allocation5 + $0x118] sm:$0xff]  ;;  %v6294_v43 = vcombine.low %v420_v31, %v424_v32  ;;  %v476_v32 = vld [vmem:[#allocation5 + $0xa90] sm:$0xff] }
 0x1aa   :  { %3190 = vmatprep.subr.bf16.mxu1 %v6437_v40  ;;  %v428_v40 = vld [vmem:[#allocation5 + $0x910] sm:$0xff]  ;;  %v225_v31 = vld [vmem:[#allocation5 + $0x2b8] sm:$0xff] }
 0x1ab   :  { %3287 = vmatpush1.bf16.msra.mxu0 %v6238_v39  ;;  %v7773_v48 = vpop.f32.mrb[0].mxu1  ;;  %v177_v39 = vld [vmem:[#allocation5 + $0x138] sm:$0xff] }
 0x1ac   :  { %3288 = vmatprep.subr.bf16.mxu0 %v6247_v41  ;;  %v7775_v53 = vpop.f32.mrb[1].mxu1  ;;  %v432_v41 = vld [vmem:[#allocation5 + $0x930] sm:$0xff]  ;;  %v6049_v20 = vcombine.high %v173_v38, %v177_v39 }
 0x1ad   :  { %v2931_v58 = vpop.f32.mrb[2].mxu1  ;;  %3191 = vmatpush1.bf16.msra.mxu1 %v6436_v45  ;;  %v185_v45 = vld [vmem:[#allocation5 + $0x178] sm:$0xff]  ;;  %v6302_v51 = vcombine.low %v428_v40, %v432_v41 }
 0x1ae   :  { %v2932_v61 = vpop.f32.mrb[3].mxu1  ;;  %3192 = vmatprep.subr.bf16.mxu1 %v6445_v47  ;;  %v440_v47 = vld [vmem:[#allocation5 + $0x970] sm:$0xff]  ;;  %v6057_v52 = vcombine.high %v181_v44, %v185_v45  ;;  %v193_v58 = vld [vmem:[#allocation5 + $0x1b8] sm:$0xff] }
 0x1af   :  { %3289 = vmatpush1.bf16.msra.mxu0 %v6246_v46  ;;  %v436_v46 = vld [vmem:[#allocation5 + $0x950] sm:$0xff] }
 0x1b0   :  { %3290 = vmatprep.subr.bf16.mxu0 %v6255_v50  ;;  %v6048_v50 = vcombine.low %v173_v38, %v177_v39  ;;  %v6311_v56 = vcombine.high %v436_v46, %v440_v47  ;;  %v448_v61 = vld [vmem:[#allocation5 + $0x9b0] sm:$0xff]  ;;  %v229_v39 = vld [vmem:[#allocation5 + $0x2d8] sm:$0xff] }
 0x1b1   :  { %3193 = vmatpush1.bf16.msra.mxu1 %v6444_v60  ;;  %v444_v60 = vld [vmem:[#allocation5 + $0x990] sm:$0xff] }
 0x1b2   :  { %3194 = vmatprep.subr.bf16.mxu1 %v6453_v0  ;;  %v6310_v0 = vcombine.low %v436_v46, %v440_v47  ;;  %v6319_v2 = vcombine.high %v444_v60, %v448_v61  ;;  %v241_v46 = vld [vmem:[#allocation5 + $0x338] sm:$0xff]  ;;  %v492_v47 = vld [vmem:[#allocation5 + $0xb10] sm:$0xff] }
 0x1b3   :  { %3291 = vmatpush1.bf16.msra.mxu0 %v6254_v63  ;;  %v6056_v63 = vcombine.low %v181_v44, %v185_v45  ;;  %v237_v45 = vld [vmem:[#allocation5 + $0x318] sm:$0xff] }
 0x1b4   :  { %3292 = vmatprep.subr.bf16.mxu0 %v6263_v1  ;;  %v6065_v1 = vcombine.high %v189_v57, %v193_v58 }
 0x1b5   :  { %3195 = vmatpush1.bf16.msra.mxu1 %v6452_v6  ;;  %v456_v6 = vld [vmem:[#allocation5 + $0x9f0] sm:$0xff] }
 0x1b6   :  { %3385 = vmatprep.subr.bf16.mxu1 %v6017_v8  ;;  %v6318_v8 = vcombine.low %v444_v60, %v448_v61  ;;  %v6327_v10 = vcombine.high %v452_v5, %v456_v6  ;;  %v249_v60 = vld [vmem:[#allocation5 + $0x378] sm:$0xff]  ;;  %v500_v61 = vld [vmem:[#allocation5 + $0xb50] sm:$0xff] }
 0x1b7   :  { %3293 = vmatpush1.bf16.msra.mxu0 %v6262_v7  ;;  %v6064_v7 = vcombine.low %v189_v57, %v193_v58  ;;  %v245_v58 = vld [vmem:[#allocation5 + $0x358] sm:$0xff] }
 0x1b8   :  { %3303 = vmatprep.subr.bf16.mxu0 %v6271_v9  ;;  %3213 = vmatmul.mubr.bf16.vlgmr.msra.gmra.mrb[4].mxu1 %v7777_v23  ;;  %v6073_v9 = vcombine.high %v197_v3, %v201_v4 }
 0x1b9   :  { %3386 = vmatpush1.bf16.msra.mxu1 %v6016_v14  ;;  %3417 = vmatprep.mubr.bf16.mxu1 %v7732_v59  ;;  %v6303_v59 = vcombine.high %v428_v40, %v432_v41  ;;  %v464_v14 = vld [vmem:[#allocation5 + $0xa30] sm:$0xff]  ;;  %v233_v40 = vld [vmem:[#allocation5 + $0x2f8] sm:$0xff] }
 0x1ba   :  { %3295 = vmatmul.mubr.bf16.vlgmr.msra.gmra.mrb[4].mxu0 %v7748_v22  ;;  %3387 = vmatprep.subr.bf16.mxu1 %v6025_v16  ;;  %v6326_v16 = vcombine.low %v452_v5, %v456_v6  ;;  %v6335_v19 = vcombine.high %v460_v13, %v464_v14  ;;  %v484_v41 = vld [vmem:[#allocation5 + $0xad0] sm:$0xff]  ;;  %v257_v5 = vld [vmem:[#allocation5 + $0x3b8] sm:$0xff] }
 0x1bb   :  { %3304 = vmatpush1.bf16.msra.mxu0 %v6270_v15  ;;  %3335 = vmatprep.mubr.bf16.mxu0 %v7752_v29  ;;  %v6072_v15 = vcombine.low %v197_v3, %v201_v4  ;;  %v253_v4 = vld [vmem:[#allocation5 + $0x398] sm:$0xff]  ;;  %v508_v6 = vld [vmem:[#allocation5 + $0xb90] sm:$0xff] }
 0x1bc   :  { %3305 = vmatprep.subr.bf16.mxu0 %v6279_v18  ;;  %v6081_v18 = vcombine.high %v205_v11, %v209_v12 }
 0x1bd   :  { %3388 = vmatpush1.bf16.msra.mxu1 %v6024_v26  ;;  %v472_v26 = vld [vmem:[#allocation5 + $0xa70] sm:$0xff] }
 0x1be   :  { %3389 = vmatprep.subr.bf16.mxu1 %v6033_v54  ;;  %v6334_v54 = vcombine.low %v460_v13, %v464_v14  ;;  %v6343_v55 = vcombine.high %v468_v25, %v472_v26  ;;  %v265_v13 = vld [vmem:[#allocation5 + $0x3f8] sm:$0xff]  ;;  %v516_v14 = vld [vmem:[#allocation5 + $0xbd0] sm:$0xff] }
 0x1bf   :  { %3306 = vmatpush1.bf16.msra.mxu0 %v6278_v27  ;;  %v6080_v27 = vcombine.low %v205_v11, %v209_v12  ;;  %v261_v12 = vld [vmem:[#allocation5 + $0x3d8] sm:$0xff] }
 0x1c0   :  { %3307 = vmatprep.subr.bf16.mxu0 %v6287_v28  ;;  %v6089_v28 = vcombine.high %v213_v21, %v217_v24 }
 0x1c1   :  { %3390 = vmatpush1.bf16.msra.mxu1 %v6032_v33  ;;  %v480_v33 = vld [vmem:[#allocation5 + $0xab0] sm:$0xff] }
 0x1c2   :  { %3391 = vmatprep.subr.bf16.mxu1 %v6041_v36  ;;  %v6342_v36 = vcombine.low %v468_v25, %v472_v26  ;;  %v6351_v38 = vcombine.high %v476_v32, %v480_v33  ;;  %v273_v25 = vld [vmem:[#allocation5 + $0x438] sm:$0xff]  ;;  %v524_v26 = vld [vmem:[#allocation5 + $0xc10] sm:$0xff] }
 0x1c3   :  { %3308 = vmatpush1.bf16.msra.mxu0 %v6286_v35  ;;  %v6088_v35 = vcombine.low %v213_v21, %v217_v24  ;;  %v269_v24 = vld [vmem:[#allocation5 + $0x418] sm:$0xff] }
 0x1c4   :  { %3309 = vmatprep.subr.bf16.mxu0 %v6295_v37  ;;  %v6097_v37 = vcombine.high %v221_v30, %v225_v31 }
 0x1c5   :  { %3392 = vmatpush1.bf16.msra.mxu1 %v6040_v42  ;;  %v488_v42 = vld [vmem:[#allocation5 + $0xaf0] sm:$0xff] }
 0x1c6   :  { %3393 = vmatprep.subr.bf16.mxu1 %v6049_v20  ;;  %v6350_v20 = vcombine.low %v476_v32, %v480_v33  ;;  %v6359_v44 = vcombine.high %v484_v41, %v488_v42  ;;  %v281_v32 = vld [vmem:[#allocation5 + $0x478] sm:$0xff]  ;;  %v532_v33 = vld [vmem:[#allocation5 + $0xc50] sm:$0xff] }
 0x1c7   :  { %3310 = vmatpush1.bf16.msra.mxu0 %v6294_v43  ;;  %v6096_v43 = vcombine.low %v221_v30, %v225_v31  ;;  %v277_v31 = vld [vmem:[#allocation5 + $0x458] sm:$0xff] }
 0x1c8   :  { %3311 = vmatprep.subr.bf16.mxu0 %v6303_v59  ;;  %v6105_v59 = vcombine.high %v229_v39, %v233_v40 }
 0x1c9   :  { %3394 = vmatpush1.bf16.msra.mxu1 %v6048_v50  ;;  %v496_v50 = vld [vmem:[#allocation5 + $0xb30] sm:$0xff] }
 0x1ca   :  { %3395 = vmatprep.subr.bf16.mxu1 %v6057_v52  ;;  %v6358_v52 = vcombine.low %v484_v41, %v488_v42  ;;  %v6367_v57 = vcombine.high %v492_v47, %v496_v50  ;;  %v289_v41 = vld [vmem:[#allocation5 + $0x4b8] sm:$0xff]  ;;  %v540_v42 = vld [vmem:[#allocation5 + $0xc90] sm:$0xff] }
 0x1cb   :  { %3312 = vmatpush1.bf16.msra.mxu0 %v6302_v51  ;;  %v6104_v51 = vcombine.low %v229_v39, %v233_v40  ;;  %v285_v40 = vld [vmem:[#allocation5 + $0x498] sm:$0xff] }
 0x1cc   :  { %3313 = vmatprep.subr.bf16.mxu0 %v6311_v56  ;;  %v6113_v56 = vcombine.high %v237_v45, %v241_v46 }
 0x1cd   :  { %3396 = vmatpush1.bf16.msra.mxu1 %v6056_v63  ;;  %v504_v63 = vld [vmem:[#allocation5 + $0xb70] sm:$0xff] }
 0x1ce   :  { %3397 = vmatprep.subr.bf16.mxu1 %v6065_v1  ;;  %v6366_v1 = vcombine.low %v492_v47, %v496_v50  ;;  %v6375_v3 = vcombine.high %v500_v61, %v504_v63  ;;  %v293_v47 = vld [vmem:[#allocation5 + $0x4d8] sm:$0xff] }
 0x1cf   :  { %3314 = vmatpush1.bf16.msra.mxu0 %v6310_v0  ;;  %v6112_v0 = vcombine.low %v237_v45, %v241_v46  ;;  %v588_v45 = vlaneseq  ;;  %v297_v50 = vld [vmem:[#allocation5 + $0x4f8] sm:$0xff] }
 0x1d0   :  { %3315 = vmatprep.subr.bf16.mxu0 %v6319_v2  ;;  %v6121_v2 = vcombine.high %v245_v58, %v249_v60 }
 0x1d1   :  { %3398 = vmatpush1.bf16.msra.mxu1 %v6064_v7  ;;  %v512_v7 = vld [vmem:[#allocation5 + $0xbb0] sm:$0xff] }
 0x1d2   :  { %3399 = vmatprep.subr.bf16.mxu1 %v6073_v9  ;;  %v6374_v9 = vcombine.low %v500_v61, %v504_v63  ;;  %v6383_v11 = vcombine.high %v508_v6, %v512_v7  ;;  %v301_v61 = vld [vmem:[#allocation5 + $0x518] sm:$0xff] }
 0x1d3   :  { %3316 = vmatpush1.bf16.msra.mxu0 %v6318_v8  ;;  %v6120_v8 = vcombine.low %v245_v58, %v249_v60  ;;  %v7787_v58 = vshrl.u32 %v588_v45, 7  ;;  %v305_v63 = vld [vmem:[#allocation5 + $0x538] sm:$0xff] }
 0x1d4   :  { %3317 = vmatprep.subr.bf16.mxu0 %v6327_v10  ;;  %v6129_v10 = vcombine.high %v253_v4, %v257_v5 }
 0x1d5   :  { %3400 = vmatpush1.bf16.msra.mxu1 %v6072_v15  ;;  %v520_v15 = vld [vmem:[#allocation5 + $0xbf0] sm:$0xff] }
 0x1d6   :  { %3401 = vmatprep.subr.bf16.mxu1 %v6081_v18  ;;  %v6382_v18 = vcombine.low %v508_v6, %v512_v7  ;;  %v6391_v21 = vcombine.high %v516_v14, %v520_v15  ;;  %v309_v6 = vld [vmem:[#allocation5 + $0x558] sm:$0xff] }
 0x1d7   :  { %3318 = vmatpush1.bf16.msra.mxu0 %v6326_v16  ;;  %v6128_v16 = vcombine.low %v253_v4, %v257_v5  ;;  %v7790_v4 = vsub.s32 0, %v7787_v58  ;;  %v313_v7 = vld [vmem:[#allocation5 + $0x578] sm:$0xff] }
 0x1d8   :  { %3319 = vmatprep.subr.bf16.mxu0 %v6335_v19  ;;  %v6137_v19 = vcombine.high %v261_v12, %v265_v13 }
 0x1d9   :  { %3402 = vmatpush1.bf16.msra.mxu1 %v6080_v27  ;;  %v528_v27 = vld [vmem:[#allocation5 + $0xc30] sm:$0xff] }
 0x1da   :  { %3403 = vmatprep.subr.bf16.mxu1 %v6089_v28  ;;  %v6390_v28 = vcombine.low %v516_v14, %v520_v15  ;;  %v6399_v30 = vcombine.high %v524_v26, %v528_v27  ;;  %v6185_v14 = vcombine.high %v309_v6, %v313_v7 }
 0x1db   :  { %3320 = vmatpush1.bf16.msra.mxu0 %v6334_v54  ;;  %v6136_v54 = vcombine.low %v261_v12, %v265_v13  ;;  %v6176_v12 = vcombine.low %v301_v61, %v305_v63 }
 0x1dc   :  { %3321 = vmatprep.subr.bf16.mxu0 %v6343_v55  ;;  %v6145_v55 = vcombine.high %v269_v24, %v273_v25 }
 0x1dd   :  { %3404 = vmatpush1.bf16.msra.mxu1 %v6088_v35  ;;  %v536_v35 = vld [vmem:[#allocation5 + $0xc70] sm:$0xff] }
 0x1de   :  { %3405 = vmatprep.subr.bf16.mxu1 %v6097_v37  ;;  %v6398_v37 = vcombine.low %v524_v26, %v528_v27  ;;  %v6407_v39 = vcombine.high %v532_v33, %v536_v35  ;;  %v6184_v26 = vcombine.low %v309_v6, %v313_v7  ;;  %v357_v6 = vld [vmem:[#allocation5 + $0x6d8] sm:$0xff] }
 0x1df   :  { %3322 = vmatpush1.bf16.msra.mxu0 %v6342_v36  ;;  %v6144_v36 = vcombine.low %v269_v24, %v273_v25  ;;  %v572_v24 = vld [vmem:[#allocation5 + $0xd90] sm:$0xff]  ;;  %v361_v7 = vld [vmem:[#allocation5 + $0x6f8] sm:$0xff] }
 0x1e0   :  { %3323 = vmatprep.subr.bf16.mxu0 %v6351_v38  ;;  %v6153_v38 = vcombine.high %v277_v31, %v281_v32  ;;  %v576_v25 = vld [vmem:[#allocation5 + $0xdb0] sm:$0xff] }
 0x1e1   :  { %3406 = vmatpush1.bf16.msra.mxu1 %v6096_v43  ;;  %v544_v43 = vld [vmem:[#allocation5 + $0xcb0] sm:$0xff] }
 0x1e2   :  { %3407 = vmatprep.subr.bf16.mxu1 %v6105_v59  ;;  %v6406_v59 = vcombine.low %v532_v33, %v536_v35  ;;  %v6415_v46 = vcombine.high %v540_v42, %v544_v43  ;;  %v580_v35 = vld [vmem:[#allocation5 + $0xdd0] sm:$0xff] }
 0x1e3   :  { %3324 = vmatpush1.bf16.msra.mxu0 %v6350_v20  ;;  %v6152_v20 = vcombine.low %v277_v31, %v281_v32  ;;  %v329_v31 = vld [vmem:[#allocation5 + $0x5f8] sm:$0xff] }
 0x1e4   :  { %3325 = vmatprep.subr.bf16.mxu0 %v6359_v44  ;;  %v6161_v44 = vcombine.high %v285_v40, %v289_v41 }
 0x1e5   :  { %3408 = vmatpush1.bf16.msra.mxu1 %v6104_v51  ;;  %v548_v51 = vld [vmem:[#allocation5 + $0xcd0] sm:$0xff] }
 0x1e6   :  { %3409 = vmatprep.subr.bf16.mxu1 %v6113_v56  ;;  %v6414_v56 = vcombine.low %v540_v42, %v544_v43  ;;  %v6446_v42 = vcombine.low %v572_v24, %v576_v25 }
 0x1e7   :  { %3326 = vmatpush1.bf16.msra.mxu0 %v6358_v52  ;;  %v552_v52 = vld [vmem:[#allocation5 + $0xcf0] sm:$0xff] }
 0x1e8   :  { %3327 = vmatprep.subr.bf16.mxu0 %v6367_v57  ;;  %v6169_v57 = vcombine.high %v293_v47, %v297_v50  ;;  %v6423_v60 = vcombine.high %v548_v51, %v552_v52 }
 0x1e9   :  { %3410 = vmatpush1.bf16.msra.mxu1 %v6112_v0  ;;  %v556_v0 = vld [vmem:[#allocation5 + $0xd10] sm:$0xff] }
 0x1ea   :  { %3411 = vmatprep.subr.bf16.mxu1 %v6121_v2  ;;  %v6168_v2 = vcombine.low %v293_v47, %v297_v50  ;;  %v6891_v50 = vld [vmem:[#allocation8 + $0x4] ss:$16 sps:$4 sm:$0xff]  }
 0x1eb   :  { %3328 = vmatpush1.bf16.msra.mxu0 %v6366_v1  ;;  %v560_v1 = vld [vmem:[#allocation5 + $0xd30] sm:$0xff] }
 0x1ec   :  { %3329 = vmatprep.subr.bf16.mxu0 %v6375_v3  ;;  %v6422_v3 = vcombine.low %v548_v51, %v552_v52  ;;  %v6431_v5 = vcombine.high %v556_v0, %v560_v1  ;;  %v6430_v13 = vcombine.low %v556_v0, %v560_v1  ;;  %v341_v52 = vld [vmem:[#allocation5 + $0x658] sm:$0xff] }
 0x1ed   :  { %3412 = vmatpush1.bf16.msra.mxu1 %v6120_v8  ;;  %v7792_v8 = vld [vmem:[#allocation7] sm:$0xff]  ;;  %v353_v0 = vld [vmem:[#allocation5 + $0x6b8] sm:$0xff] }
 0x1ee   :  { %3413 = vmatprep.subr.bf16.mxu1 %v6129_v10  ;;  %v564_v10 = vld [vmem:[#allocation5 + $0xd50] sm:$0xff]  ;;  %v591_v15 = vrot.slane %v7792_v8, %v7790_v4 }
 0x1ef   :  { %3330 = vmatpush1.bf16.msra.mxu0 %v6374_v9  ;;  %v7795_v9 = vsub.s32 1, %v7787_v58 }
 0x1f0   :  { %3331 = vmatprep.subr.bf16.mxu0 %v6383_v11  ;;  %v568_v11 = vld [vmem:[#allocation5 + $0xd70] sm:$0xff] }
 0x1f1   :  { %3414 = vmatpush1.bf16.msra.mxu1 %v6128_v16  ;;  %v6439_v16 = vcombine.high %v564_v10, %v568_v11  ;;  %v6438_v27 = vcombine.low %v564_v10, %v568_v11  ;;  %v6895_v11 = vld [vmem:[#allocation8 + $0x40] ss:$16 sps:$4 sm:$0xff]  }
 0x1f2   :  { %3415 = vmatprep.subr.bf16.mxu1 %v6137_v19  ;;  %v321_v19 = vld [vmem:[#allocation5 + $0x5b8] sm:$0xff] }
 0x1f3   :  { %3332 = vmatpush1.bf16.msra.mxu0 %v6382_v18  ;;  %v317_v18 = vld [vmem:[#allocation5 + $0x598] sm:$0xff] }
 0x1f4   :  { %3333 = vmatprep.subr.bf16.mxu0 %v6391_v21  ;;  %v595_v21 = vrot.slane %v7792_v8, %v7795_v9 }
 0x1f5   :  { %3416 = vmatpush1.bf16.msra.mxu1 %v6136_v54  ;;  %v6193_v54 = vcombine.high %v317_v18, %v321_v19 }
 0x1f6   :  { %3426 = vmatprep.subr.bf16.mxu1 %v6145_v55  ;;  %v6447_v55 = vcombine.high %v572_v24, %v576_v25  ;;  %v2930_v32 = vadd.f32 %v7775_v53, %v595_v21  ;;  %v373_v21 = vld [vmem:[#allocation5 + $0x758] sm:$0xff] }
 0x1f7   :  { %3334 = vmatpush1.bf16.msra.mxu0 %v6390_v28  ;;  %v2928_v28 = vadd.f32 %v7773_v48, %v591_v15  ;;  %v6232_v15 = vcombine.low %v357_v6, %v361_v7  ;;  %v377_v24 = vld [vmem:[#allocation5 + $0x778] sm:$0xff] }
 0x1f8   :  { %3344 = vmatprep.subr.bf16.mxu0 %v6399_v30  ;;  %3418 = vmatmul.mubr.bf16.vlgmr.msra.gmra.mrb[8].mxu1 %v7742_v17  ;;  %v6160_v17 = vcombine.low %v285_v40, %v289_v41  ;;  %v325_v30 = vld [vmem:[#allocation5 + $0x5d8] sm:$0xff] }
 0x1f9   :  { %3427 = vmatpush1.bf16.msra.mxu1 %v6144_v36  ;;  %3458 = vmatprep.mubr.bf16.mxu1 %v7736_v62  ;;  %v6177_v62 = vcombine.high %v301_v61, %v305_v63  ;;  %v584_v36 = vld [vmem:[#allocation5 + $0xdf0] sm:$0xff]  ;;  %v6201_v48 = vcombine.high %v325_v30, %v329_v31  ;;  %v6200_v45 = vcombine.low %v325_v30, %v329_v31  ;;  %v6894_v61 = vld [vmem:[#allocation8 + $0x24] ss:$16 sps:$4 sm:$0xff]   ;;  %v6904_v31 = vld [vmem:[#allocation8 + $0xa0] ss:$16 sps:$4 sm:$0xff]  }
 0x1fa   :  { %3336 = vmatmul.mubr.bf16.vlgmr.msra.gmra.mrb[4].mxu0 %v7760_v34  ;;  %3428 = vmatprep.subr.bf16.mxu1 %v6153_v38  ;;  %v349_v63 = vld [vmem:[#allocation5 + $0x698] sm:$0xff]  ;;  %v6248_v30 = vcombine.low %v373_v21, %v377_v24 }
 0x1fb   :  { %3345 = vmatpush1.bf16.msra.mxu0 %v6398_v37  ;;  %3376 = vmatprep.mubr.bf16.mxu0 %v7576_v49  ;;  %v6224_v10 = vcombine.low %v349_v63, %v353_v0 }
 0x1fc   :  { %3346 = vmatprep.subr.bf16.mxu0 %v6407_v39  ;;  %v6192_v39 = vcombine.low %v317_v18, %v321_v19  ;;  %v6903_v19 = vld [vmem:[#allocation8 + $0x84] ss:$16 sps:$4 sm:$0xff]  }
 0x1fd   :  { %3429 = vmatpush1.bf16.msra.mxu1 %v6152_v20  ;;  %v6455_v20 = vcombine.high %v580_v35, %v584_v36 }
 0x1fe   :  { %3430 = vmatprep.subr.bf16.mxu1 %v6161_v44  ;;  %v337_v44 = vld [vmem:[#allocation5 + $0x638] sm:$0xff] }
 0x1ff   :  { %3347 = vmatpush1.bf16.msra.mxu0 %v6406_v59  ;;  %v333_v59 = vld [vmem:[#allocation5 + $0x618] sm:$0xff] }
 0x200   :  { %3348 = vmatprep.subr.bf16.mxu0 %v6415_v46  ;;  %v6454_v46 = vcombine.low %v580_v35, %v584_v36  ;;  %v6209_v47 = vcombine.high %v333_v59, %v337_v44  ;;  %v389_v35 = vld [vmem:[#allocation5 + $0x7d8] sm:$0xff] }
 0x201   :  { %3431 = vmatpush1.bf16.msra.mxu1 %v6160_v17  ;;  %v345_v17 = vld [vmem:[#allocation5 + $0x678] sm:$0xff] }
 0x202   :  { %3432 = vmatprep.subr.bf16.mxu1 %v6169_v57  ;;  %v6889_v57 = vld [vmem:[#allocation8] ss:$16 sps:$4 sm:$0xff]  }
 0x203   :  { %3349 = vmatpush1.bf16.msra.mxu0 %v6414_v56  ;;  %v6208_v56 = vcombine.low %v333_v59, %v337_v44  ;;  %v393_v36 = vld [vmem:[#allocation5 + $0x7f8] sm:$0xff] }
 0x204   :  { %3350 = vmatprep.subr.bf16.mxu0 %v6423_v60  ;;  %v6217_v60 = vcombine.high %v341_v52, %v345_v17  ;;  %v6915_v44 = vld [vmem:[#allocation8 + $0x104] ss:$16 sps:$4 sm:$0xff]  }
 0x205   :  { %3433 = vmatpush1.bf16.msra.mxu1 %v6168_v2  ;;  %v6216_v2 = vcombine.low %v341_v52, %v345_v17  ;;  %v413_v52 = vld [vmem:[#allocation5 + $0x898] sm:$0xff] }
 0x206   :  { %3434 = vmatprep.subr.bf16.mxu1 %v6177_v62  ;;  %v6225_v62 = vcombine.high %v349_v63, %v353_v0  ;;  %v417_v17 = vld [vmem:[#allocation5 + $0x8b8] sm:$0xff] }
 0x207   :  { %3351 = vmatpush1.bf16.msra.mxu0 %v6422_v3  ;;  %v6892_v3 = vld [vmem:[#allocation8 + $0x20] ss:$16 sps:$4 sm:$0xff]  }
 0x208   :  { %3352 = vmatprep.subr.bf16.mxu0 %v6431_v5  ;;  %v6897_v5 = vld [vmem:[#allocation8 + $0x44] ss:$16 sps:$4 sm:$0xff]  }
 0x209   :  { %3435 = vmatpush1.bf16.msra.mxu1 %v6176_v12  ;;  %v6233_v12 = vcombine.high %v357_v6, %v361_v7  ;;  %v421_v63 = vld [vmem:[#allocation5 + $0x8d8] sm:$0xff] }
 0x20a   :  { %3436 = vmatprep.subr.bf16.mxu1 %v6185_v14  ;;  %v369_v14 = vld [vmem:[#allocation5 + $0x738] sm:$0xff] }
 0x20b   :  { %3353 = vmatpush1.bf16.msra.mxu0 %v6430_v13  ;;  %v365_v13 = vld [vmem:[#allocation5 + $0x718] sm:$0xff] }
 0x20c   :  { %3354 = vmatprep.subr.bf16.mxu0 %v6439_v16  ;;  %v6898_v16 = vld [vmem:[#allocation8 + $0x60] ss:$16 sps:$4 sm:$0xff]   ;;  %v6241_v18 = vcombine.high %v365_v13, %v369_v14  ;;  %v6240_v25 = vcombine.low %v365_v13, %v369_v14 }
 0x20d   :  { %v3050_v33 = vpop.f32.mrb[0].mxu0  ;;  %3437 = vmatpush1.bf16.msra.mxu1 %v6184_v26  ;;  %v6901_v26 = vld [vmem:[#allocation8 + $0x80] ss:$16 sps:$4 sm:$0xff]  }
 0x20e   :  { %v7803_v37 = vadd.f32 %v3050_v33, %v2928_v28  ;;  %v3052_v38 = vpop.f32.mrb[1].mxu0  ;;  %3438 = vmatprep.subr.bf16.mxu1 %v6193_v54  ;;  %v6906_v54 = vld [vmem:[#allocation8 + $0xa4] ss:$16 sps:$4 sm:$0xff]   ;;  %v6922_v7 = vld [vmem:[#allocation8 + $0x160] ss:$16 sps:$4 sm:$0xff]  }
 0x20f   :  { %v6782_v40 = vadd.f32 %v3052_v38, %v2930_v32  ;;  %v3054_v41 = vpop.f32.mrb[2].mxu0  ;;  %3355 = vmatpush1.bf16.msra.mxu0 %v6438_v27  ;;  %v6249_v27 = vcombine.high %v373_v21, %v377_v24  ;;  %v381_v28 = vld [vmem:[#allocation5 + $0x798] sm:$0xff] }
 0x210   :  { %v3055_v43 = vpop.f32.mrb[3].mxu0  ;;  %3356 = vmatprep.subr.bf16.mxu0 %v6447_v55  ;;  %v385_v55 = vld [vmem:[#allocation5 + $0x7b8] sm:$0xff] }
 0x211   :  { %v3550_v53 = vmul.f32 0.2, %v6782_v40  ;;  %3439 = vmatpush1.bf16.msra.mxu1 %v6192_v39  ;;  %v6257_v32 = vcombine.high %v381_v28, %v385_v55  ;;  %v6909_v33 = vld [vmem:[#allocation8 + $0xc4] ss:$16 sps:$4 sm:$0xff]   ;;  %v6256_v38 = vcombine.low %v381_v28, %v385_v55  ;;  %v6907_v39 = vld [vmem:[#allocation8 + $0xc0] ss:$16 sps:$4 sm:$0xff]   ;;  %v6264_v43 = vcombine.low %v389_v35, %v393_v36 }
 0x212   :  { %3440 = vmatprep.subr.bf16.mxu1 %v6201_v48  ;;  %v6912_v41 = vld [vmem:[#allocation8 + $0xe4] ss:$16 sps:$4 sm:$0xff]   ;;  %v6925_v14 = vld [vmem:[#allocation8 + $0x180] ss:$16 sps:$4 sm:$0xff]  }
 0x213   :  { %3357 = vmatpush1.bf16.msra.mxu0 %v6446_v42  ;;  %v3558_v51 = vmax.f32 %v6782_v40, %v3550_v53  ;;  %v6265_v40 = vcombine.high %v389_v35, %v393_v36  ;;  %v397_v42 = vld [vmem:[#allocation5 + $0x818] sm:$0xff] }
 0x214   :  { %3358 = vmatprep.subr.bf16.mxu0 %v6455_v20  ;;  %v401_v48 = vld [vmem:[#allocation5 + $0x838] sm:$0xff] }
 0x215   :  { %3441 = vmatpush1.bf16.msra.mxu1 %v6200_v45  ;;  %v7805_v1 = vpack.c.bf16 %v3558_v51, %v3558_v51  ;;  %v6910_v20 = vld [vmem:[#allocation8 + $0xe0] ss:$16 sps:$4 sm:$0xff]   ;;  %v6273_v59 = vcombine.high %v397_v42, %v401_v48  ;;  %v6918_v51 = vld [vmem:[#allocation8 + $0x124] ss:$16 sps:$4 sm:$0xff]  }
 0x216   :  { %3442 = vmatprep.subr.bf16.mxu1 %v6209_v47  ;;  %v405_v53 = vld [vmem:[#allocation5 + $0x858] sm:$0xff] }
 0x217   :  { %3359 = vmatpush1.bf16.msra.mxu0 %v6454_v46  ;;  %v409_v45 = vld [vmem:[#allocation5 + $0x878] sm:$0xff]  ;;  %v6272_v46 = vcombine.low %v397_v42, %v401_v48 }
 0x218   :  { %5131 = vmatprep.subr.bf16.mxu0 %v6891_v50  ;;  %v6913_v47 = vld [vmem:[#allocation8 + $0x100] ss:$16 sps:$4 sm:$0xff]   ;;  %v6281_v50 = vcombine.high %v405_v53, %v409_v45 }
 0x219   :  { %3443 = vmatpush1.bf16.msra.mxu1 %v6208_v56  ;;  %v6280_v56 = vcombine.low %v405_v53, %v409_v45  ;;  %v425_v0 = vld [vmem:[#allocation5 + $0x8f8] sm:$0xff] }
 0x21a   :  { %3377 = vmatmul.mubr.bf16.vlgmr.msra.gmra.mrb[4].mxu0 %v7777_v23  ;;  %3444 = vmatprep.subr.bf16.mxu1 %v6217_v60  ;;  %v6900_v23 = vld [vmem:[#allocation8 + $0x64] ss:$16 sps:$4 sm:$0xff]   ;;  %v6289_v60 = vcombine.high %v413_v52, %v417_v17  ;;  %v6928_v24 = vld [vmem:[#allocation8 + $0x1a0] ss:$16 sps:$4 sm:$0xff]  }
 0x21b   :  { %5132 = vmatpush1.bf16.msra.mxu0 %v6889_v57  ;;  %5163 = vmatprep.mubr.bf16.mxu0 %v7805_v1  ;;  %v6916_v57 = vld [vmem:[#allocation8 + $0x120] ss:$16 sps:$4 sm:$0xff]   ;;  %v6942_v53 = vld [vmem:[#allocation8 + $0x224] ss:$16 sps:$4 sm:$0xff]  }
 0x21c   :  { %5133 = vmatprep.subr.bf16.mxu0 %v6894_v61  ;;  %v6921_v61 = vld [vmem:[#allocation8 + $0x144] ss:$16 sps:$4 sm:$0xff]   ;;  %v6931_v55 = vld [vmem:[#allocation8 + $0x1c0] ss:$16 sps:$4 sm:$0xff]  }
 0x21d   :  { %3445 = vmatpush1.bf16.msra.mxu1 %v6216_v2  ;;  %v6288_v2 = vcombine.low %v413_v52, %v417_v17  ;;  %v433_v6 = vld [vmem:[#allocation5 + $0x938] sm:$0xff] }
 0x21e   :  { %3446 = vmatprep.subr.bf16.mxu1 %v6225_v62  ;;  %v6297_v62 = vcombine.high %v421_v63, %v425_v0  ;;  %v465_v35 = vld [vmem:[#allocation5 + $0xa38] sm:$0xff] }
 0x21f   :  { %5134 = vmatpush1.bf16.msra.mxu0 %v6892_v3  ;;  %v6919_v3 = vld [vmem:[#allocation8 + $0x140] ss:$16 sps:$4 sm:$0xff]  }
 0x220   :  { %5135 = vmatprep.subr.bf16.mxu0 %v6897_v5  ;;  %v429_v5 = vld [vmem:[#allocation5 + $0x918] sm:$0xff] }
 0x221   :  { %3447 = vmatpush1.bf16.msra.mxu1 %v6224_v10  ;;  %v6305_v10 = vcombine.high %v429_v5, %v433_v6  ;;  %v6304_v13 = vcombine.low %v429_v5, %v433_v6  ;;  %v469_v42 = vld [vmem:[#allocation5 + $0xa58] sm:$0xff] }
 0x222   :  { %3448 = vmatprep.subr.bf16.mxu1 %v6233_v12  ;;  %v437_v12 = vld [vmem:[#allocation5 + $0x958] sm:$0xff] }
 0x223   :  { %5136 = vmatpush1.bf16.msra.mxu0 %v6895_v11  ;;  %v6927_v11 = vld [vmem:[#allocation8 + $0x184] ss:$16 sps:$4 sm:$0xff]  }
 0x224   :  { %5137 = vmatprep.subr.bf16.mxu0 %v6900_v23  ;;  %v441_v23 = vld [vmem:[#allocation5 + $0x978] sm:$0xff] }
 0x225   :  { %3449 = vmatpush1.bf16.msra.mxu1 %v6232_v15  ;;  %v6313_v15 = vcombine.high %v437_v12, %v441_v23  ;;  %v6312_v21 = vcombine.low %v437_v12, %v441_v23  ;;  %v473_v48 = vld [vmem:[#allocation5 + $0xa78] sm:$0xff] }
 0x226   :  { %3450 = vmatprep.subr.bf16.mxu1 %v6241_v18  ;;  %v445_v18 = vld [vmem:[#allocation5 + $0x998] sm:$0xff] }
 0x227   :  { %5138 = vmatpush1.bf16.msra.mxu0 %v6898_v16  ;;  %v6930_v16 = vld [vmem:[#allocation8 + $0x1a4] ss:$16 sps:$4 sm:$0xff]  }
 0x228   :  { %5139 = vmatprep.subr.bf16.mxu0 %v6903_v19  ;;  %v449_v19 = vld [vmem:[#allocation5 + $0x9b8] sm:$0xff] }
 0x229   :  { %3451 = vmatpush1.bf16.msra.mxu1 %v6240_v25  ;;  %v6321_v25 = vcombine.high %v445_v18, %v449_v19  ;;  %v6320_v28 = vcombine.low %v445_v18, %v449_v19  ;;  %v477_v45 = vld [vmem:[#allocation5 + $0xa98] sm:$0xff] }
 0x22a   :  { %3452 = vmatprep.subr.bf16.mxu1 %v6249_v27  ;;  %v453_v27 = vld [vmem:[#allocation5 + $0x9d8] sm:$0xff] }
 0x22b   :  { %5140 = vmatpush1.bf16.msra.mxu0 %v6901_v26  ;;  %v6933_v26 = vld [vmem:[#allocation8 + $0x1c4] ss:$16 sps:$4 sm:$0xff]  }
 0x22c   :  { %5141 = vmatprep.subr.bf16.mxu0 %v6906_v54  ;;  %v457_v54 = vld [vmem:[#allocation5 + $0x9f8] sm:$0xff] }
 0x22d   :  { %3453 = vmatpush1.bf16.msra.mxu1 %v6248_v30  ;;  %v6329_v30 = vcombine.high %v453_v27, %v457_v54  ;;  %v6328_v36 = vcombine.low %v453_v27, %v457_v54  ;;  %v485_v52 = vld [vmem:[#allocation5 + $0xad8] sm:$0xff] }
 0x22e   :  { %3454 = vmatprep.subr.bf16.mxu1 %v6257_v32  ;;  %v6936_v32 = vld [vmem:[#allocation8 + $0x1e4] ss:$16 sps:$4 sm:$0xff]  }
 0x22f   :  { %5142 = vmatpush1.bf16.msra.mxu0 %v6904_v31  ;;  %v3549_v31 = vmul.f32 0.2, %v7803_v37  ;;  %v489_v17 = vld [vmem:[#allocation5 + $0xaf8] sm:$0xff] }
 0x230   :  { %5143 = vmatprep.subr.bf16.mxu0 %v6909_v33  ;;  %v461_v33 = vld [vmem:[#allocation5 + $0xa18] sm:$0xff] }
 0x231   :  { %3455 = vmatpush1.bf16.msra.mxu1 %v6256_v38  ;;  %v6934_v38 = vld [vmem:[#allocation8 + $0x1e0] ss:$16 sps:$4 sm:$0xff]  }
 0x232   :  { %3456 = vmatprep.subr.bf16.mxu1 %v6265_v40  ;;  %v3557_v40 = vmax.f32 %v7803_v37, %v3549_v31  ;;  %v6344_v37 = vcombine.low %v469_v42, %v473_v48  ;;  %v501_v5 = vld [vmem:[#allocation5 + $0xb58] sm:$0xff] }
 0x233   :  { %5144 = vmatpush1.bf16.msra.mxu0 %v6907_v39  ;;  %v6337_v39 = vcombine.high %v461_v33, %v465_v35  ;;  %v505_v6 = vld [vmem:[#allocation5 + $0xb78] sm:$0xff] }
 0x234   :  { %5145 = vmatprep.subr.bf16.mxu0 %v6912_v41  ;;  %v6939_v41 = vld [vmem:[#allocation8 + $0x204] ss:$16 sps:$4 sm:$0xff]  }
 0x235   :  { %3457 = vmatpush1.bf16.msra.mxu1 %v6264_v43  ;;  %v6336_v43 = vcombine.low %v461_v33, %v465_v35  ;;  %v509_v12 = vld [vmem:[#allocation5 + $0xb98] sm:$0xff] }
 0x236   :  { %3467 = vmatprep.subr.bf16.mxu1 %v6273_v59  ;;  %v6345_v59 = vcombine.high %v469_v42, %v473_v48  ;;  %v513_v23 = vld [vmem:[#allocation5 + $0xbb8] sm:$0xff] }
 0x237   :  { %5146 = vmatpush1.bf16.msra.mxu0 %v6910_v20  ;;  %v6937_v20 = vld [vmem:[#allocation8 + $0x200] ss:$16 sps:$4 sm:$0xff]   ;;  %v6963_v31 = vld [vmem:[#allocation8 + $0x304] ss:$16 sps:$4 sm:$0xff]  }
 0x238   :  { %5147 = vmatprep.subr.bf16.mxu0 %v6915_v44  ;;  %3459 = vmatmul.mubr.bf16.vlgmr.msra.gmra.mrb[8].mxu1 %v7748_v22  ;;  %v6924_v22 = vld [vmem:[#allocation8 + $0x164] ss:$16 sps:$4 sm:$0xff]   ;;  %v7813_v44 = vpack.c.bf16 %v3557_v40, %v3557_v40  ;;  %v6964_v48 = vld [vmem:[#allocation8 + $0x320] ss:$16 sps:$4 sm:$0xff]  }
 0x239   :  { %3468 = vmatpush1.bf16.msra.mxu1 %v6272_v46  ;;  %3499 = vmatprep.mubr.bf16.mxu1 %v7752_v29  ;;  %v6296_v29 = vcombine.low %v421_v63, %v425_v0  ;;  %v481_v46 = vld [vmem:[#allocation5 + $0xab8] sm:$0xff] }
 0x23a   :  { %3469 = vmatprep.subr.bf16.mxu1 %v6281_v50  ;;  %v6353_v50 = vcombine.high %v477_v45, %v481_v46  ;;  %v493_v63 = vld [vmem:[#allocation5 + $0xb18] sm:$0xff] }
 0x23b   :  { %5148 = vmatpush1.bf16.msra.mxu0 %v6913_v47  ;;  %v6940_v47 = vld [vmem:[#allocation8 + $0x220] ss:$16 sps:$4 sm:$0xff]  }
 0x23c   :  { %5149 = vmatprep.subr.bf16.mxu0 %v6918_v51  ;;  %v6945_v51 = vld [vmem:[#allocation8 + $0x244] ss:$16 sps:$4 sm:$0xff]  }
 0x23d   :  { %3470 = vmatpush1.bf16.msra.mxu1 %v6280_v56  ;;  %v6352_v56 = vcombine.low %v477_v45, %v481_v46  ;;  %v497_v0 = vld [vmem:[#allocation5 + $0xb38] sm:$0xff] }
 0x23e   :  { %3471 = vmatprep.subr.bf16.mxu1 %v6289_v60  ;;  %v6361_v60 = vcombine.high %v485_v52, %v489_v17  ;;  %v517_v18 = vld [vmem:[#allocation5 + $0xbd8] sm:$0xff] }
 0x23f   :  { %5150 = vmatpush1.bf16.msra.mxu0 %v6916_v57  ;;  %v6943_v57 = vld [vmem:[#allocation8 + $0x240] ss:$16 sps:$4 sm:$0xff]  }
 0x240   :  { %5151 = vmatprep.subr.bf16.mxu0 %v6921_v61  ;;  %v6948_v61 = vld [vmem:[#allocation8 + $0x264] ss:$16 sps:$4 sm:$0xff]   ;;  %v6967_v46 = vld [vmem:[#allocation8 + $0x340] ss:$16 sps:$4 sm:$0xff]  }
 0x241   :  { %3472 = vmatpush1.bf16.msra.mxu1 %v6288_v2  ;;  %v6360_v2 = vcombine.low %v485_v52, %v489_v17  ;;  %v521_v19 = vld [vmem:[#allocation5 + $0xbf8] sm:$0xff] }
 0x242   :  { %3473 = vmatprep.subr.bf16.mxu1 %v6297_v62  ;;  %v6369_v62 = vcombine.high %v493_v63, %v497_v0  ;;  %v525_v27 = vld [vmem:[#allocation5 + $0xc18] sm:$0xff] }
 0x243   :  { %5152 = vmatpush1.bf16.msra.mxu0 %v6919_v3  ;;  %v6946_v3 = vld [vmem:[#allocation8 + $0x260] ss:$16 sps:$4 sm:$0xff]   ;;  %v6975_v17 = vld [vmem:[#allocation8 + $0x384] ss:$16 sps:$4 sm:$0xff]  }
 0x244   :  { %5153 = vmatprep.subr.bf16.mxu0 %v6924_v22  ;;  %v6951_v22 = vld [vmem:[#allocation8 + $0x284] ss:$16 sps:$4 sm:$0xff]  }
 0x245   :  { %3474 = vmatpush1.bf16.msra.mxu1 %v6296_v29  ;;  %v6368_v29 = vcombine.low %v493_v63, %v497_v0  ;;  %v529_v54 = vld [vmem:[#allocation5 + $0xc38] sm:$0xff]  ;;  %v602_v63 = vsub.s32 3, %v7787_v58 }
 0x246   :  { %3475 = vmatprep.subr.bf16.mxu1 %v6305_v10  ;;  %v6377_v10 = vcombine.high %v501_v5, %v505_v6  ;;  %v537_v33 = vld [vmem:[#allocation5 + $0xc78] sm:$0xff]  ;;  %v6400_v35 = vcombine.low %v525_v27, %v529_v54 }
 0x247   :  { %5154 = vmatpush1.bf16.msra.mxu0 %v6922_v7  ;;  %v6949_v7 = vld [vmem:[#allocation8 + $0x280] ss:$16 sps:$4 sm:$0xff]  }
 0x248   :  { %5155 = vmatprep.subr.bf16.mxu0 %v6927_v11  ;;  %v6954_v11 = vld [vmem:[#allocation8 + $0x2a4] ss:$16 sps:$4 sm:$0xff]   ;;  %v6973_v0 = vld [vmem:[#allocation8 + $0x380] ss:$16 sps:$4 sm:$0xff]  }
 0x249   :  { %3476 = vmatpush1.bf16.msra.mxu1 %v6304_v13  ;;  %v6376_v13 = vcombine.low %v501_v5, %v505_v6  ;;  %v541_v40 = vld [vmem:[#allocation5 + $0xc98] sm:$0xff]  ;;  %v603_v6 = vrot.slane %v7792_v8, %v602_v63 }
 0x24a   :  { %3477 = vmatprep.subr.bf16.mxu1 %v6313_v15  ;;  %v6385_v15 = vcombine.high %v509_v12, %v513_v23 }
 0x24b   :  { %5156 = vmatpush1.bf16.msra.mxu0 %v6925_v14  ;;  %v6952_v14 = vld [vmem:[#allocation8 + $0x2a0] ss:$16 sps:$4 sm:$0xff]  }
 0x24c   :  { %5157 = vmatprep.subr.bf16.mxu0 %v6930_v16  ;;  %v6957_v16 = vld [vmem:[#allocation8 + $0x2c4] ss:$16 sps:$4 sm:$0xff]  }
 0x24d   :  { %3478 = vmatpush1.bf16.msra.mxu1 %v6312_v21  ;;  %v6384_v21 = vcombine.low %v509_v12, %v513_v23  ;;  %v6981_v12 = vld [vmem:[#allocation8 + $0x3c4] ss:$16 sps:$4 sm:$0xff]  }
 0x24e   :  { %3479 = vmatprep.subr.bf16.mxu1 %v6321_v25  ;;  %v6393_v25 = vcombine.high %v517_v18, %v521_v19  ;;  %v581_v23 = vld [vmem:[#allocation5 + $0xdd8] sm:$0xff] }
 0x24f   :  { %5158 = vmatpush1.bf16.msra.mxu0 %v6928_v24  ;;  %v6955_v24 = vld [vmem:[#allocation8 + $0x2c0] ss:$16 sps:$4 sm:$0xff]  }
 0x250   :  { %5159 = vmatprep.subr.bf16.mxu0 %v6933_v26  ;;  %v6960_v26 = vld [vmem:[#allocation8 + $0x2e4] ss:$16 sps:$4 sm:$0xff]  }
 0x251   :  { %3480 = vmatpush1.bf16.msra.mxu1 %v6320_v28  ;;  %v6392_v28 = vcombine.low %v517_v18, %v521_v19 }
 0x252   :  { %3481 = vmatprep.subr.bf16.mxu1 %v6329_v30  ;;  %v6401_v30 = vcombine.high %v525_v27, %v529_v54  ;;  %v6984_v27 = vld [vmem:[#allocation8 + $0x3e4] ss:$16 sps:$4 sm:$0xff]  }
 0x253   :  { %5160 = vmatpush1.bf16.msra.mxu0 %v6931_v55  ;;  %v6958_v55 = vld [vmem:[#allocation8 + $0x2e0] ss:$16 sps:$4 sm:$0xff]  }
 0x254   :  { %5161 = vmatprep.subr.bf16.mxu0 %v6936_v32  ;;  %v533_v32 = vld [vmem:[#allocation5 + $0xc58] sm:$0xff] }
 0x255   :  { %3482 = vmatpush1.bf16.msra.mxu1 %v6328_v36  ;;  %v6961_v36 = vld [vmem:[#allocation8 + $0x300] ss:$16 sps:$4 sm:$0xff]   ;;  %v6408_v42 = vcombine.low %v533_v32, %v537_v33 }
 0x256   :  { %3483 = vmatprep.subr.bf16.mxu1 %v6337_v39  ;;  %v6966_v39 = vld [vmem:[#allocation8 + $0x324] ss:$16 sps:$4 sm:$0xff]  }
 0x257   :  { %5162 = vmatpush1.bf16.msra.mxu0 %v6934_v38  ;;  %v6409_v38 = vcombine.high %v533_v32, %v537_v33  ;;  %v7011_v33 = vld [vmem:[#allocation8 + $0x404] ss:$16 sps:$4 sm:$0xff]  }
 0x258   :  { %5172 = vmatprep.subr.bf16.mxu0 %v6939_v41  ;;  %v545_v41 = vld [vmem:[#allocation5 + $0xcb8] sm:$0xff] }
 0x259   :  { %3484 = vmatpush1.bf16.msra.mxu1 %v6336_v43  ;;  %v6417_v43 = vcombine.high %v541_v40, %v545_v41  ;;  %v6416_v45 = vcombine.low %v541_v40, %v545_v41  ;;  %v7374_v40 = vld [vmem:[#allocation3 + $0x18] ss:$0 sps:$4 sm:$0xff]  }
 0x25a   :  { %5164 = vmatmul.mubr.bf16.vlgmr.msra.gmra.mrb[8].mxu0 %v7813_v44  ;;  %3485 = vmatprep.subr.bf16.mxu1 %v6345_v59  ;;  %v549_v59 = vld [vmem:[#allocation5 + $0xcd8] sm:$0xff] }
 0x25b   :  { %5173 = vmatpush1.bf16.msra.mxu0 %v6937_v20  ;;  %v6969_v20 = vld [vmem:[#allocation8 + $0x344] ss:$16 sps:$4 sm:$0xff]  }
 0x25c   :  { %5174 = vmatprep.subr.bf16.mxu0 %v6942_v53  ;;  %v553_v53 = vld [vmem:[#allocation5 + $0xcf8] sm:$0xff] }
 0x25d   :  { %3486 = vmatpush1.bf16.msra.mxu1 %v6344_v37  ;;  %v6425_v37 = vcombine.high %v549_v59, %v553_v53  ;;  %v7017_v41 = vld [vmem:[#allocation8 + $0x424] ss:$16 sps:$4 sm:$0xff]  }
 0x25e   :  { %3487 = vmatprep.subr.bf16.mxu1 %v6353_v50  ;;  %v561_v50 = vld [vmem:[#allocation5 + $0xd38] sm:$0xff] }
 0x25f   :  { %5175 = vmatpush1.bf16.msra.mxu0 %v6940_v47  ;;  %v557_v47 = vld [vmem:[#allocation5 + $0xd18] sm:$0xff] }
 0x260   :  { %5176 = vmatprep.subr.bf16.mxu0 %v6945_v51  ;;  %v6970_v51 = vld [vmem:[#allocation8 + $0x360] ss:$16 sps:$4 sm:$0xff]   ;;  %v6433_v52 = vcombine.high %v557_v47, %v561_v50 }
 0x261   :  { %3488 = vmatpush1.bf16.msra.mxu1 %v6352_v56  ;;  %v565_v56 = vld [vmem:[#allocation5 + $0xd58] sm:$0xff] }
 0x262   :  { %3489 = vmatprep.subr.bf16.mxu1 %v6361_v60  ;;  %v7819_v60 = vsub.s32 2, %v7787_v58 }
 0x263   :  { %5177 = vmatpush1.bf16.msra.mxu0 %v6943_v57  ;;  %v569_v57 = vld [vmem:[#allocation5 + $0xd78] sm:$0xff] }
 0x264   :  { %5178 = vmatprep.subr.bf16.mxu0 %v6948_v61  ;;  %v6432_v61 = vcombine.low %v557_v47, %v561_v50  ;;  %v599_v5 = vrot.slane %v7792_v8, %v7819_v60  ;;  %v6979_v8 = vld [vmem:[#allocation8 + $0x3c0] ss:$16 sps:$4 sm:$0xff]   ;;  %v7035_v47 = vld [vmem:[#allocation8 + $0x484] ss:$16 sps:$4 sm:$0xff]   ;;  %v6997_v50 = vld [vmem:[#allocation8 + $0x88] ss:$16 sps:$4 sm:$0xff]  }
 0x265   :  { %3490 = vmatpush1.bf16.msra.mxu1 %v6360_v2  ;;  %v6441_v2 = vcombine.high %v565_v56, %v569_v57 }
 0x266   :  { %3491 = vmatprep.subr.bf16.mxu1 %v6369_v62  ;;  %v573_v62 = vld [vmem:[#allocation5 + $0xd98] sm:$0xff] }
 0x267   :  { %5179 = vmatpush1.bf16.msra.mxu0 %v6946_v3  ;;  %v6978_v3 = vld [vmem:[#allocation8 + $0x3a4] ss:$16 sps:$4 sm:$0xff]  }
 0x268   :  { %5180 = vmatprep.subr.bf16.mxu0 %v6951_v22  ;;  %v577_v22 = vld [vmem:[#allocation5 + $0xdb8] sm:$0xff] }
 0x269   :  { %3492 = vmatpush1.bf16.msra.mxu1 %v6368_v29  ;;  %v6440_v29 = vcombine.low %v565_v56, %v569_v57  ;;  %v6448_v19 = vcombine.low %v573_v62, %v577_v22  ;;  %v7005_v56 = vld [vmem:[#allocation8 + $0xcc] ss:$16 sps:$4 sm:$0xff]   ;;  %v7039_v57 = vld [vmem:[#allocation8 + $0x4a0] ss:$16 sps:$4 sm:$0xff]  }
 0x26a   :  { %3493 = vmatprep.subr.bf16.mxu1 %v6377_v10  ;;  %v6449_v10 = vcombine.high %v573_v62, %v577_v22  ;;  %v7053_v62 = vld [vmem:[#allocation8 + $0x4e4] ss:$16 sps:$4 sm:$0xff]   ;;  %v7006_v22 = vld [vmem:[#allocation8 + $0xe8] ss:$16 sps:$4 sm:$0xff]  }
 0x26b   :  { %5181 = vmatpush1.bf16.msra.mxu0 %v6949_v7  ;;  %v6976_v7 = vld [vmem:[#allocation8 + $0x3a0] ss:$16 sps:$4 sm:$0xff]  }
 0x26c   :  { %5182 = vmatprep.subr.bf16.mxu0 %v6954_v11 }
 0x26d   :  { %3494 = vmatpush1.bf16.msra.mxu1 %v6376_v13  ;;  %v585_v13 = vld [vmem:[#allocation5 + $0xdf8] sm:$0xff] }
 0x26e   :  { %3495 = vmatprep.subr.bf16.mxu1 %v6385_v15 }
 0x26f   :  { %5183 = vmatpush1.bf16.msra.mxu0 %v6952_v14 }
 0x270   :  { %5184 = vmatprep.subr.bf16.mxu0 %v6957_v16 }
 0x271   :  { %3496 = vmatpush1.bf16.msra.mxu1 %v6384_v21 }
 0x272   :  { %3497 = vmatprep.subr.bf16.mxu1 %v6393_v25 }
 0x273   :  { %5185 = vmatpush1.bf16.msra.mxu0 %v6955_v24  ;;  %v6457_v24 = vcombine.high %v581_v23, %v585_v13 }
 0x274   :  { %5186 = vmatprep.subr.bf16.mxu0 %v6960_v26 }
 0x275   :  { %3498 = vmatpush1.bf16.msra.mxu1 %v6392_v28  ;;  %v6456_v28 = vcombine.low %v581_v23, %v585_v13  ;;  %v7018_v23 = vld [vmem:[#allocation8 + $0x128] ss:$16 sps:$4 sm:$0xff]   ;;  %v7026_v13 = vld [vmem:[#allocation8 + $0x14c] ss:$16 sps:$4 sm:$0xff]  }
 0x276   :  { %3508 = vmatprep.subr.bf16.mxu1 %v6401_v30  ;;  %v6987_v30 = vld [vmem:[#allocation8 + $0xc] ss:$16 sps:$4 sm:$0xff]  }
 0x277   :  { %5187 = vmatpush1.bf16.msra.mxu0 %v6958_v55  ;;  %v6982_v55 = vld [vmem:[#allocation8 + $0x3e0] ss:$16 sps:$4 sm:$0xff]  }
 0x278   :  { %5188 = vmatprep.subr.bf16.mxu0 %v6963_v31  ;;  %3500 = vmatmul.mubr.bf16.vlgmr.msra.gmra.mrb[8].mxu1 %v7760_v34  ;;  %v6972_v34 = vld [vmem:[#allocation8 + $0x364] ss:$16 sps:$4 sm:$0xff]  }
 0x279   :  { %3509 = vmatpush1.bf16.msra.mxu1 %v6400_v35  ;;  %3540 = vmatprep.mubr.bf16.mxu1 %v7576_v49  ;;  %v6424_v49 = vcombine.low %v549_v59, %v553_v53  ;;  %v6985_v35 = vld [vmem:[#allocation8 + $0x8] ss:$16 sps:$4 sm:$0xff]   ;;  %v6996_v53 = vld [vmem:[#allocation8 + $0x6c] ss:$16 sps:$4 sm:$0xff]  }
 0x27a   :  { %3510 = vmatprep.subr.bf16.mxu1 %v6409_v38  ;;  %v6991_v59 = vld [vmem:[#allocation8 + $0x48] ss:$16 sps:$4 sm:$0xff]  }
 0x27b   :  { %5189 = vmatpush1.bf16.msra.mxu0 %v6961_v36  ;;  %v6990_v36 = vld [vmem:[#allocation8 + $0x2c] ss:$16 sps:$4 sm:$0xff]  }
 0x27c   :  { %5190 = vmatprep.subr.bf16.mxu0 %v6966_v39  ;;  %v7009_v39 = vld [vmem:[#allocation8 + $0x400] ss:$16 sps:$4 sm:$0xff]  }
 0x27d   :  { %3511 = vmatpush1.bf16.msra.mxu1 %v6408_v42  ;;  %v6988_v42 = vld [vmem:[#allocation8 + $0x28] ss:$16 sps:$4 sm:$0xff]  }
 0x27e   :  { %3512 = vmatprep.subr.bf16.mxu1 %v6417_v43  ;;  %v7015_v43 = vld [vmem:[#allocation8 + $0x420] ss:$16 sps:$4 sm:$0xff]  }
 0x27f   :  { %5191 = vmatpush1.bf16.msra.mxu0 %v6964_v48  ;;  %v6993_v48 = vld [vmem:[#allocation8 + $0x4c] ss:$16 sps:$4 sm:$0xff]  }
 0x280   :  { %5192 = vmatprep.subr.bf16.mxu0 %v6969_v20  ;;  %v7023_v20 = vld [vmem:[#allocation8 + $0x444] ss:$16 sps:$4 sm:$0xff]  }
 0x281   :  { %3513 = vmatpush1.bf16.msra.mxu1 %v6416_v45  ;;  %v7021_v45 = vld [vmem:[#allocation8 + $0x440] ss:$16 sps:$4 sm:$0xff]  }
 0x282   :  { %3514 = vmatprep.subr.bf16.mxu1 %v6425_v37  ;;  %v6994_v37 = vld [vmem:[#allocation8 + $0x68] ss:$16 sps:$4 sm:$0xff]  }
 0x283   :  { %5193 = vmatpush1.bf16.msra.mxu0 %v6967_v46  ;;  %v7029_v46 = vld [vmem:[#allocation8 + $0x464] ss:$16 sps:$4 sm:$0xff]  }
 0x284   :  { %5194 = vmatprep.subr.bf16.mxu0 %v6972_v34  ;;  %v6999_v34 = vld [vmem:[#allocation8 + $0x8c] ss:$16 sps:$4 sm:$0xff]  }
 0x285   :  { %3515 = vmatpush1.bf16.msra.mxu1 %v6424_v49  ;;  %v7002_v49 = vld [vmem:[#allocation8 + $0xac] ss:$16 sps:$4 sm:$0xff]  }
 0x286   :  { %3516 = vmatprep.subr.bf16.mxu1 %v6433_v52  ;;  %v7041_v52 = vld [vmem:[#allocation8 + $0x4a4] ss:$16 sps:$4 sm:$0xff]  }
 0x287   :  { %5195 = vmatpush1.bf16.msra.mxu0 %v6970_v51  ;;  %v7033_v51 = vld [vmem:[#allocation8 + $0x480] ss:$16 sps:$4 sm:$0xff]  }
 0x288   :  { %5196 = vmatprep.subr.bf16.mxu0 %v6975_v17  ;;  %v7000_v17 = vld [vmem:[#allocation8 + $0xa8] ss:$16 sps:$4 sm:$0xff]  }
 0x289   :  { %3517 = vmatpush1.bf16.msra.mxu1 %v6432_v61  ;;  %v7047_v61 = vld [vmem:[#allocation8 + $0x4c4] ss:$16 sps:$4 sm:$0xff]  }
 0x28a   :  { %3518 = vmatprep.subr.bf16.mxu1 %v6441_v2  ;;  %v7008_v2 = vld [vmem:[#allocation8 + $0xec] ss:$16 sps:$4 sm:$0xff]  }
 0x28b   :  { %5197 = vmatpush1.bf16.msra.mxu0 %v6973_v0  ;;  %v3214_v11 = vpop.f32.mrb[4].mxu1  ;;  %v7003_v0 = vld [vmem:[#allocation8 + $0xc8] ss:$16 sps:$4 sm:$0xff]  }
 0x28c   :  { %5198 = vmatprep.subr.bf16.mxu0 %v6978_v3  ;;  %v6783_v14 = vadd.f32 %v3214_v11, %v599_v5  ;;  %v3216_v15 = vpop.f32.mrb[5].mxu1  ;;  %v7045_v3 = vld [vmem:[#allocation8 + $0x4c0] ss:$16 sps:$4 sm:$0xff]   ;;  %v7014_v5 = vld [vmem:[#allocation8 + $0x10c] ss:$16 sps:$4 sm:$0xff]  }
 0x28d   :  { %v6784_v16 = vadd.f32 %v3216_v15, %v603_v6  ;;  %v3218_v18 = vpop.f32.mrb[6].mxu1  ;;  %3519 = vmatpush1.bf16.msra.mxu1 %v6440_v29  ;;  %v7051_v6 = vld [vmem:[#allocation8 + $0x4e0] ss:$16 sps:$4 sm:$0xff]   ;;  %v7059_v29 = vld [vmem:[#allocation8 + $0x504] ss:$16 sps:$4 sm:$0xff]  }
 0x28e   :  { %v3219_v21 = vpop.f32.mrb[7].mxu1  ;;  %3520 = vmatprep.subr.bf16.mxu1 %v6449_v10  ;;  %v3551_v25 = vmul.f32 0.2, %v6783_v14  ;;  %v7020_v10 = vld [vmem:[#allocation8 + $0x12c] ss:$16 sps:$4 sm:$0xff]  }
 0x28f   :  { %5199 = vmatpush1.bf16.msra.mxu0 %v6976_v7  ;;  %v3552_v26 = vmul.f32 0.2, %v6784_v16  ;;  %v7012_v7 = vld [vmem:[#allocation8 + $0x108] ss:$16 sps:$4 sm:$0xff]   ;;  %v7057_v11 = vld [vmem:[#allocation8 + $0x500] ss:$16 sps:$4 sm:$0xff]  }
 0x290   :  { %5200 = vmatprep.subr.bf16.mxu0 %v6981_v12  ;;  %v3559_v31 = vmax.f32 %v6783_v14, %v3551_v25  ;;  %v7065_v12 = vld [vmem:[#allocation8 + $0x524] ss:$16 sps:$4 sm:$0xff]   ;;  %v7063_v14 = vld [vmem:[#allocation8 + $0x520] ss:$16 sps:$4 sm:$0xff]   ;;  %v7032_v18 = vld [vmem:[#allocation8 + $0x16c] ss:$16 sps:$4 sm:$0xff]  }
 0x291   :  { %v3560_v54 = vmax.f32 %v6784_v16, %v3552_v26  ;;  %3521 = vmatpush1.bf16.msra.mxu1 %v6448_v19  ;;  %v7071_v15 = vld [vmem:[#allocation8 + $0x544] ss:$16 sps:$4 sm:$0xff]   ;;  %v7024_v16 = vld [vmem:[#allocation8 + $0x148] ss:$16 sps:$4 sm:$0xff]   ;;  %v7069_v19 = vld [vmem:[#allocation8 + $0x540] ss:$16 sps:$4 sm:$0xff]  }
 0x292   :  { %3522 = vmatprep.subr.bf16.mxu1 %v6457_v24  ;;  %v7830_v38 = vpack.c.bf16 %v3559_v31, %v3559_v31  ;;  %v7077_v21 = vld [vmem:[#allocation8 + $0x564] ss:$16 sps:$4 sm:$0xff]   ;;  %v7038_v24 = vld [vmem:[#allocation8 + $0x18c] ss:$16 sps:$4 sm:$0xff]   ;;  %v7075_v25 = vld [vmem:[#allocation8 + $0x560] ss:$16 sps:$4 sm:$0xff]  }
 0x293   :  { %5201 = vmatpush1.bf16.msra.mxu0 %v6979_v8  ;;  %v7827_v32 = vpack.c.bf16 %v3560_v54, %v3560_v54  ;;  %v7030_v8 = vld [vmem:[#allocation8 + $0x168] ss:$16 sps:$4 sm:$0xff]   ;;  %v7083_v26 = vld [vmem:[#allocation8 + $0x584] ss:$16 sps:$4 sm:$0xff]   ;;  %v7044_v54 = vld [vmem:[#allocation8 + $0x1ac] ss:$16 sps:$4 sm:$0xff]  }
 0x294   :  { %5202 = vmatprep.subr.bf16.mxu0 %v6984_v27  ;;  %v7036_v27 = vld [vmem:[#allocation8 + $0x188] ss:$16 sps:$4 sm:$0xff]   ;;  %v7050_v31 = vld [vmem:[#allocation8 + $0x1cc] ss:$16 sps:$4 sm:$0xff]  }
 0x295   :  { %3523 = vmatpush1.bf16.msra.mxu1 %v6456_v28  ;;  %5204 = vmatprep.mubr.bf16.mxu0 %v7827_v32  ;;  %v7081_v28 = vld [vmem:[#allocation8 + $0x580] ss:$16 sps:$4 sm:$0xff]  }
 0x296   :  { %5295 = vmatprep.subr.bf16.mxu1 %v6987_v30  ;;  %v7042_v30 = vld [vmem:[#allocation8 + $0x1a8] ss:$16 sps:$4 sm:$0xff]  }
 0x297   :  { %5203 = vmatpush1.bf16.msra.mxu0 %v6982_v55  ;;  %v7089_v55 = vld [vmem:[#allocation8 + $0x5a4] ss:$16 sps:$4 sm:$0xff]  }
 0x298   :  { %5213 = vmatprep.subr.bf16.mxu0 %v7011_v33  ;;  %3541 = vmatmul.mubr.bf16.vlgmr.msra.gmra.mrb[8].mxu1 %v7374_v40  ;;  %v7087_v33 = vld [vmem:[#allocation8 + $0x5a0] ss:$16 sps:$4 sm:$0xff]  }
 0x299   :  { %5296 = vmatpush1.bf16.msra.mxu1 %v6985_v35  ;;  %5327 = vmatprep.mubr.bf16.mxu1 %v7805_v1  ;;  %v7027_v1 = vld [vmem:[#allocation8 + $0x460] ss:$16 sps:$4 sm:$0xff]   ;;  %v7095_v35 = vld [vmem:[#allocation8 + $0x5c4] ss:$16 sps:$4 sm:$0xff]  }
 0x29a   :  { %5205 = vmatmul.mubr.bf16.vlgmr.msra.gmra.mrb[8].mxu0 %v7830_v38  ;;  %5297 = vmatprep.subr.bf16.mxu1 %v6990_v36  ;;  %v7048_v36 = vld [vmem:[#allocation8 + $0x1c8] ss:$16 sps:$4 sm:$0xff]   ;;  %v7093_v40 = vld [vmem:[#allocation8 + $0x5c0] ss:$16 sps:$4 sm:$0xff]  }
 0x29b   :  { %5214 = vmatpush1.bf16.msra.mxu0 %v7009_v39  ;;  %v7056_v39 = vld [vmem:[#allocation8 + $0x1ec] ss:$16 sps:$4 sm:$0xff]  }
 0x29c   :  { %5215 = vmatprep.subr.bf16.mxu0 %v7017_v41  ;;  %v7101_v41 = vld [vmem:[#allocation8 + $0x5e4] ss:$16 sps:$4 sm:$0xff]  }
 0x29d   :  { %5298 = vmatpush1.bf16.msra.mxu1 %v6988_v42  ;;  %v7054_v42 = vld [vmem:[#allocation8 + $0x1e8] ss:$16 sps:$4 sm:$0xff]  }
 0x29e   :  { %5299 = vmatprep.subr.bf16.mxu1 %v6993_v48  ;;  %v7062_v48 = vld [vmem:[#allocation8 + $0x20c] ss:$16 sps:$4 sm:$0xff]  }
 0x29f   :  { %5216 = vmatpush1.bf16.msra.mxu0 %v7015_v43  ;;  %v7099_v43 = vld [vmem:[#allocation8 + $0x5e0] ss:$16 sps:$4 sm:$0xff]  }
 0x2a0   :  { %5217 = vmatprep.subr.bf16.mxu0 %v7023_v20  ;;  %v7155_v20 = vld [vmem:[#allocation8 + $0x604] ss:$16 sps:$4 sm:$0xff]  }
 0x2a1   :  { %5300 = vmatpush1.bf16.msra.mxu1 %v6991_v59  ;;  %v7060_v59 = vld [vmem:[#allocation8 + $0x208] ss:$16 sps:$4 sm:$0xff]  }
 0x2a2   :  { %5301 = vmatprep.subr.bf16.mxu1 %v6996_v53  ;;  %v7068_v53 = vld [vmem:[#allocation8 + $0x22c] ss:$16 sps:$4 sm:$0xff]  }
 0x2a3   :  { %5218 = vmatpush1.bf16.msra.mxu0 %v7021_v45  ;;  %v7066_v45 = vld [vmem:[#allocation8 + $0x228] ss:$16 sps:$4 sm:$0xff]  }
 0x2a4   :  { %5219 = vmatprep.subr.bf16.mxu0 %v7029_v46  ;;  %v7074_v46 = vld [vmem:[#allocation8 + $0x24c] ss:$16 sps:$4 sm:$0xff]  }
 0x2a5   :  { %5302 = vmatpush1.bf16.msra.mxu1 %v6994_v37  ;;  %v7072_v37 = vld [vmem:[#allocation8 + $0x248] ss:$16 sps:$4 sm:$0xff]  }
 0x2a6   :  { %5303 = vmatprep.subr.bf16.mxu1 %v6999_v34  ;;  %v7080_v34 = vld [vmem:[#allocation8 + $0x26c] ss:$16 sps:$4 sm:$0xff]  }
 0x2a7   :  { %5220 = vmatpush1.bf16.msra.mxu0 %v7027_v1  ;;  %v7078_v1 = vld [vmem:[#allocation8 + $0x268] ss:$16 sps:$4 sm:$0xff]  }
 0x2a8   :  { %5221 = vmatprep.subr.bf16.mxu0 %v7035_v47  ;;  %v7086_v47 = vld [vmem:[#allocation8 + $0x28c] ss:$16 sps:$4 sm:$0xff]  }
 0x2a9   :  { %5304 = vmatpush1.bf16.msra.mxu1 %v6997_v50  ;;  %v7084_v50 = vld [vmem:[#allocation8 + $0x288] ss:$16 sps:$4 sm:$0xff]  }
 0x2aa   :  { %5305 = vmatprep.subr.bf16.mxu1 %v7002_v49  ;;  %v606_v49 = vsub.s32 4, %v7787_v58 }
 0x2ab   :  { %5222 = vmatpush1.bf16.msra.mxu0 %v7033_v51  ;;  %v7092_v51 = vld [vmem:[#allocation8 + $0x2ac] ss:$16 sps:$4 sm:$0xff]  }
 0x2ac   :  { %5223 = vmatprep.subr.bf16.mxu0 %v7041_v52 }
 0x2ad   :  { %5306 = vmatpush1.bf16.msra.mxu1 %v7000_v17  ;;  %v7090_v17 = vld [vmem:[#allocation8 + $0x2a8] ss:$16 sps:$4 sm:$0xff]  }
 0x2ae   :  { %5307 = vmatprep.subr.bf16.mxu1 %v7005_v56 }
 0x2af   :  { %5224 = vmatpush1.bf16.msra.mxu0 %v7039_v57  ;;  %v7098_v57 = vld [vmem:[#allocation8 + $0x2cc] ss:$16 sps:$4 sm:$0xff]  }
 0x2b0   :  { %5225 = vmatprep.subr.bf16.mxu0 %v7047_v61 }
 0x2b1   :  { %5308 = vmatpush1.bf16.msra.mxu1 %v7003_v0 }
 0x2b2   :  { %5309 = vmatprep.subr.bf16.mxu1 %v7008_v2 }
 0x2b3   :  { %5226 = vmatpush1.bf16.msra.mxu0 %v7045_v3  ;;  %v7096_v3 = vld [vmem:[#allocation8 + $0x2c8] ss:$16 sps:$4 sm:$0xff]  }
 0x2b4   :  { %5227 = vmatprep.subr.bf16.mxu0 %v7053_v62 }
 0x2b5   :  { %5310 = vmatpush1.bf16.msra.mxu1 %v7006_v22 }
 0x2b6   :  { %5311 = vmatprep.subr.bf16.mxu1 %v7014_v5  ;;  %v7104_v5 = vld [vmem:[#allocation8 + $0x2ec] ss:$16 sps:$4 sm:$0xff]  }
 0x2b7   :  { %5228 = vmatpush1.bf16.msra.mxu0 %v7051_v6 }
 0x2b8   :  { %5229 = vmatprep.subr.bf16.mxu0 %v7059_v29 }
 0x2b9   :  { %5312 = vmatpush1.bf16.msra.mxu1 %v7012_v7 }
 0x2ba   :  { %5313 = vmatprep.subr.bf16.mxu1 %v7020_v10 }
 0x2bb   :  { %5230 = vmatpush1.bf16.msra.mxu0 %v7057_v11  ;;  %v7102_v11 = vld [vmem:[#allocation8 + $0x2e8] ss:$16 sps:$4 sm:$0xff]  }
 0x2bc   :  { %5231 = vmatprep.subr.bf16.mxu0 %v7065_v12 }
 0x2bd   :  { %5314 = vmatpush1.bf16.msra.mxu1 %v7018_v23  ;;  %v7107_v23 = vld [vmem:[#allocation8 + $0x30c] ss:$16 sps:$4 sm:$0xff]  }
 0x2be   :  { %5315 = vmatprep.subr.bf16.mxu1 %v7026_v13 }
 0x2bf   :  { %5232 = vmatpush1.bf16.msra.mxu0 %v7063_v14  ;;  %v7153_v14 = vld [vmem:[#allocation8 + $0x600] ss:$16 sps:$4 sm:$0xff]  }
 0x2c0   :  { %5233 = vmatprep.subr.bf16.mxu0 %v7071_v15 }
 0x2c1   :  { %5316 = vmatpush1.bf16.msra.mxu1 %v7024_v16  ;;  %v7105_v16 = vld [vmem:[#allocation8 + $0x308] ss:$16 sps:$4 sm:$0xff]  }
 0x2c2   :  { %5317 = vmatprep.subr.bf16.mxu1 %v7032_v18  ;;  %v7161_v18 = vld [vmem:[#allocation8 + $0x624] ss:$16 sps:$4 sm:$0xff]  }
 0x2c3   :  { %5234 = vmatpush1.bf16.msra.mxu0 %v7069_v19  ;;  %v7110_v19 = vld [vmem:[#allocation8 + $0x32c] ss:$16 sps:$4 sm:$0xff]  }
 0x2c4   :  { %5235 = vmatprep.subr.bf16.mxu0 %v7077_v21  ;;  %v7159_v21 = vld [vmem:[#allocation8 + $0x620] ss:$16 sps:$4 sm:$0xff]  }
 0x2c5   :  { %5318 = vmatpush1.bf16.msra.mxu1 %v7030_v8  ;;  %v7108_v8 = vld [vmem:[#allocation8 + $0x328] ss:$16 sps:$4 sm:$0xff]  }
 0x2c6   :  { %5319 = vmatprep.subr.bf16.mxu1 %v7038_v24  ;;  %v7167_v24 = vld [vmem:[#allocation8 + $0x644] ss:$16 sps:$4 sm:$0xff]  }
 0x2c7   :  { %5236 = vmatpush1.bf16.msra.mxu0 %v7075_v25  ;;  %v7113_v25 = vld [vmem:[#allocation8 + $0x34c] ss:$16 sps:$4 sm:$0xff]  }
 0x2c8   :  { %5237 = vmatprep.subr.bf16.mxu0 %v7083_v26  ;;  %v7165_v26 = vld [vmem:[#allocation8 + $0x640] ss:$16 sps:$4 sm:$0xff]  }
 0x2c9   :  { %5320 = vmatpush1.bf16.msra.mxu1 %v7036_v27  ;;  %v7111_v27 = vld [vmem:[#allocation8 + $0x348] ss:$16 sps:$4 sm:$0xff]  }
 0x2ca   :  { %5321 = vmatprep.subr.bf16.mxu1 %v7044_v54  ;;  %v7173_v54 = vld [vmem:[#allocation8 + $0x664] ss:$16 sps:$4 sm:$0xff]  }
 0x2cb   :  { %5238 = vmatpush1.bf16.msra.mxu0 %v7081_v28  ;;  %v7116_v28 = vld [vmem:[#allocation8 + $0x36c] ss:$16 sps:$4 sm:$0xff]  }
 0x2cc   :  { %5239 = vmatprep.subr.bf16.mxu0 %v7089_v55  ;;  %v7171_v55 = vld [vmem:[#allocation8 + $0x660] ss:$16 sps:$4 sm:$0xff]  }
 0x2cd   :  { %5322 = vmatpush1.bf16.msra.mxu1 %v7042_v30  ;;  %v7114_v30 = vld [vmem:[#allocation8 + $0x368] ss:$16 sps:$4 sm:$0xff]  }
 0x2ce   :  { %5323 = vmatprep.subr.bf16.mxu1 %v7050_v31  ;;  %v7179_v31 = vld [vmem:[#allocation8 + $0x684] ss:$16 sps:$4 sm:$0xff]  }
 0x2cf   :  { %5240 = vmatpush1.bf16.msra.mxu0 %v7087_v33  ;;  %v7119_v33 = vld [vmem:[#allocation8 + $0x38c] ss:$16 sps:$4 sm:$0xff]  }
 0x2d0   :  { %5241 = vmatprep.subr.bf16.mxu0 %v7095_v35  ;;  %v7177_v35 = vld [vmem:[#allocation8 + $0x680] ss:$16 sps:$4 sm:$0xff]  }
 0x2d1   :  { %5324 = vmatpush1.bf16.msra.mxu1 %v7048_v36  ;;  %v7117_v36 = vld [vmem:[#allocation8 + $0x388] ss:$16 sps:$4 sm:$0xff]  }
 0x2d2   :  { %5325 = vmatprep.subr.bf16.mxu1 %v7056_v39  ;;  %v7185_v39 = vld [vmem:[#allocation8 + $0x6a4] ss:$16 sps:$4 sm:$0xff]  }
 0x2d3   :  { %5242 = vmatpush1.bf16.msra.mxu0 %v7093_v40  ;;  %v7122_v40 = vld [vmem:[#allocation8 + $0x3ac] ss:$16 sps:$4 sm:$0xff]  }
 0x2d4   :  { %5243 = vmatprep.subr.bf16.mxu0 %v7101_v41  ;;  %v7183_v41 = vld [vmem:[#allocation8 + $0x6a0] ss:$16 sps:$4 sm:$0xff]  }
 0x2d5   :  { %5326 = vmatpush1.bf16.msra.mxu1 %v7054_v42  ;;  %v7120_v42 = vld [vmem:[#allocation8 + $0x3a8] ss:$16 sps:$4 sm:$0xff]  }
 0x2d6   :  { %5336 = vmatprep.subr.bf16.mxu1 %v7062_v48  ;;  %v7191_v48 = vld [vmem:[#allocation8 + $0x6c4] ss:$16 sps:$4 sm:$0xff]  }
 0x2d7   :  { %5244 = vmatpush1.bf16.msra.mxu0 %v7099_v43  ;;  %v7125_v43 = vld [vmem:[#allocation8 + $0x3cc] ss:$16 sps:$4 sm:$0xff]  }
 0x2d8   :  { %5328 = vmatmul.mubr.bf16.vlgmr.msra.gmra.mrb[12].mxu1 %v7813_v44  ;;  %5254 = vmatprep.subr.bf16.mxu0 %v7155_v20  ;;  %v610_v44 = vsub.s32 5, %v7787_v58  ;;  %v7189_v20 = vld [vmem:[#allocation8 + $0x6c0] ss:$16 sps:$4 sm:$0xff]  }
 0x2d9   :  { %5337 = vmatpush1.bf16.msra.mxu1 %v7060_v59  ;;  %5368 = vmatprep.mubr.bf16.mxu1 %v7827_v32  ;;  %v7838_v32 = vld [vmem:[#allocation7] sm:$0xff] }
 0x2da   :  { %5338 = vmatprep.subr.bf16.mxu1 %v7068_v53  ;;  %v607_v52 = vrot.slane %v7838_v32, %v606_v49  ;;  %v611_v56 = vrot.slane %v7838_v32, %v610_v44  ;;  %v7123_v59 = vld [vmem:[#allocation8 + $0x3c8] ss:$16 sps:$4 sm:$0xff]   ;;  %v7197_v53 = vld [vmem:[#allocation8 + $0x6e4] ss:$16 sps:$4 sm:$0xff]   ;;  %v7134_v49 = vld [vmem:[#allocation8 + $0x42c] ss:$16 sps:$4 sm:$0xff]  }
 0x2db   :  { %v7209_v44 = vld [vmem:[#allocation8 + $0x724] ss:$16 sps:$4 sm:$0xff]  }
 0x2dd   :  { %5339 = vmatpush1.bf16.msra.mxu1 %v7066_v45  ;;  %v7128_v45 = vld [vmem:[#allocation8 + $0x3ec] ss:$16 sps:$4 sm:$0xff]  }
 0x2de   :  { %5340 = vmatprep.subr.bf16.mxu1 %v7074_v46  ;;  %v7195_v46 = vld [vmem:[#allocation8 + $0x6e0] ss:$16 sps:$4 sm:$0xff]  }
 0x2e1   :  { %5341 = vmatpush1.bf16.msra.mxu1 %v7072_v37  ;;  %v7126_v37 = vld [vmem:[#allocation8 + $0x3e8] ss:$16 sps:$4 sm:$0xff]  }
 0x2e2   :  { %5342 = vmatprep.subr.bf16.mxu1 %v7080_v34  ;;  %v7203_v34 = vld [vmem:[#allocation8 + $0x704] ss:$16 sps:$4 sm:$0xff]  }
 0x2e5   :  { %5343 = vmatpush1.bf16.msra.mxu1 %v7078_v1  ;;  %v7131_v1 = vld [vmem:[#allocation8 + $0x40c] ss:$16 sps:$4 sm:$0xff]  }
 0x2e6   :  { %5344 = vmatprep.subr.bf16.mxu1 %v7086_v47  ;;  %v7201_v47 = vld [vmem:[#allocation8 + $0x700] ss:$16 sps:$4 sm:$0xff]  }
 0x2e9   :  { %5345 = vmatpush1.bf16.msra.mxu1 %v7084_v50  ;;  %v7129_v50 = vld [vmem:[#allocation8 + $0x408] ss:$16 sps:$4 sm:$0xff]  }
 0x2ea   :  { %5346 = vmatprep.subr.bf16.mxu1 %v7092_v51  ;;  %v7207_v51 = vld [vmem:[#allocation8 + $0x720] ss:$16 sps:$4 sm:$0xff]  }
 0x2ed   :  { %v3378_v61 = vpop.f32.mrb[4].mxu0  ;;  %5347 = vmatpush1.bf16.msra.mxu1 %v7090_v17  ;;  %v7215_v17 = vld [vmem:[#allocation8 + $0x744] ss:$16 sps:$4 sm:$0xff]  }
 0x2ee   :  { %v6785_v0 = vadd.f32 %v3378_v61, %v607_v52  ;;  %v3380_v2 = vpop.f32.mrb[5].mxu0  ;;  %5348 = vmatprep.subr.bf16.mxu1 %v7098_v57  ;;  %v7132_v52 = vld [vmem:[#allocation8 + $0x428] ss:$16 sps:$4 sm:$0xff]   ;;  %v7213_v57 = vld [vmem:[#allocation8 + $0x740] ss:$16 sps:$4 sm:$0xff]  }
 0x2ef   :  { %v6786_v62 = vadd.f32 %v3380_v2, %v611_v56  ;;  %v3382_v22 = vpop.f32.mrb[6].mxu0  ;;  %v7137_v56 = vld [vmem:[#allocation8 + $0x44c] ss:$16 sps:$4 sm:$0xff]   ;;  %v7135_v61 = vld [vmem:[#allocation8 + $0x448] ss:$16 sps:$4 sm:$0xff]  }
 0x2f0   :  { %v3553_v6 = vmul.f32 0.2, %v6785_v0  ;;  %v3383_v29 = vpop.f32.mrb[7].mxu0  ;;  %v7140_v2 = vld [vmem:[#allocation8 + $0x46c] ss:$16 sps:$4 sm:$0xff]  }
 0x2f1   :  { %v3554_v7 = vmul.f32 0.2, %v6786_v62  ;;  %5349 = vmatpush1.bf16.msra.mxu1 %v7096_v3  ;;  %v7138_v3 = vld [vmem:[#allocation8 + $0x468] ss:$16 sps:$4 sm:$0xff]   ;;  %v7143_v22 = vld [vmem:[#allocation8 + $0x48c] ss:$16 sps:$4 sm:$0xff]  }
 0x2f2   :  { %v3561_v10 = vmax.f32 %v6785_v0, %v3553_v6  ;;  %5350 = vmatprep.subr.bf16.mxu1 %v7104_v5  ;;  %v7221_v0 = vld [vmem:[#allocation8 + $0x764] ss:$16 sps:$4 sm:$0xff]   ;;  %v7225_v5 = vld [vmem:[#allocation8 + $0x780] ss:$16 sps:$4 sm:$0xff]   ;;  %v7141_v6 = vld [vmem:[#allocation8 + $0x488] ss:$16 sps:$4 sm:$0xff]  }
 0x2f3   :  { %v3562_v12 = vmax.f32 %v6786_v62, %v3554_v7  ;;  %v7227_v62 = vld [vmem:[#allocation8 + $0x784] ss:$16 sps:$4 sm:$0xff]   ;;  %v7146_v7 = vld [vmem:[#allocation8 + $0x4ac] ss:$16 sps:$4 sm:$0xff]  }
 0x2f4   :  { %v7844_v15 = vpack.c.bf16 %v3561_v10, %v3561_v10  ;;  %v7233_v29 = vld [vmem:[#allocation8 + $0x7a4] ss:$16 sps:$4 sm:$0xff]   ;;  %v7231_v10 = vld [vmem:[#allocation8 + $0x7a0] ss:$16 sps:$4 sm:$0xff]  }
 0x2f5   :  { %v7842_v13 = vpack.c.bf16 %v3562_v12, %v3562_v12  ;;  %5351 = vmatpush1.bf16.msra.mxu1 %v7102_v11  ;;  %v7144_v11 = vld [vmem:[#allocation8 + $0x4a8] ss:$16 sps:$4 sm:$0xff]   ;;  %v7239_v12 = vld [vmem:[#allocation8 + $0x7c4] ss:$16 sps:$4 sm:$0xff]  }
 0x2f6   :  { %5352 = vmatprep.subr.bf16.mxu1 %v7107_v23  ;;  %v7149_v23 = vld [vmem:[#allocation8 + $0x4cc] ss:$16 sps:$4 sm:$0xff]  }
 0x2f7   :  { %5245 = vmatprep.mubr.bf16.mxu0 %v7842_v13 }
 0x2f8   :  { %5246 = vmatmul.mubr.bf16.vlgmr.msra.gmra.mrb[8].mxu0 %v7844_v15 }
 0x2f9   :  { %5255 = vmatpush1.bf16.msra.mxu0 %v7153_v14  ;;  %5353 = vmatpush1.bf16.msra.mxu1 %v7105_v16  ;;  %v7147_v14 = vld [vmem:[#allocation8 + $0x4c8] ss:$16 sps:$4 sm:$0xff]   ;;  %v7245_v16 = vld [vmem:[#allocation8 + $0x7e4] ss:$16 sps:$4 sm:$0xff]  }
 0x2fa   :  { %5256 = vmatprep.subr.bf16.mxu0 %v7161_v18  ;;  %5354 = vmatprep.subr.bf16.mxu1 %v7110_v19  ;;  %v7152_v18 = vld [vmem:[#allocation8 + $0x4ec] ss:$16 sps:$4 sm:$0xff]   ;;  %v7243_v19 = vld [vmem:[#allocation8 + $0x7e0] ss:$16 sps:$4 sm:$0xff]  }
 0x2fd   :  { %5257 = vmatpush1.bf16.msra.mxu0 %v7159_v21  ;;  %5355 = vmatpush1.bf16.msra.mxu1 %v7108_v8  ;;  %v7150_v21 = vld [vmem:[#allocation8 + $0x4e8] ss:$16 sps:$4 sm:$0xff]  }
 0x2fe   :  { %5258 = vmatprep.subr.bf16.mxu0 %v7167_v24  ;;  %5356 = vmatprep.subr.bf16.mxu1 %v7113_v25  ;;  %v7275_v8 = vld [vmem:[#allocation11 + $0x4] ss:$8 sps:$4 sm:$0xff]   ;;  %v7158_v24 = vld [vmem:[#allocation8 + $0x50c] ss:$16 sps:$4 sm:$0xff]  }
 0x2ff   :  { %v7156_v25 = vld [vmem:[#allocation8 + $0x508] ss:$16 sps:$4 sm:$0xff]  }
 0x301   :  { %5259 = vmatpush1.bf16.msra.mxu0 %v7165_v26  ;;  %5357 = vmatpush1.bf16.msra.mxu1 %v7111_v27  ;;  %v7164_v26 = vld [vmem:[#allocation8 + $0x52c] ss:$16 sps:$4 sm:$0xff]   ;;  %v7162_v27 = vld [vmem:[#allocation8 + $0x528] ss:$16 sps:$4 sm:$0xff]  }
 0x302   :  { %5260 = vmatprep.subr.bf16.mxu0 %v7173_v54  ;;  %5358 = vmatprep.subr.bf16.mxu1 %v7116_v28  ;;  %v7170_v54 = vld [vmem:[#allocation8 + $0x54c] ss:$16 sps:$4 sm:$0xff]   ;;  %v7168_v28 = vld [vmem:[#allocation8 + $0x548] ss:$16 sps:$4 sm:$0xff]  }
 0x305   :  { %5261 = vmatpush1.bf16.msra.mxu0 %v7171_v55  ;;  %5359 = vmatpush1.bf16.msra.mxu1 %v7114_v30  ;;  %v7176_v55 = vld [vmem:[#allocation8 + $0x56c] ss:$16 sps:$4 sm:$0xff]   ;;  %v7174_v30 = vld [vmem:[#allocation8 + $0x568] ss:$16 sps:$4 sm:$0xff]  }
 0x306   :  { %5262 = vmatprep.subr.bf16.mxu0 %v7179_v31  ;;  %5360 = vmatprep.subr.bf16.mxu1 %v7119_v33  ;;  %v7182_v31 = vld [vmem:[#allocation8 + $0x58c] ss:$16 sps:$4 sm:$0xff]   ;;  %v7180_v33 = vld [vmem:[#allocation8 + $0x588] ss:$16 sps:$4 sm:$0xff]  }
 0x309   :  { %5263 = vmatpush1.bf16.msra.mxu0 %v7177_v35  ;;  %5361 = vmatpush1.bf16.msra.mxu1 %v7117_v36  ;;  %v7188_v35 = vld [vmem:[#allocation8 + $0x5ac] ss:$16 sps:$4 sm:$0xff]   ;;  %v7186_v36 = vld [vmem:[#allocation8 + $0x5a8] ss:$16 sps:$4 sm:$0xff]  }
 0x30a   :  { %5264 = vmatprep.subr.bf16.mxu0 %v7185_v39  ;;  %5362 = vmatprep.subr.bf16.mxu1 %v7122_v40  ;;  %v7194_v39 = vld [vmem:[#allocation8 + $0x5cc] ss:$16 sps:$4 sm:$0xff]   ;;  %v7192_v40 = vld [vmem:[#allocation8 + $0x5c8] ss:$16 sps:$4 sm:$0xff]  }
 0x30d   :  { %5265 = vmatpush1.bf16.msra.mxu0 %v7183_v41  ;;  %5363 = vmatpush1.bf16.msra.mxu1 %v7120_v42  ;;  %v7200_v41 = vld [vmem:[#allocation8 + $0x5ec] ss:$16 sps:$4 sm:$0xff]   ;;  %v7198_v42 = vld [vmem:[#allocation8 + $0x5e8] ss:$16 sps:$4 sm:$0xff]  }
 0x30e   :  { %5266 = vmatprep.subr.bf16.mxu0 %v7191_v48  ;;  %5364 = vmatprep.subr.bf16.mxu1 %v7125_v43  ;;  %v7206_v48 = vld [vmem:[#allocation8 + $0x60c] ss:$16 sps:$4 sm:$0xff]   ;;  %v7204_v43 = vld [vmem:[#allocation8 + $0x608] ss:$16 sps:$4 sm:$0xff]  }
 0x311   :  { %5267 = vmatpush1.bf16.msra.mxu0 %v7189_v20  ;;  %5365 = vmatpush1.bf16.msra.mxu1 %v7123_v59  ;;  %v7212_v20 = vld [vmem:[#allocation8 + $0x62c] ss:$16 sps:$4 sm:$0xff]   ;;  %v7210_v59 = vld [vmem:[#allocation8 + $0x628] ss:$16 sps:$4 sm:$0xff]  }
 0x312   :  { %5268 = vmatprep.subr.bf16.mxu0 %v7197_v53  ;;  %5366 = vmatprep.subr.bf16.mxu1 %v7128_v45  ;;  %v7218_v53 = vld [vmem:[#allocation8 + $0x64c] ss:$16 sps:$4 sm:$0xff]   ;;  %v7216_v45 = vld [vmem:[#allocation8 + $0x648] ss:$16 sps:$4 sm:$0xff]  }
 0x315   :  { %5269 = vmatpush1.bf16.msra.mxu0 %v7195_v46  ;;  %5367 = vmatpush1.bf16.msra.mxu1 %v7126_v37  ;;  %v7224_v46 = vld [vmem:[#allocation8 + $0x66c] ss:$16 sps:$4 sm:$0xff]   ;;  %v7222_v37 = vld [vmem:[#allocation8 + $0x668] ss:$16 sps:$4 sm:$0xff]  }
 0x316   :  { %5270 = vmatprep.subr.bf16.mxu0 %v7203_v34  ;;  %5377 = vmatprep.subr.bf16.mxu1 %v7131_v1  ;;  %v7230_v34 = vld [vmem:[#allocation8 + $0x68c] ss:$16 sps:$4 sm:$0xff]   ;;  %v614_v1 = vsub.s32 6, %v7787_v58 }
 0x318   :  { %5369 = vmatmul.mubr.bf16.vlgmr.msra.gmra.mrb[12].mxu1 %v7830_v38  ;;  %v7219_v38 = vld [vmem:[#allocation8 + $0x760] ss:$16 sps:$4 sm:$0xff]  }
 0x319   :  { %5271 = vmatpush1.bf16.msra.mxu0 %v7201_v47  ;;  %5378 = vmatpush1.bf16.msra.mxu1 %v7129_v50  ;;  %v7228_v47 = vld [vmem:[#allocation8 + $0x688] ss:$16 sps:$4 sm:$0xff]   ;;  %v618_v50 = vsub.s32 7, %v7787_v58 }
 0x31a   :  { %5409 = vmatprep.mubr.bf16.mxu1 %v7842_v13  ;;  %5379 = vmatprep.subr.bf16.mxu1 %v7134_v49  ;;  %v7237_v13 = vld [vmem:[#allocation8 + $0x7c0] ss:$16 sps:$4 sm:$0xff]   ;;  %v615_v49 = vrot.slane %v7838_v32, %v614_v1  ;;  %v7303_v1 = vld [vmem:[#allocation11 + $0xa0] ss:$8 sps:$4 sm:$0xff]  }
 0x31b   :  { %5272 = vmatprep.subr.bf16.mxu0 %v7209_v44  ;;  %v619_v44 = vrot.slane %v7838_v32, %v618_v50  ;;  %v7306_v50 = vld [vmem:[#allocation11 + $0xb0] ss:$8 sps:$4 sm:$0xff]  }
 0x31d   :  { %5273 = vmatpush1.bf16.msra.mxu0 %v7207_v51  ;;  %5380 = vmatpush1.bf16.msra.mxu1 %v7132_v52  ;;  %v7234_v51 = vld [vmem:[#allocation8 + $0x6a8] ss:$16 sps:$4 sm:$0xff]   ;;  %v7242_v52 = vld [vmem:[#allocation8 + $0x6cc] ss:$16 sps:$4 sm:$0xff]  }
 0x31e   :  { %5274 = vmatprep.subr.bf16.mxu0 %v7215_v17  ;;  %5381 = vmatprep.subr.bf16.mxu1 %v7137_v56 }
 0x321   :  { %5275 = vmatpush1.bf16.msra.mxu0 %v7213_v57  ;;  %5382 = vmatpush1.bf16.msra.mxu1 %v7135_v61 }
 0x322   :  { %5276 = vmatprep.subr.bf16.mxu0 %v7221_v0  ;;  %5383 = vmatprep.subr.bf16.mxu1 %v7140_v2  ;;  %v7240_v2 = vld [vmem:[#allocation8 + $0x6c8] ss:$16 sps:$4 sm:$0xff]  }
 0x325   :  { %5277 = vmatpush1.bf16.msra.mxu0 %v7219_v38  ;;  %5384 = vmatpush1.bf16.msra.mxu1 %v7138_v3 }
 0x326   :  { %5278 = vmatprep.subr.bf16.mxu0 %v7227_v62  ;;  %5385 = vmatprep.subr.bf16.mxu1 %v7143_v22  ;;  %v7248_v62 = vld [vmem:[#allocation8 + $0x6ec] ss:$16 sps:$4 sm:$0xff]  }
 0x329   :  { %5279 = vmatpush1.bf16.msra.mxu0 %v7225_v5  ;;  %5386 = vmatpush1.bf16.msra.mxu1 %v7141_v6 }
 0x32a   :  { %5280 = vmatprep.subr.bf16.mxu0 %v7233_v29  ;;  %5387 = vmatprep.subr.bf16.mxu1 %v7146_v7  ;;  %v7246_v29 = vld [vmem:[#allocation8 + $0x6e8] ss:$16 sps:$4 sm:$0xff]   ;;  %v7251_v7 = vld [vmem:[#allocation8 + $0x70c] ss:$16 sps:$4 sm:$0xff]  }
 0x32d   :  { %5281 = vmatpush1.bf16.msra.mxu0 %v7231_v10  ;;  %5388 = vmatpush1.bf16.msra.mxu1 %v7144_v11  ;;  %v7273_v10 = vld [vmem:[#allocation11] ss:$8 sps:$4 sm:$0xff]  }
 0x32e   :  { %5282 = vmatprep.subr.bf16.mxu0 %v7239_v12  ;;  %5389 = vmatprep.subr.bf16.mxu1 %v7149_v23  ;;  %v7278_v12 = vld [vmem:[#allocation11 + $0x14] ss:$8 sps:$4 sm:$0xff]  }
 0x32f   :  { %v7249_v23 = vld [vmem:[#allocation8 + $0x708] ss:$16 sps:$4 sm:$0xff]  }
 0x331   :  { %5283 = vmatpush1.bf16.msra.mxu0 %v7237_v13  ;;  %5390 = vmatpush1.bf16.msra.mxu1 %v7147_v14  ;;  %v7254_v13 = vld [vmem:[#allocation8 + $0x72c] ss:$16 sps:$4 sm:$0xff]  }
 0x332   :  { %5284 = vmatprep.subr.bf16.mxu0 %v7245_v16  ;;  %5391 = vmatprep.subr.bf16.mxu1 %v7152_v18  ;;  %v7276_v14 = vld [vmem:[#allocation11 + $0x10] ss:$8 sps:$4 sm:$0xff]   ;;  %v7281_v16 = vld [vmem:[#allocation11 + $0x24] ss:$8 sps:$4 sm:$0xff]  }
 0x333   :  { %v7252_v18 = vld [vmem:[#allocation8 + $0x728] ss:$16 sps:$4 sm:$0xff]  }
 0x335   :  { %5285 = vmatpush1.bf16.msra.mxu0 %v7243_v19  ;;  %5392 = vmatpush1.bf16.msra.mxu1 %v7150_v21  ;;  %v7257_v19 = vld [vmem:[#allocation8 + $0x74c] ss:$16 sps:$4 sm:$0xff]  }
 0x336   :  { %5867 = vmatprep.subr.bf16.mxu0 %v7275_v8  ;;  %5393 = vmatprep.subr.bf16.mxu1 %v7158_v24  ;;  %v7279_v21 = vld [vmem:[#allocation11 + $0x20] ss:$8 sps:$4 sm:$0xff]   ;;  %v7284_v8 = vld [vmem:[#allocation11 + $0x34] ss:$8 sps:$4 sm:$0xff]  }
 0x337   :  { %v7255_v24 = vld [vmem:[#allocation8 + $0x748] ss:$16 sps:$4 sm:$0xff]  }
 0x339   :  { %5394 = vmatpush1.bf16.msra.mxu1 %v7156_v25  ;;  %v7260_v25 = vld [vmem:[#allocation8 + $0x76c] ss:$16 sps:$4 sm:$0xff]  }
 0x33a   :  { %5395 = vmatprep.subr.bf16.mxu1 %v7164_v26  ;;  %v7282_v26 = vld [vmem:[#allocation11 + $0x30] ss:$8 sps:$4 sm:$0xff]  }
 0x33d   :  { %5396 = vmatpush1.bf16.msra.mxu1 %v7162_v27  ;;  %v7287_v27 = vld [vmem:[#allocation11 + $0x44] ss:$8 sps:$4 sm:$0xff]  }
 0x33e   :  { %5397 = vmatprep.subr.bf16.mxu1 %v7170_v54  ;;  %v7258_v54 = vld [vmem:[#allocation8 + $0x768] ss:$16 sps:$4 sm:$0xff]  }
 0x341   :  { %5398 = vmatpush1.bf16.msra.mxu1 %v7168_v28  ;;  %v7263_v28 = vld [vmem:[#allocation8 + $0x78c] ss:$16 sps:$4 sm:$0xff]  }
 0x342   :  { %5399 = vmatprep.subr.bf16.mxu1 %v7176_v55  ;;  %v7285_v55 = vld [vmem:[#allocation11 + $0x40] ss:$8 sps:$4 sm:$0xff]  }
 0x345   :  { %5400 = vmatpush1.bf16.msra.mxu1 %v7174_v30  ;;  %v7290_v30 = vld [vmem:[#allocation11 + $0x54] ss:$8 sps:$4 sm:$0xff]  }
 0x346   :  { %5401 = vmatprep.subr.bf16.mxu1 %v7182_v31  ;;  %v7261_v31 = vld [vmem:[#allocation8 + $0x788] ss:$16 sps:$4 sm:$0xff]  }
 0x349   :  { %5402 = vmatpush1.bf16.msra.mxu1 %v7180_v33  ;;  %v7266_v33 = vld [vmem:[#allocation8 + $0x7ac] ss:$16 sps:$4 sm:$0xff]  }
 0x34a   :  { %5403 = vmatprep.subr.bf16.mxu1 %v7188_v35  ;;  %v7288_v35 = vld [vmem:[#allocation11 + $0x50] ss:$8 sps:$4 sm:$0xff]  }
 0x34d   :  { %5404 = vmatpush1.bf16.msra.mxu1 %v7186_v36  ;;  %v7293_v36 = vld [vmem:[#allocation11 + $0x64] ss:$8 sps:$4 sm:$0xff]  }
 0x34e   :  { %5405 = vmatprep.subr.bf16.mxu1 %v7194_v39  ;;  %v7264_v39 = vld [vmem:[#allocation8 + $0x7a8] ss:$16 sps:$4 sm:$0xff]  }
 0x351   :  { %5406 = vmatpush1.bf16.msra.mxu1 %v7192_v40  ;;  %v7269_v40 = vld [vmem:[#allocation8 + $0x7cc] ss:$16 sps:$4 sm:$0xff]  }
 0x352   :  { %5407 = vmatprep.subr.bf16.mxu1 %v7200_v41  ;;  %v7291_v41 = vld [vmem:[#allocation11 + $0x60] ss:$8 sps:$4 sm:$0xff]  }
 0x355   :  { %5408 = vmatpush1.bf16.msra.mxu1 %v7198_v42  ;;  %v7296_v42 = vld [vmem:[#allocation11 + $0x74] ss:$8 sps:$4 sm:$0xff]  }
 0x356   :  { %5418 = vmatprep.subr.bf16.mxu1 %v7206_v48  ;;  %v7267_v48 = vld [vmem:[#allocation8 + $0x7c8] ss:$16 sps:$4 sm:$0xff]  }
 0x358   :  { %5410 = vmatmul.mubr.bf16.vlgmr.msra.gmra.mrb[12].mxu1 %v7844_v15  ;;  %v7236_v15 = vld [vmem:[#allocation8 + $0x6ac] ss:$16 sps:$4 sm:$0xff]  }
 0x359   :  { %5419 = vmatpush1.bf16.msra.mxu1 %v7204_v43  ;;  %v7272_v43 = vld [vmem:[#allocation8 + $0x7ec] ss:$16 sps:$4 sm:$0xff]  }
 0x35a   :  { %5420 = vmatprep.subr.bf16.mxu1 %v7212_v20  ;;  %v7294_v20 = vld [vmem:[#allocation11 + $0x70] ss:$8 sps:$4 sm:$0xff]  }
 0x35d   :  { %5421 = vmatpush1.bf16.msra.mxu1 %v7210_v59  ;;  %v7299_v59 = vld [vmem:[#allocation11 + $0x84] ss:$8 sps:$4 sm:$0xff]  }
 0x35e   :  { %5422 = vmatprep.subr.bf16.mxu1 %v7218_v53  ;;  %v7270_v53 = vld [vmem:[#allocation8 + $0x7e8] ss:$16 sps:$4 sm:$0xff]  }
 0x361   :  { %5423 = vmatpush1.bf16.msra.mxu1 %v7216_v45  ;;  %v7297_v45 = vld [vmem:[#allocation11 + $0x80] ss:$8 sps:$4 sm:$0xff]  }
 0x362   :  { %5424 = vmatprep.subr.bf16.mxu1 %v7224_v46  ;;  %v7302_v46 = vld [vmem:[#allocation11 + $0x94] ss:$8 sps:$4 sm:$0xff]  }
 0x365   :  { %5425 = vmatpush1.bf16.msra.mxu1 %v7222_v37  ;;  %v7300_v37 = vld [vmem:[#allocation11 + $0x90] ss:$8 sps:$4 sm:$0xff]  }
 0x366   :  { %5426 = vmatprep.subr.bf16.mxu1 %v7230_v34  ;;  %v7305_v34 = vld [vmem:[#allocation11 + $0xa4] ss:$8 sps:$4 sm:$0xff]  }
 0x369   :  { %5427 = vmatpush1.bf16.msra.mxu1 %v7228_v47  ;;  %v7308_v47 = vld [vmem:[#allocation11 + $0xb4] ss:$8 sps:$4 sm:$0xff]  }
 0x36a   :  { %5428 = vmatprep.subr.bf16.mxu1 %v7236_v15  ;;  %v7311_v15 = vld [vmem:[#allocation11 + $0xc4] ss:$8 sps:$4 sm:$0xff]  }
 0x36b   :  { %v3542_v17 = vpop.f32.mrb[8].mxu1 }
 0x36c   :  { %v6787_v56 = vadd.f32 %v3542_v17, %v615_v49  ;;  %v3544_v57 = vpop.f32.mrb[9].mxu1  ;;  %v7309_v49 = vld [vmem:[#allocation11 + $0xc0] ss:$8 sps:$4 sm:$0xff]  }
 0x36d   :  { %v6788_v61 = vadd.f32 %v3544_v57, %v619_v44  ;;  %v3546_v0 = vpop.f32.mrb[10].mxu1  ;;  %5429 = vmatpush1.bf16.msra.mxu1 %v7234_v51  ;;  %v7314_v44 = vld [vmem:[#allocation11 + $0xd4] ss:$8 sps:$4 sm:$0xff]   ;;  %v7312_v51 = vld [vmem:[#allocation11 + $0xd0] ss:$8 sps:$4 sm:$0xff]  }
 0x36e   :  { %v3555_v38 = vmul.f32 0.2, %v6787_v56  ;;  %v3547_v3 = vpop.f32.mrb[11].mxu1  ;;  %5430 = vmatprep.subr.bf16.mxu1 %v7242_v52  ;;  %v7317_v52 = vld [vmem:[#allocation11 + $0xe4] ss:$8 sps:$4 sm:$0xff]  }
 0x36f   :  { %v3556_v22 = vmul.f32 0.2, %v6788_v61  ;;  %v7315_v17 = vld [vmem:[#allocation11 + $0xe0] ss:$8 sps:$4 sm:$0xff]   ;;  %v7318_v57 = vld [vmem:[#allocation11 + $0xf0] ss:$8 sps:$4 sm:$0xff]  }
 0x370   :  { %v3563_v5 = vmax.f32 %v6787_v56, %v3555_v38  ;;  %v7320_v56 = vld [vmem:[#allocation11 + $0xf4] ss:$8 sps:$4 sm:$0xff]  }
 0x371   :  { %v3564_v6 = vmax.f32 %v6788_v61, %v3556_v22  ;;  %5431 = vmatpush1.bf16.msra.mxu1 %v7240_v2  ;;  %v7323_v61 = vld [vmem:[#allocation11 + $0x104] ss:$8 sps:$4 sm:$0xff]   ;;  %v7859_v0 = vld [vmem:[#allocation10] sm:$0xf] }
 0x372   :  { %5432 = vmatprep.subr.bf16.mxu1 %v7248_v62  ;;  %v7855_v11 = vpack.c.bf16 %v3563_v5, %v3563_v5  ;;  %v3834_v2 = vrot.slane %v7859_v0, %v7790_v4  ;;  %v3838_v38 = vrot.slane %v7859_v0, %v7795_v9 }
 0x373   :  { %v3572_v32 = vpack.c.bf16 %v3564_v6, %v3564_v6 }
 0x375   :  { %5286 = vmatprep.mubr.bf16.mxu0 %v3572_v32  ;;  %5433 = vmatpush1.bf16.msra.mxu1 %v7246_v29 }
 0x376   :  { %5450 = vmatprep.mubr.bf16.mxu1 %v3572_v32  ;;  %5287 = vmatmul.mubr.bf16.vlgmr.msra.gmra.mrb[8].mxu0 %v7855_v11 }
 0x377   :  { %5434 = vmatprep.subr.bf16.mxu1 %v7251_v7  ;;  %5868 = vmatpush1.bf16.msra.mxu0 %v7273_v10 }
 0x378   :  { %5869 = vmatprep.subr.bf16.mxu0 %v7278_v12 }
 0x379   :  { %5435 = vmatpush1.bf16.msra.mxu1 %v7249_v23  ;;  %v7321_v23 = vld [vmem:[#allocation11 + $0x100] ss:$8 sps:$4 sm:$0xff]  }
 0x37a   :  { %5436 = vmatprep.subr.bf16.mxu1 %v7254_v13 }
 0x37b   :  { %5870 = vmatpush1.bf16.msra.mxu0 %v7276_v14  ;;  %v7326_v14 = vld [vmem:[#allocation11 + $0x114] ss:$8 sps:$4 sm:$0xff]  }
 0x37c   :  { %5871 = vmatprep.subr.bf16.mxu0 %v7281_v16  ;;  %v7324_v16 = vld [vmem:[#allocation11 + $0x110] ss:$8 sps:$4 sm:$0xff]  }
 0x37d   :  { %5437 = vmatpush1.bf16.msra.mxu1 %v7252_v18  ;;  %v7329_v18 = vld [vmem:[#allocation11 + $0x124] ss:$8 sps:$4 sm:$0xff]  }
 0x37e   :  { %5438 = vmatprep.subr.bf16.mxu1 %v7257_v19  ;;  %v7327_v19 = vld [vmem:[#allocation11 + $0x120] ss:$8 sps:$4 sm:$0xff]  }
 0x37f   :  { %5872 = vmatpush1.bf16.msra.mxu0 %v7279_v21  ;;  %v7332_v21 = vld [vmem:[#allocation11 + $0x134] ss:$8 sps:$4 sm:$0xff]  }
 0x380   :  { %5873 = vmatprep.subr.bf16.mxu0 %v7284_v8  ;;  %v7330_v8 = vld [vmem:[#allocation11 + $0x130] ss:$8 sps:$4 sm:$0xff]  }
 0x381   :  { %5439 = vmatpush1.bf16.msra.mxu1 %v7255_v24  ;;  %v7335_v24 = vld [vmem:[#allocation11 + $0x144] ss:$8 sps:$4 sm:$0xff]  }
 0x382   :  { %5440 = vmatprep.subr.bf16.mxu1 %v7260_v25  ;;  %v7333_v25 = vld [vmem:[#allocation11 + $0x140] ss:$8 sps:$4 sm:$0xff]  }
 0x383   :  { %5874 = vmatpush1.bf16.msra.mxu0 %v7282_v26  ;;  %v7338_v26 = vld [vmem:[#allocation11 + $0x154] ss:$8 sps:$4 sm:$0xff]  }
 0x384   :  { %5875 = vmatprep.subr.bf16.mxu0 %v7287_v27  ;;  %v7336_v27 = vld [vmem:[#allocation11 + $0x150] ss:$8 sps:$4 sm:$0xff]  }
 0x385   :  { %5441 = vmatpush1.bf16.msra.mxu1 %v7258_v54  ;;  %v7341_v54 = vld [vmem:[#allocation11 + $0x164] ss:$8 sps:$4 sm:$0xff]  }
 0x386   :  { %5442 = vmatprep.subr.bf16.mxu1 %v7263_v28  ;;  %v7339_v28 = vld [vmem:[#allocation11 + $0x160] ss:$8 sps:$4 sm:$0xff]  }
 0x387   :  { %5876 = vmatpush1.bf16.msra.mxu0 %v7285_v55  ;;  %v3846_v55 = vrot.slane %v7859_v0, %v602_v63  ;;  %v7348_v63 = vld [vmem:[#allocation11 + $0x190] ss:$8 sps:$4 sm:$0xff]  }
 0x388   :  { %5877 = vmatprep.subr.bf16.mxu0 %v7290_v30  ;;  %v7344_v30 = vld [vmem:[#allocation11 + $0x174] ss:$8 sps:$4 sm:$0xff]  }
 0x389   :  { %5443 = vmatpush1.bf16.msra.mxu1 %v7261_v31 }
 0x38a   :  { %5444 = vmatprep.subr.bf16.mxu1 %v7266_v33 }
 0x38b   :  { %5878 = vmatpush1.bf16.msra.mxu0 %v7288_v35 }
 0x38c   :  { %5879 = vmatprep.subr.bf16.mxu0 %v7293_v36 }
 0x38d   :  { %5445 = vmatpush1.bf16.msra.mxu1 %v7264_v39  ;;  %v7342_v39 = vld [vmem:[#allocation11 + $0x170] ss:$8 sps:$4 sm:$0xff]  }
 0x38e   :  { %5446 = vmatprep.subr.bf16.mxu1 %v7269_v40 }
 0x38f   :  { %5880 = vmatpush1.bf16.msra.mxu0 %v7291_v41  ;;  %v7347_v41 = vld [vmem:[#allocation11 + $0x184] ss:$8 sps:$4 sm:$0xff]  }
 0x390   :  { %5881 = vmatprep.subr.bf16.mxu0 %v7296_v42 }
 0x391   :  { %5447 = vmatpush1.bf16.msra.mxu1 %v7267_v48 }
 0x392   :  { %5448 = vmatprep.subr.bf16.mxu1 %v7272_v43  ;;  %v7345_v43 = vld [vmem:[#allocation11 + $0x180] ss:$8 sps:$4 sm:$0xff]  }
 0x393   :  { %5882 = vmatpush1.bf16.msra.mxu0 %v7294_v20  ;;  %v7350_v20 = vld [vmem:[#allocation11 + $0x194] ss:$8 sps:$4 sm:$0xff]  }
 0x394   :  { %5883 = vmatprep.subr.bf16.mxu0 %v7299_v59  ;;  %v7353_v59 = vld [vmem:[#allocation11 + $0x1a4] ss:$8 sps:$4 sm:$0xff]  }
 0x395   :  { %5449 = vmatpush1.bf16.msra.mxu1 %v7270_v53  ;;  %v7351_v53 = vld [vmem:[#allocation11 + $0x1a0] ss:$8 sps:$4 sm:$0xff]  }
 0x397   :  { %5884 = vmatpush1.bf16.msra.mxu0 %v7297_v45  ;;  %v7356_v45 = vld [vmem:[#allocation11 + $0x1b4] ss:$8 sps:$4 sm:$0xff]  }
 0x398   :  { %5451 = vmatmul.mubr.bf16.vlgmr.msra.gmra.mrb[12].mxu1 %v7855_v11  ;;  %5885 = vmatprep.subr.bf16.mxu0 %v7302_v46  ;;  %v7354_v46 = vld [vmem:[#allocation11 + $0x1b0] ss:$8 sps:$4 sm:$0xff]  }
 0x39b   :  { %5886 = vmatpush1.bf16.msra.mxu0 %v7300_v37  ;;  %v7359_v37 = vld [vmem:[#allocation11 + $0x1c4] ss:$8 sps:$4 sm:$0xff]  }
 0x39c   :  { %5887 = vmatprep.subr.bf16.mxu0 %v7305_v34  ;;  %v7357_v34 = vld [vmem:[#allocation11 + $0x1c0] ss:$8 sps:$4 sm:$0xff]  }
 0x39f   :  { %5888 = vmatpush1.bf16.msra.mxu0 %v7303_v1  ;;  %v3842_v1 = vrot.slane %v7859_v0, %v7819_v60  ;;  %v5535_v0 = vld [vmem:[#allocation13] sm:$0x3] }
 0x3a0   :  { %5889 = vmatprep.subr.bf16.mxu0 %v7308_v47  ;;  %v7362_v47 = vld [vmem:[#allocation11 + $0x1d4] ss:$8 sps:$4 sm:$0xff]  }
 0x3a3   :  { %5890 = vmatpush1.bf16.msra.mxu0 %v7306_v50  ;;  %v7360_v50 = vld [vmem:[#allocation11 + $0x1d0] ss:$8 sps:$4 sm:$0xff]  }
 0x3a4   :  { %5891 = vmatprep.subr.bf16.mxu0 %v7311_v15 }
 0x3a7   :  { %5892 = vmatpush1.bf16.msra.mxu0 %v7309_v49  ;;  %v7365_v49 = vld [vmem:[#allocation11 + $0x1e4] ss:$8 sps:$4 sm:$0xff]  }
 0x3a8   :  { %5893 = vmatprep.subr.bf16.mxu0 %v7314_v44  ;;  %v7363_v44 = vld [vmem:[#allocation11 + $0x1e0] ss:$8 sps:$4 sm:$0xff]  }
 0x3ab   :  { %5894 = vmatpush1.bf16.msra.mxu0 %v7312_v51 }
 0x3ac   :  { %5895 = vmatprep.subr.bf16.mxu0 %v7317_v52  ;;  %v7368_v52 = vld [vmem:[#allocation11 + $0x1f4] ss:$8 sps:$4 sm:$0xff]  }
 0x3af   :  { %5896 = vmatpush1.bf16.msra.mxu0 %v7315_v17  ;;  %v7366_v17 = vld [vmem:[#allocation11 + $0x1f0] ss:$8 sps:$4 sm:$0xff]  }
 0x3b0   :  { %5897 = vmatprep.subr.bf16.mxu0 %v7320_v56 }
 0x3b3   :  { %5898 = vmatpush1.bf16.msra.mxu0 %v7318_v57 }
 0x3b4   :  { %5908 = vmatprep.subr.bf16.mxu0 %v7323_v61  ;;  %v5953_v61 = vld [vmem:[#allocation14] sm:$0x3] }
 0x449   :  { %v5288_v3 = vpop.f32.mrb[8].mxu0 }
 0x44a   :  { %v6789_v62 = vadd.f32 %v5288_v3, %v3834_v2  ;;  %v5290_v22 = vpop.f32.mrb[9].mxu0  ;;  %v5954_v2 = vunpack.c.l.bf16 %v5953_v61  ;;  %v5544_v3 = vrot.slane %v5535_v0, %v7795_v9 }
 0x44b   :  { %v6790_v5 = vadd.f32 %v5290_v22, %v3838_v38  ;;  %v5292_v6 = vpop.f32.mrb[10].mxu0  ;;  %v5540_v38 = vrot.slane %v5535_v0, %v7790_v4 }
 0x44c   :  { %v5459_v29 = vmul.f32 0.2, %v6789_v62  ;;  %v5293_v32 = vpop.f32.mrb[11].mxu0 }
 0x44d   :  { %v5460_v7 = vmul.f32 0.2, %v6790_v5 }
 0x44e   :  { %v5463_v10 = vmax.f32 %v6789_v62, %v5459_v29  ;;  %v5959_v62 = vrot.slane %v5954_v2, %v7790_v4 }
 0x44f   :  { %v5464_v11 = vmax.f32 %v6790_v5, %v5460_v7  ;;  %v5963_v5 = vrot.slane %v5954_v2, %v7819_v60 }
 0x450   :  { %v5467_v13 = vpack.c.bf16 %v5463_v10, %v5463_v10 }
 0x451   :  { %v5468_v12 = vpack.c.bf16 %v5464_v11, %v5464_v11 }
 0x453   :  { %5899 = vmatprep.mubr.bf16.mxu0 %v5468_v12  ;;  %v5969_v12 = vrot.slane %v5959_v62, %v7790_v4 }
 0x454   :  { %5900 = vmatmul.mubr.bf16.vlgmr.msra.gmra.mrb[12].mxu0 %v5467_v13  ;;  %v5973_v13 = vrot.slane %v5963_v5, %v7790_v4 }
 0x455   :  { %5909 = vmatpush1.bf16.msra.mxu0 %v7321_v23 }
 0x456   :  { %5910 = vmatprep.subr.bf16.mxu0 %v7326_v14 }
 0x459   :  { %5911 = vmatpush1.bf16.msra.mxu0 %v7324_v16 }
 0x45a   :  { %5912 = vmatprep.subr.bf16.mxu0 %v7329_v18 }
 0x45d   :  { %5913 = vmatpush1.bf16.msra.mxu0 %v7327_v19 }
 0x45e   :  { %5914 = vmatprep.subr.bf16.mxu0 %v7332_v21  ;;  %v6778_v21 = vld [vmem:[#allocation2] ss:$0 sm:$0xff] }
 0x461   :  { %5915 = vmatpush1.bf16.msra.mxu0 %v7330_v8 }
 0x462   :  { %5916 = vmatprep.subr.bf16.mxu0 %v7335_v24 }
 0x465   :  { %5917 = vmatpush1.bf16.msra.mxu0 %v7333_v25 }
 0x466   :  { %5918 = vmatprep.subr.bf16.mxu0 %v7338_v26 }
 0x469   :  { %5919 = vmatpush1.bf16.msra.mxu0 %v7336_v27 }
 0x46a   :  { %5920 = vmatprep.subr.bf16.mxu0 %v7341_v54 }
 0x46b   :  { %v5452_v31 = vpop.f32.mrb[12].mxu1 }
 0x46c   :  { %v5454_v33 = vpop.f32.mrb[13].mxu1  ;;  %v6791_v15 = vadd.f32 %v5452_v31, %v3842_v1 }
 0x46d   :  { %v6792_v35 = vadd.f32 %v5454_v33, %v3846_v55  ;;  %5921 = vmatpush1.bf16.msra.mxu0 %v7339_v28  ;;  %v5456_v36 = vpop.f32.mrb[14].mxu1 }
 0x46e   :  { %v5457_v40 = vpop.f32.mrb[15].mxu1  ;;  %5922 = vmatprep.subr.bf16.mxu0 %v7344_v30  ;;  %v5461_v51 = vmul.f32 0.2, %v6791_v15 }
 0x46f   :  { %v5462_v42 = vmul.f32 0.2, %v6792_v35 }
 0x470   :  { %v5465_v56 = vmax.f32 %v6791_v15, %v5461_v51 }
 0x471   :  { %v5466_v48 = vmax.f32 %v6792_v35, %v5462_v42  ;;  %5923 = vmatpush1.bf16.msra.mxu0 %v7342_v39 }
 0x472   :  { %5924 = vmatprep.subr.bf16.mxu0 %v7347_v41  ;;  %v5469_v57 = vpack.c.bf16 %v5465_v56, %v5465_v56 }
 0x473   :  { %v5470_v58 = vpack.c.bf16 %v5466_v48, %v5466_v48 }
 0x475   :  { %5925 = vmatpush1.bf16.msra.mxu0 %v7345_v43  ;;  %5940 = vmatprep.mubr.bf16.mxu0 %v5470_v58 }
 0x476   :  { %5926 = vmatprep.subr.bf16.mxu0 %v7350_v20 }
 0x479   :  { %5927 = vmatpush1.bf16.msra.mxu0 %v7348_v63 }
 0x47a   :  { %5928 = vmatprep.subr.bf16.mxu0 %v7353_v59 }
 0x47d   :  { %5929 = vmatpush1.bf16.msra.mxu0 %v7351_v53 }
 0x47e   :  { %5930 = vmatprep.subr.bf16.mxu0 %v7356_v45 }
 0x481   :  { %5931 = vmatpush1.bf16.msra.mxu0 %v7354_v46 }
 0x482   :  { %5932 = vmatprep.subr.bf16.mxu0 %v7359_v37 }
 0x485   :  { %5933 = vmatpush1.bf16.msra.mxu0 %v7357_v34 }
 0x486   :  { %5934 = vmatprep.subr.bf16.mxu0 %v7362_v47 }
 0x489   :  { %5935 = vmatpush1.bf16.msra.mxu0 %v7360_v50 }
 0x48a   :  { %5936 = vmatprep.subr.bf16.mxu0 %v7365_v49 }
 0x48d   :  { %5937 = vmatpush1.bf16.msra.mxu0 %v7363_v44 }
 0x48e   :  { %5938 = vmatprep.subr.bf16.mxu0 %v7368_v52 }
 0x491   :  { %5939 = vmatpush1.bf16.msra.mxu0 %v7366_v17 }
 0x494   :  { %5941 = vmatmul.mubr.bf16.vlgmr.msra.gmra.mrb[12].mxu0 %v5469_v57 }
 0x567   :  { %v5942_v22 = vpop.f32.mrb[12].mxu0 }
 0x568   :  { %v6793_v6 = vadd.f32 %v5942_v22, %v5540_v38  ;;  %v5944_v29 = vpop.f32.mrb[13].mxu0 }
 0x569   :  { %v6794_v32 = vadd.f32 %v5944_v29, %v5544_v3  ;;  %v5946_v7 = vpop.f32.mrb[14].mxu0 }
 0x56a   :  { %v5949_v10 = vmul.f32 0.2, %v6793_v6  ;;  %v5947_v11 = vpop.f32.mrb[15].mxu0 }
 0x56b   :  { %v5950_v23 = vmul.f32 0.2, %v6794_v32 }
 0x56c   :  { %v5951_v14 = vmax.f32 %v6793_v6, %v5949_v10 }
 0x56d   :  { %v5952_v16 = vmax.f32 %v6794_v32, %v5950_v23 }
 0x56e   :  { %v5974_v18 = vmul.f32 %v5969_v12, %v5951_v14 }
 0x56f   :  { %v5975_v9 = vmul.f32 %v5973_v13, %v5952_v16 }
 0x571   :  { %v5976_v19 = vadd.f32 %v5975_v9, %v5974_v18 }
 0x573   :  { %5977 = vadd.xlane.f32.xlu0 %v5976_v19 }
 0x600   :  { %v5978_v8 = vpop.xlane.xlu0 %5977 }
 0x601   :  { %v5986_v60 = vadd.f32 %v6778_v21, %v5978_v8 }
 0x603   :  { %v5987_v24 = vsub.f32 0.0, %v5986_v60 }
 0x605   :  { %v5988_v25 = vmul.f32 1.442695, %v5987_v24 }
 0x607   :  { %7369 = vpow2.f32 %v5988_v25 }
 0x611   :  { %v7370_v26 = vpop.eup %7369 }
 0x612   :  { %v5990_v27 = vadd.f32 1.0, %v7370_v26 }
 0x614   :  { %7371 = vrcp.f32 %v5990_v27 }
 0x61e   :  { %v7372_v54 = vpop.eup %7371 }
 0x61f   :  { %5993 = vst.msk [vmem:[%s7888_s9] sm:$0xff] %vm5992_vm0, %v7372_v54 }
 0x620   :  { %5998 = vsyncpa [#allocation4], 1 }
 0x621   :  { %5999 = vsyncpa [#allocation6], 1 }
 0x622   :  { %6000 = vsyncpa [#allocation9], 1 }
 0x623   :  { %6001 = vsyncpa [#allocation12], 1 }
 0x624   :  { %6002 = vsyncpa [#allocation15], 1 }

</bundles_post_ra>
